<compile_context>
chip_gen: v7x
topology: tpu7x:2x2x1
jax: 0.10.0
libtpu: 0.0.40
codegen_flags: <defaults>
</compile_context>

<pallas_src>
import math

import jax
import jax.numpy as jnp
from jax.experimental import pallas as pl
from jax.experimental.pallas import tpu as pltpu


def _round_up(x, m):
    return ((x + m - 1) // m) * m


def _make_fused_lstm_kernel(num_layers, seq_len, b_tile, f_pad, h_pad, o_pad,
                            compute_dtype):
    """Builds the fused (all LSTM layers + FC head) kernel body."""
    h4 = 4 * h_pad
    has_seq = num_layers > 1

    def sigmoid(x):
        # Single EUP transcendental per gate (vs exp + divide).
        return 0.5 * jnp.tanh(0.5 * x) + 0.5

    def time_loop(body):
        if seq_len <= 32:
            # Fully static unroll: static indexing + full scheduler visibility.
            for t in range(seq_len):
                body(t, 0)
        else:
            jax.lax.fori_loop(0, seq_len, body, 0, unroll=4)

    def kernel(*args):
        x_ref = args[0]                                   # (T, b_tile, f_pad) cdt
        layer_refs = args[1:1 + 3 * num_layers]           # (w_x, w_h, b) per layer
        fc_w_ref = args[1 + 3 * num_layers]                # (h_pad, o_pad) cdt
        fc_b_ref = args[2 + 3 * num_layers]                # (1, o_pad) f32
        out_ref = args[3 + 3 * num_layers]                 # (b_tile, o_pad) f32
        scratch = args[4 + 3 * num_layers:]
        if has_seq:
            gx_scr, h_scr, c_scr, seq_scr = scratch
        else:
            gx_scr, h_scr, c_scr = scratch
            seq_scr = None

        for layer in range(num_layers):
            wx_ref = layer_refs[3 * layer + 0]
            wh_ref = layer_refs[3 * layer + 1]
            b_ref = layer_refs[3 * layer + 2]
            src_ref = x_ref if layer == 0 else seq_scr
            write_seq = layer < num_layers - 1

            # ---- Hoisted input projection (+ bias) for all timesteps.
            # Independent matmuls, fully pipelined; off the recurrent critical path.
            def proj(t, carry, src_ref=src_ref, wx_ref=wx_ref, b_ref=b_ref):
                gx_scr[t] = (
                    jnp.dot(src_ref[t], wx_ref[...],
                            preferred_element_type=jnp.float32)
                    + b_ref[...])                          # (b_tile, 4*h_pad) f32
                return carry

            time_loop(proj)

            # ---- Recurrence: each step is only (b_tile, H) @ (H, 4H) + gates_x[t].
            # Zero-padded weight/bias columns keep padded c/h columns exactly 0.
            h_scr[...] = jnp.zeros((b_tile, h_pad), compute_dtype)
            c_scr[...] = jnp.zeros((b_tile, h_pad), jnp.float32)

            def step(t, carry, wh_ref=wh_ref, write_seq=write_seq):
                gates = gx_scr[t] + jnp.dot(h_scr[...], wh_ref[...],
                                            preferred_element_type=jnp.float32)
                # Gate blocks start on 128-lane boundaries (H padded to 128).
                i_g = sigmoid(gates[:, 0 * h_pad:1 * h_pad])
                f_g = sigmoid(gates[:, 1 * h_pad:2 * h_pad])
                g_g = jnp.tanh(gates[:, 2 * h_pad:3 * h_pad])
                o_g = sigmoid(gates[:, 3 * h_pad:4 * h_pad])
                c_new = f_g * c_scr[...] + i_g * g_g
                h_new = (o_g * jnp.tanh(c_new)).astype(compute_dtype)
                c_scr[...] = c_new
                h_scr[...] = h_new
                if write_seq:
                    seq_scr[t] = h_new
                return carry

            time_loop(step)

        # FC head on the last timestep's hidden state of the last layer
        # (still resident in h_scr).
        out_ref[...] = (
            jnp.dot(h_scr[...], fc_w_ref[...], preferred_element_type=jnp.float32)
            + fc_b_ref[...]
        ).astype(out_ref.dtype)

    return kernel


def _fused_lstm_call(params, config, x_p, seq_len, b_pad, b_tile):
    num_layers = config["num_layers"]
    f_pad = config["f_pad"]
    h_pad = config["h_pad"]
    o_pad = config["o_pad"]
    cdt = config["compute_dtype"]
    cdt_bytes = jnp.dtype(cdt).itemsize

    kernel = _make_fused_lstm_kernel(num_layers, seq_len, b_tile, f_pad, h_pad,
                                     o_pad, cdt)

    in_arrays = [x_p]
    in_specs = [pl.BlockSpec((seq_len, b_tile, f_pad), lambda b: (0, b, 0))]
    for layer in range(num_layers):
        fin = f_pad if layer == 0 else h_pad
        in_arrays += [params["w_x"][layer], params["w_h"][layer],
                      params["b"][layer]]
        in_specs += [
            pl.BlockSpec((fin, 4 * h_pad), lambda b: (0, 0)),
            pl.BlockSpec((h_pad, 4 * h_pad), lambda b: (0, 0)),
            pl.BlockSpec((1, 4 * h_pad), lambda b: (0, 0)),
        ]
    in_arrays += [params["fc_w"], params["fc_b"]]
    in_specs += [pl.BlockSpec((h_pad, o_pad), lambda b: (0, 0)),
                 pl.BlockSpec((1, o_pad), lambda b: (0, 0))]

    scratch_shapes = [
        pltpu.VMEM((seq_len, b_tile, 4 * h_pad), jnp.float32),   # gates_x per layer
        pltpu.VMEM((b_tile, h_pad), cdt),                        # recurrent h
        pltpu.VMEM((b_tile, h_pad), jnp.float32),                # cell state c
    ]
    if num_layers > 1:
        # Single slot is enough: the projection consumes layer l-1's sequence
        # before layer l's recurrence overwrites it.
        scratch_shapes.append(pltpu.VMEM((seq_len, b_tile, h_pad), cdt))

    # --- VMEM budget: compute what we actually need and request that (+ headroom),
    # clamped below the chip's physical VMEM (64 MiB on v7x, 128 MiB on v5e/v6e).
    weight_bytes = 0
    for layer in range(num_layers):
        fin = f_pad if layer == 0 else h_pad
        weight_bytes += (fin + h_pad) * 4 * h_pad * cdt_bytes + 4 * h_pad * 4
    weight_bytes += h_pad * o_pad * cdt_bytes + o_pad * 4
    io_bytes = seq_len * b_tile * f_pad * cdt_bytes + b_tile * o_pad * 4
    scratch_bytes = (seq_len * b_tile * 4 * h_pad * 4
                     + b_tile * h_pad * (cdt_bytes + 4)
                     + (seq_len * b_tile * h_pad * cdt_bytes
                        if num_layers > 1 else 0))
    need = 2 * (weight_bytes + io_bytes) + scratch_bytes   # pipeliner double-buffers I/O
    try:
        cap = int(pltpu.get_tpu_info().vmem_capacity_bytes)
    except Exception:  # pragma: no cover - conservative fallback (v7x-sized)
        cap = 64 * 1024 * 1024
    vmem_limit = min(max(int(need * 1.5) + (8 << 20), 16 << 20), cap - (4 << 20))

    return pl.pallas_call(
        kernel,
        out_shape=jax.ShapeDtypeStruct((b_pad, o_pad), jnp.float32),
        grid_spec=pltpu.PrefetchScalarGridSpec(
            num_scalar_prefetch=0,
            grid=(b_pad // b_tile,),     # batch tiles (parallel across TCs on v7x)
            in_specs=in_specs,
            out_specs=pl.BlockSpec((b_tile, o_pad), lambda b: (b, 0)),
            scratch_shapes=scratch_shapes,
        ),
        compiler_params=pltpu.CompilerParams(
            dimension_semantics=("parallel",),
            vmem_limit_bytes=vmem_limit,
        ),
    )(*in_arrays)


def init_params(key, input_size, hidden_size, num_layers, output_size,
                compute_dtype=jnp.bfloat16):
    """PyTorch-style U(-1/sqrt(H), 1/sqrt(H)) init, pre-packed/padded for the kernel."""
    H = hidden_size
    f_pad = _round_up(input_size, 128)
    h_pad = _round_up(hidden_size, 128)
    o_pad = _round_up(output_size, 128)
    bound = 1.0 / math.sqrt(H)

    params = {"w_x": [], "w_h": [], "b": []}
    for layer in range(num_layers):
        fin = input_size if layer == 0 else hidden_size
        fin_pad = f_pad if layer == 0 else h_pad
        key, k1, k2, k3, k4 = jax.random.split(key, 5)
        w_ih = jax.random.uniform(k1, (4 * H, fin), jnp.float32, -bound, bound)
        w_hh = jax.random.uniform(k2, (4 * H, H), jnp.float32, -bound, bound)
        b_ih = jax.random.uniform(k3, (4 * H,), jnp.float32, -bound, bound)
        b_hh = jax.random.uniform(k4, (4 * H,), jnp.float32, -bound, bound)
        # Separate input / recurrent projections so the input part can be hoisted
        # out of the recurrence. Each gate's columns start on an h_pad (lane-aligned)
        # boundary; zero padding keeps padded c/h columns exactly 0.
        wx = jnp.zeros((fin_pad, 4 * h_pad), jnp.float32)
        wh = jnp.zeros((h_pad, 4 * h_pad), jnp.float32)
        b = jnp.zeros((1, 4 * h_pad), jnp.float32)
        for g in range(4):
            wx = wx.at[:fin, g * h_pad:g * h_pad + H].set(w_ih[g * H:(g + 1) * H, :].T)
            wh = wh.at[:H, g * h_pad:g * h_pad + H].set(w_hh[g * H:(g + 1) * H, :].T)
            b = b.at[0, g * h_pad:g * h_pad + H].set(
                b_ih[g * H:(g + 1) * H] + b_hh[g * H:(g + 1) * H])
        params["w_x"].append(wx.astype(compute_dtype))
        params["w_h"].append(wh.astype(compute_dtype))
        params["b"].append(b)                              # bias stays f32

    key, k5, k6 = jax.random.split(key, 3)
    fc_bound = 1.0 / math.sqrt(hidden_size)
    w_fc = jax.random.uniform(k5, (output_size, hidden_size), jnp.float32,
                              -fc_bound, fc_bound)
    b_fc = jax.random.uniform(k6, (output_size,), jnp.float32, -fc_bound, fc_bound)
    params["fc_w"] = (jnp.zeros((h_pad, o_pad), jnp.float32)
                      .at[:hidden_size, :output_size].set(w_fc.T)
                      .astype(compute_dtype))
    params["fc_b"] = (jnp.zeros((1, o_pad), jnp.float32)
                      .at[0, :output_size].set(b_fc))

    config = {
        "input_size": input_size,
        "hidden_size": hidden_size,
        "num_layers": num_layers,
        "output_size": output_size,
        "f_pad": f_pad,
        "h_pad": h_pad,
        "o_pad": o_pad,
        "compute_dtype": compute_dtype,
    }
    return params, config


def lstm_forward(params, x_btf, config):
    """x_btf: (B, T, input_size) -> (B, output_size). Matches PyTorch eval forward."""
    B, T, F = x_btf.shape
    f_pad = config["f_pad"]
    cdt = config["compute_dtype"]
    # Batch tile scales with batch so the MXU M dimension fills up for batched
    # inference; the batch grid axis only opens when there is >1 tile.
    b_min = _round_up(max(B, 1), 8)
    b_tile = min(b_min, 128)
    b_pad = _round_up(b_min, b_tile)
    # Time-major, zero-padded, already in compute dtype (halves the x DMA vs f32).
    x_tbf = jnp.transpose(x_btf, (1, 0, 2)).astype(cdt)
    x_p = jnp.zeros((T, b_pad, f_pad), cdt).at[:, :B, :F].set(x_tbf)
    out_p = _fused_lstm_call(params, config, x_p, T, b_pad, b_tile)
    return out_p[:B, :config["output_size"]]


if __name__ == "__main__":
    input_size = 16
    hidden_size = 32
    num_layers = 2
    output_size = 4
    batch = 2
    seq_len = 8

    key = jax.random.PRNGKey(0)
    key, xk, pk = jax.random.split(key, 3)
    x = jax.random.normal(xk, (batch, seq_len, input_size), dtype=jnp.float32)
    params, config = init_params(pk, input_size, hidden_size, num_layers,
                                 output_size)

    fwd = jax.jit(lambda p, xb: lstm_forward(p, xb, config))
    out = fwd(params, x)
    jax.block_until_ready(out)
    assert out.shape == (batch, output_size)
    print("KERNEL_OK")
</pallas_src>

<mosaic_0001>
module attributes {stable_mosaic.version = 11 : i64} {
  func.func @kernel(%arg0: i32, %arg1: memref<8x8x128xbf16, #tpu.memory_space<vmem>>, %arg2: memref<128x512xbf16, #tpu.memory_space<vmem>>, %arg3: memref<128x512xbf16, #tpu.memory_space<vmem>>, %arg4: memref<1x512xf32, #tpu.memory_space<vmem>>, %arg5: memref<128x512xbf16, #tpu.memory_space<vmem>>, %arg6: memref<128x512xbf16, #tpu.memory_space<vmem>>, %arg7: memref<1x512xf32, #tpu.memory_space<vmem>>, %arg8: memref<128x128xbf16, #tpu.memory_space<vmem>>, %arg9: memref<1x128xf32, #tpu.memory_space<vmem>>, %arg10: memref<8x128xf32, #tpu.memory_space<vmem>>, %arg11: memref<8x8x512xf32, #tpu.memory_space<vmem>>, %arg12: memref<8x128xbf16, #tpu.memory_space<vmem>>, %arg13: memref<8x128xf32, #tpu.memory_space<vmem>>, %arg14: memref<8x8x128xbf16, #tpu.memory_space<vmem>>) attributes {dimension_semantics = [#tpu.dimension_semantics<parallel>], iteration_bounds = array<i64: 1>, scalar_prefetch = 0 : i64, scratch_operands = 4 : i64, tpu.core_type = #tpu.core_type<tc>, window_params = [{transform_indices = @transform_0, window_bounds = array<i64: 8, 8, 128>}, {pipeline_mode = #tpu.pipeline_mode<synchronous>, transform_indices = @transform_1, window_bounds = array<i64: 128, 512>}, {pipeline_mode = #tpu.pipeline_mode<synchronous>, transform_indices = @transform_2, window_bounds = array<i64: 128, 512>}, {pipeline_mode = #tpu.pipeline_mode<synchronous>, transform_indices = @transform_3, window_bounds = array<i64: 1, 512>}, {pipeline_mode = #tpu.pipeline_mode<synchronous>, transform_indices = @transform_4, window_bounds = array<i64: 128, 512>}, {pipeline_mode = #tpu.pipeline_mode<synchronous>, transform_indices = @transform_5, window_bounds = array<i64: 128, 512>}, {pipeline_mode = #tpu.pipeline_mode<synchronous>, transform_indices = @transform_6, window_bounds = array<i64: 1, 512>}, {pipeline_mode = #tpu.pipeline_mode<synchronous>, transform_indices = @transform_7, window_bounds = array<i64: 128, 128>}, {pipeline_mode = #tpu.pipeline_mode<synchronous>, transform_indices = @transform_8, window_bounds = array<i64: 1, 128>}, {transform_indices = @transform_9, window_bounds = array<i64: 8, 128>}]} {
    %c0 = arith.constant 0 : index
    %c0_0 = arith.constant 0 : index
    %c0_1 = arith.constant 0 : index
    %0 = vector.load %arg1[%c0, %c0_0, %c0_1] : memref<8x8x128xbf16, #tpu.memory_space<vmem>>, vector<1x8x128xbf16>
    %1 = vector.shape_cast %0 : vector<1x8x128xbf16> to vector<8x128xbf16>
    %c0_2 = arith.constant 0 : index
    %c0_3 = arith.constant 0 : index
    %2 = vector.load %arg2[%c0_2, %c0_3] : memref<128x512xbf16, #tpu.memory_space<vmem>>, vector<128x512xbf16>
    %cst = arith.constant dense<0.000000e+00> : vector<8x512xf32>
    %3 = tpu.matmul %1, %2, %cst {dimension_numbers = #tpu.dot_dimension_numbers<[1], [0], [0], [1], [0, 0, 1, 1], [], []>} : vector<8x128xbf16>, vector<128x512xbf16>, vector<8x512xf32> -> vector<8x512xf32>
    %c0_4 = arith.constant 0 : index
    %c0_5 = arith.constant 0 : index
    %4 = vector.load %arg4[%c0_4, %c0_5] : memref<1x512xf32, #tpu.memory_space<vmem>>, vector<1x512xf32>
    %5 = vector.broadcast %4 : vector<1x512xf32> to vector<8x512xf32>
    %6 = arith.addf %3, %5 : vector<8x512xf32>
    %c0_6 = arith.constant 0 : index
    %c0_7 = arith.constant 0 : index
    %c0_8 = arith.constant 0 : index
    %7 = vector.load %arg11[%c0_6, %c0_7, %c0_8] : memref<8x8x512xf32, #tpu.memory_space<vmem>>, vector<1x8x512xf32>
    %8 = vector.shape_cast %7 : vector<1x8x512xf32> to vector<8x512xf32>
    %9 = vector.shape_cast %6 : vector<8x512xf32> to vector<1x8x512xf32>
    tpu.vector_store %arg11[%c0_6, %c0_7, %c0_8], %9 {strides = array<i32>} : memref<8x8x512xf32, #tpu.memory_space<vmem>>, vector<1x8x512xf32>,
    %c1 = arith.constant 1 : index
    %c0_9 = arith.constant 0 : index
    %c0_10 = arith.constant 0 : index
    %10 = vector.load %arg1[%c1, %c0_9, %c0_10] : memref<8x8x128xbf16, #tpu.memory_space<vmem>>, vector<1x8x128xbf16>
    %11 = vector.shape_cast %10 : vector<1x8x128xbf16> to vector<8x128xbf16>
    %c0_11 = arith.constant 0 : index
    %c0_12 = arith.constant 0 : index
    %12 = vector.load %arg2[%c0_11, %c0_12] : memref<128x512xbf16, #tpu.memory_space<vmem>>, vector<128x512xbf16>
    %cst_13 = arith.constant dense<0.000000e+00> : vector<8x512xf32>
    %13 = tpu.matmul %11, %12, %cst_13 {dimension_numbers = #tpu.dot_dimension_numbers<[1], [0], [0], [1], [0, 0, 1, 1], [], []>} : vector<8x128xbf16>, vector<128x512xbf16>, vector<8x512xf32> -> vector<8x512xf32>
    %c0_14 = arith.constant 0 : index
    %c0_15 = arith.constant 0 : index
    %14 = vector.load %arg4[%c0_14, %c0_15] : memref<1x512xf32, #tpu.memory_space<vmem>>, vector<1x512xf32>
    %15 = vector.broadcast %14 : vector<1x512xf32> to vector<8x512xf32>
    %16 = arith.addf %13, %15 : vector<8x512xf32>
    %c1_16 = arith.constant 1 : index
    %c0_17 = arith.constant 0 : index
    %c0_18 = arith.constant 0 : index
    %17 = vector.load %arg11[%c1_16, %c0_17, %c0_18] : memref<8x8x512xf32, #tpu.memory_space<vmem>>, vector<1x8x512xf32>
    %18 = vector.shape_cast %17 : vector<1x8x512xf32> to vector<8x512xf32>
    %19 = vector.shape_cast %16 : vector<8x512xf32> to vector<1x8x512xf32>
    tpu.vector_store %arg11[%c1_16, %c0_17, %c0_18], %19 {strides = array<i32>} : memref<8x8x512xf32, #tpu.memory_space<vmem>>, vector<1x8x512xf32>,
    %c2 = arith.constant 2 : index
    %c0_19 = arith.constant 0 : index
    %c0_20 = arith.constant 0 : index
    %20 = vector.load %arg1[%c2, %c0_19, %c0_20] : memref<8x8x128xbf16, #tpu.memory_space<vmem>>, vector<1x8x128xbf16>
    %21 = vector.shape_cast %20 : vector<1x8x128xbf16> to vector<8x128xbf16>
    %c0_21 = arith.constant 0 : index
    %c0_22 = arith.constant 0 : index
    %22 = vector.load %arg2[%c0_21, %c0_22] : memref<128x512xbf16, #tpu.memory_space<vmem>>, vector<128x512xbf16>
    %cst_23 = arith.constant dense<0.000000e+00> : vector<8x512xf32>
    %23 = tpu.matmul %21, %22, %cst_23 {dimension_numbers = #tpu.dot_dimension_numbers<[1], [0], [0], [1], [0, 0, 1, 1], [], []>} : vector<8x128xbf16>, vector<128x512xbf16>, vector<8x512xf32> -> vector<8x512xf32>
    %c0_24 = arith.constant 0 : index
    %c0_25 = arith.constant 0 : index
    %24 = vector.load %arg4[%c0_24, %c0_25] : memref<1x512xf32, #tpu.memory_space<vmem>>, vector<1x512xf32>
    %25 = vector.broadcast %24 : vector<1x512xf32> to vector<8x512xf32>
    %26 = arith.addf %23, %25 : vector<8x512xf32>
    %c2_26 = arith.constant 2 : index
    %c0_27 = arith.constant 0 : index
    %c0_28 = arith.constant 0 : index
    %27 = vector.load %arg11[%c2_26, %c0_27, %c0_28] : memref<8x8x512xf32, #tpu.memory_space<vmem>>, vector<1x8x512xf32>
    %28 = vector.shape_cast %27 : vector<1x8x512xf32> to vector<8x512xf32>
    %29 = vector.shape_cast %26 : vector<8x512xf32> to vector<1x8x512xf32>
    tpu.vector_store %arg11[%c2_26, %c0_27, %c0_28], %29 {strides = array<i32>} : memref<8x8x512xf32, #tpu.memory_space<vmem>>, vector<1x8x512xf32>,
    %c3 = arith.constant 3 : index
    %c0_29 = arith.constant 0 : index
    %c0_30 = arith.constant 0 : index
    %30 = vector.load %arg1[%c3, %c0_29, %c0_30] : memref<8x8x128xbf16, #tpu.memory_space<vmem>>, vector<1x8x128xbf16>
    %31 = vector.shape_cast %30 : vector<1x8x128xbf16> to vector<8x128xbf16>
    %c0_31 = arith.constant 0 : index
    %c0_32 = arith.constant 0 : index
    %32 = vector.load %arg2[%c0_31, %c0_32] : memref<128x512xbf16, #tpu.memory_space<vmem>>, vector<128x512xbf16>
    %cst_33 = arith.constant dense<0.000000e+00> : vector<8x512xf32>
    %33 = tpu.matmul %31, %32, %cst_33 {dimension_numbers = #tpu.dot_dimension_numbers<[1], [0], [0], [1], [0, 0, 1, 1], [], []>} : vector<8x128xbf16>, vector<128x512xbf16>, vector<8x512xf32> -> vector<8x512xf32>
    %c0_34 = arith.constant 0 : index
    %c0_35 = arith.constant 0 : index
    %34 = vector.load %arg4[%c0_34, %c0_35] : memref<1x512xf32, #tpu.memory_space<vmem>>, vector<1x512xf32>
    %35 = vector.broadcast %34 : vector<1x512xf32> to vector<8x512xf32>
    %36 = arith.addf %33, %35 : vector<8x512xf32>
    %c3_36 = arith.constant 3 : index
    %c0_37 = arith.constant 0 : index
    %c0_38 = arith.constant 0 : index
    %37 = vector.load %arg11[%c3_36, %c0_37, %c0_38] : memref<8x8x512xf32, #tpu.memory_space<vmem>>, vector<1x8x512xf32>
    %38 = vector.shape_cast %37 : vector<1x8x512xf32> to vector<8x512xf32>
    %39 = vector.shape_cast %36 : vector<8x512xf32> to vector<1x8x512xf32>
    tpu.vector_store %arg11[%c3_36, %c0_37, %c0_38], %39 {strides = array<i32>} : memref<8x8x512xf32, #tpu.memory_space<vmem>>, vector<1x8x512xf32>,
    %c4 = arith.constant 4 : index
    %c0_39 = arith.constant 0 : index
    %c0_40 = arith.constant 0 : index
    %40 = vector.load %arg1[%c4, %c0_39, %c0_40] : memref<8x8x128xbf16, #tpu.memory_space<vmem>>, vector<1x8x128xbf16>
    %41 = vector.shape_cast %40 : vector<1x8x128xbf16> to vector<8x128xbf16>
    %c0_41 = arith.constant 0 : index
    %c0_42 = arith.constant 0 : index
    %42 = vector.load %arg2[%c0_41, %c0_42] : memref<128x512xbf16, #tpu.memory_space<vmem>>, vector<128x512xbf16>
    %cst_43 = arith.constant dense<0.000000e+00> : vector<8x512xf32>
    %43 = tpu.matmul %41, %42, %cst_43 {dimension_numbers = #tpu.dot_dimension_numbers<[1], [0], [0], [1], [0, 0, 1, 1], [], []>} : vector<8x128xbf16>, vector<128x512xbf16>, vector<8x512xf32> -> vector<8x512xf32>
    %c0_44 = arith.constant 0 : index
    %c0_45 = arith.constant 0 : index
    %44 = vector.load %arg4[%c0_44, %c0_45] : memref<1x512xf32, #tpu.memory_space<vmem>>, vector<1x512xf32>
    %45 = vector.broadcast %44 : vector<1x512xf32> to vector<8x512xf32>
    %46 = arith.addf %43, %45 : vector<8x512xf32>
    %c4_46 = arith.constant 4 : index
    %c0_47 = arith.constant 0 : index
    %c0_48 = arith.constant 0 : index
    %47 = vector.load %arg11[%c4_46, %c0_47, %c0_48] : memref<8x8x512xf32, #tpu.memory_space<vmem>>, vector<1x8x512xf32>
    %48 = vector.shape_cast %47 : vector<1x8x512xf32> to vector<8x512xf32>
    %49 = vector.shape_cast %46 : vector<8x512xf32> to vector<1x8x512xf32>
    tpu.vector_store %arg11[%c4_46, %c0_47, %c0_48], %49 {strides = array<i32>} : memref<8x8x512xf32, #tpu.memory_space<vmem>>, vector<1x8x512xf32>,
    %c5 = arith.constant 5 : index
    %c0_49 = arith.constant 0 : index
    %c0_50 = arith.constant 0 : index
    %50 = vector.load %arg1[%c5, %c0_49, %c0_50] : memref<8x8x128xbf16, #tpu.memory_space<vmem>>, vector<1x8x128xbf16>
    %51 = vector.shape_cast %50 : vector<1x8x128xbf16> to vector<8x128xbf16>
    %c0_51 = arith.constant 0 : index
    %c0_52 = arith.constant 0 : index
    %52 = vector.load %arg2[%c0_51, %c0_52] : memref<128x512xbf16, #tpu.memory_space<vmem>>, vector<128x512xbf16>
    %cst_53 = arith.constant dense<0.000000e+00> : vector<8x512xf32>
    %53 = tpu.matmul %51, %52, %cst_53 {dimension_numbers = #tpu.dot_dimension_numbers<[1], [0], [0], [1], [0, 0, 1, 1], [], []>} : vector<8x128xbf16>, vector<128x512xbf16>, vector<8x512xf32> -> vector<8x512xf32>
    %c0_54 = arith.constant 0 : index
    %c0_55 = arith.constant 0 : index
    %54 = vector.load %arg4[%c0_54, %c0_55] : memref<1x512xf32, #tpu.memory_space<vmem>>, vector<1x512xf32>
    %55 = vector.broadcast %54 : vector<1x512xf32> to vector<8x512xf32>
    %56 = arith.addf %53, %55 : vector<8x512xf32>
    %c5_56 = arith.constant 5 : index
    %c0_57 = arith.constant 0 : index
    %c0_58 = arith.constant 0 : index
    %57 = vector.load %arg11[%c5_56, %c0_57, %c0_58] : memref<8x8x512xf32, #tpu.memory_space<vmem>>, vector<1x8x512xf32>
    %58 = vector.shape_cast %57 : vector<1x8x512xf32> to vector<8x512xf32>
    %59 = vector.shape_cast %56 : vector<8x512xf32> to vector<1x8x512xf32>
    tpu.vector_store %arg11[%c5_56, %c0_57, %c0_58], %59 {strides = array<i32>} : memref<8x8x512xf32, #tpu.memory_space<vmem>>, vector<1x8x512xf32>,
    %c6 = arith.constant 6 : index
    %c0_59 = arith.constant 0 : index
    %c0_60 = arith.constant 0 : index
    %60 = vector.load %arg1[%c6, %c0_59, %c0_60] : memref<8x8x128xbf16, #tpu.memory_space<vmem>>, vector<1x8x128xbf16>
    %61 = vector.shape_cast %60 : vector<1x8x128xbf16> to vector<8x128xbf16>
    %c0_61 = arith.constant 0 : index
    %c0_62 = arith.constant 0 : index
    %62 = vector.load %arg2[%c0_61, %c0_62] : memref<128x512xbf16, #tpu.memory_space<vmem>>, vector<128x512xbf16>
    %cst_63 = arith.constant dense<0.000000e+00> : vector<8x512xf32>
    %63 = tpu.matmul %61, %62, %cst_63 {dimension_numbers = #tpu.dot_dimension_numbers<[1], [0], [0], [1], [0, 0, 1, 1], [], []>} : vector<8x128xbf16>, vector<128x512xbf16>, vector<8x512xf32> -> vector<8x512xf32>
    %c0_64 = arith.constant 0 : index
    %c0_65 = arith.constant 0 : index
    %64 = vector.load %arg4[%c0_64, %c0_65] : memref<1x512xf32, #tpu.memory_space<vmem>>, vector<1x512xf32>
    %65 = vector.broadcast %64 : vector<1x512xf32> to vector<8x512xf32>
    %66 = arith.addf %63, %65 : vector<8x512xf32>
    %c6_66 = arith.constant 6 : index
    %c0_67 = arith.constant 0 : index
    %c0_68 = arith.constant 0 : index
    %67 = vector.load %arg11[%c6_66, %c0_67, %c0_68] : memref<8x8x512xf32, #tpu.memory_space<vmem>>, vector<1x8x512xf32>
    %68 = vector.shape_cast %67 : vector<1x8x512xf32> to vector<8x512xf32>
    %69 = vector.shape_cast %66 : vector<8x512xf32> to vector<1x8x512xf32>
    tpu.vector_store %arg11[%c6_66, %c0_67, %c0_68], %69 {strides = array<i32>} : memref<8x8x512xf32, #tpu.memory_space<vmem>>, vector<1x8x512xf32>,
    %c7 = arith.constant 7 : index
    %c0_69 = arith.constant 0 : index
    %c0_70 = arith.constant 0 : index
    %70 = vector.load %arg1[%c7, %c0_69, %c0_70] : memref<8x8x128xbf16, #tpu.memory_space<vmem>>, vector<1x8x128xbf16>
    %71 = vector.shape_cast %70 : vector<1x8x128xbf16> to vector<8x128xbf16>
    %c0_71 = arith.constant 0 : index
    %c0_72 = arith.constant 0 : index
    %72 = vector.load %arg2[%c0_71, %c0_72] : memref<128x512xbf16, #tpu.memory_space<vmem>>, vector<128x512xbf16>
    %cst_73 = arith.constant dense<0.000000e+00> : vector<8x512xf32>
    %73 = tpu.matmul %71, %72, %cst_73 {dimension_numbers = #tpu.dot_dimension_numbers<[1], [0], [0], [1], [0, 0, 1, 1], [], []>} : vector<8x128xbf16>, vector<128x512xbf16>, vector<8x512xf32> -> vector<8x512xf32>
    %c0_74 = arith.constant 0 : index
    %c0_75 = arith.constant 0 : index
    %74 = vector.load %arg4[%c0_74, %c0_75] : memref<1x512xf32, #tpu.memory_space<vmem>>, vector<1x512xf32>
    %75 = vector.broadcast %74 : vector<1x512xf32> to vector<8x512xf32>
    %76 = arith.addf %73, %75 : vector<8x512xf32>
    %c7_76 = arith.constant 7 : index
    %c0_77 = arith.constant 0 : index
    %c0_78 = arith.constant 0 : index
    %77 = vector.load %arg11[%c7_76, %c0_77, %c0_78] : memref<8x8x512xf32, #tpu.memory_space<vmem>>, vector<1x8x512xf32>
    %78 = vector.shape_cast %77 : vector<1x8x512xf32> to vector<8x512xf32>
    %79 = vector.shape_cast %76 : vector<8x512xf32> to vector<1x8x512xf32>
    tpu.vector_store %arg11[%c7_76, %c0_77, %c0_78], %79 {strides = array<i32>} : memref<8x8x512xf32, #tpu.memory_space<vmem>>, vector<1x8x512xf32>,
    %cst_79 = arith.constant 0.000000e+00 : bf16
    %80 = vector.broadcast %cst_79 : bf16 to vector<8x128xbf16>
    %c0_80 = arith.constant 0 : index
    %c0_81 = arith.constant 0 : index
    %81 = vector.load %arg12[%c0_80, %c0_81] : memref<8x128xbf16, #tpu.memory_space<vmem>>, vector<8x128xbf16>
    tpu.vector_store %arg12[%c0_80, %c0_81], %80 {strides = array<i32>} : memref<8x128xbf16, #tpu.memory_space<vmem>>, vector<8x128xbf16>,
    %cst_82 = arith.constant 0.000000e+00 : f32
    %82 = vector.broadcast %cst_82 : f32 to vector<8x128xf32>
    %c0_83 = arith.constant 0 : index
    %c0_84 = arith.constant 0 : index
    %83 = vector.load %arg13[%c0_83, %c0_84] : memref<8x128xf32, #tpu.memory_space<vmem>>, vector<8x128xf32>
    tpu.vector_store %arg13[%c0_83, %c0_84], %82 {strides = array<i32>} : memref<8x128xf32, #tpu.memory_space<vmem>>, vector<8x128xf32>,
    %c0_85 = arith.constant 0 : index
    %c0_86 = arith.constant 0 : index
    %c0_87 = arith.constant 0 : index
    %84 = vector.load %arg11[%c0_85, %c0_86, %c0_87] : memref<8x8x512xf32, #tpu.memory_space<vmem>>, vector<1x8x512xf32>
    %85 = vector.shape_cast %84 : vector<1x8x512xf32> to vector<8x512xf32>
    %c0_88 = arith.constant 0 : index
    %c0_89 = arith.constant 0 : index
    %86 = vector.load %arg12[%c0_88, %c0_89] : memref<8x128xbf16, #tpu.memory_space<vmem>>, vector<8x128xbf16>
    %c0_90 = arith.constant 0 : index
    %c0_91 = arith.constant 0 : index
    %87 = vector.load %arg3[%c0_90, %c0_91] : memref<128x512xbf16, #tpu.memory_space<vmem>>, vector<128x512xbf16>
    %cst_92 = arith.constant dense<0.000000e+00> : vector<8x512xf32>
    %88 = tpu.matmul %86, %87, %cst_92 {dimension_numbers = #tpu.dot_dimension_numbers<[1], [0], [0], [1], [0, 0, 1, 1], [], []>} : vector<8x128xbf16>, vector<128x512xbf16>, vector<8x512xf32> -> vector<8x512xf32>
    %89 = arith.addf %85, %88 : vector<8x512xf32>
    %90 = vector.extract_strided_slice %89 {offsets = [0, 0], sizes = [8, 128], strides = [1, 1]} : vector<8x512xf32> to vector<8x128xf32>
    %cst_93 = arith.constant 5.000000e-01 : f32
    %91 = vector.broadcast %cst_93 : f32 to vector<8x128xf32>
    %92 = arith.mulf %91, %90 : vector<8x128xf32>
    %93 = math.tanh %92 : vector<8x128xf32>
    %cst_94 = arith.constant 5.000000e-01 : f32
    %94 = vector.broadcast %cst_94 : f32 to vector<8x128xf32>
    %95 = arith.mulf %94, %93 : vector<8x128xf32>
    %cst_95 = arith.constant 5.000000e-01 : f32
    %96 = vector.broadcast %cst_95 : f32 to vector<8x128xf32>
    %97 = arith.addf %95, %96 : vector<8x128xf32>
    %98 = vector.extract_strided_slice %89 {offsets = [0, 128], sizes = [8, 128], strides = [1, 1]} : vector<8x512xf32> to vector<8x128xf32>
    %cst_96 = arith.constant 5.000000e-01 : f32
    %99 = vector.broadcast %cst_96 : f32 to vector<8x128xf32>
    %100 = arith.mulf %99, %98 : vector<8x128xf32>
    %101 = math.tanh %100 : vector<8x128xf32>
    %cst_97 = arith.constant 5.000000e-01 : f32
    %102 = vector.broadcast %cst_97 : f32 to vector<8x128xf32>
    %103 = arith.mulf %102, %101 : vector<8x128xf32>
    %cst_98 = arith.constant 5.000000e-01 : f32
    %104 = vector.broadcast %cst_98 : f32 to vector<8x128xf32>
    %105 = arith.addf %103, %104 : vector<8x128xf32>
    %106 = vector.extract_strided_slice %89 {offsets = [0, 256], sizes = [8, 128], strides = [1, 1]} : vector<8x512xf32> to vector<8x128xf32>
    %107 = math.tanh %106 : vector<8x128xf32>
    %108 = vector.extract_strided_slice %89 {offsets = [0, 384], sizes = [8, 128], strides = [1, 1]} : vector<8x512xf32> to vector<8x128xf32>
    %cst_99 = arith.constant 5.000000e-01 : f32
    %109 = vector.broadcast %cst_99 : f32 to vector<8x128xf32>
    %110 = arith.mulf %109, %108 : vector<8x128xf32>
    %111 = math.tanh %110 : vector<8x128xf32>
    %cst_100 = arith.constant 5.000000e-01 : f32
    %112 = vector.broadcast %cst_100 : f32 to vector<8x128xf32>
    %113 = arith.mulf %112, %111 : vector<8x128xf32>
    %cst_101 = arith.constant 5.000000e-01 : f32
    %114 = vector.broadcast %cst_101 : f32 to vector<8x128xf32>
    %115 = arith.addf %113, %114 : vector<8x128xf32>
    %c0_102 = arith.constant 0 : index
    %c0_103 = arith.constant 0 : index
    %116 = vector.load %arg13[%c0_102, %c0_103] : memref<8x128xf32, #tpu.memory_space<vmem>>, vector<8x128xf32>
    %117 = arith.mulf %105, %116 : vector<8x128xf32>
    %118 = arith.mulf %97, %107 : vector<8x128xf32>
    %119 = arith.addf %117, %118 : vector<8x128xf32>
    %120 = math.tanh %119 : vector<8x128xf32>
    %121 = arith.mulf %115, %120 : vector<8x128xf32>
    %122 = arith.truncf %121 : vector<8x128xf32> to vector<8x128xbf16>
    %c0_104 = arith.constant 0 : index
    %c0_105 = arith.constant 0 : index
    %123 = vector.load %arg13[%c0_104, %c0_105] : memref<8x128xf32, #tpu.memory_space<vmem>>, vector<8x128xf32>
    tpu.vector_store %arg13[%c0_104, %c0_105], %119 {strides = array<i32>} : memref<8x128xf32, #tpu.memory_space<vmem>>, vector<8x128xf32>,
    %c0_106 = arith.constant 0 : index
    %c0_107 = arith.constant 0 : index
    %124 = vector.load %arg12[%c0_106, %c0_107] : memref<8x128xbf16, #tpu.memory_space<vmem>>, vector<8x128xbf16>
    tpu.vector_store %arg12[%c0_106, %c0_107], %122 {strides = array<i32>} : memref<8x128xbf16, #tpu.memory_space<vmem>>, vector<8x128xbf16>,
    %c0_108 = arith.constant 0 : index
    %c0_109 = arith.constant 0 : index
    %c0_110 = arith.constant 0 : index
    %125 = vector.load %arg14[%c0_108, %c0_109, %c0_110] : memref<8x8x128xbf16, #tpu.memory_space<vmem>>, vector<1x8x128xbf16>
    %126 = vector.shape_cast %125 : vector<1x8x128xbf16> to vector<8x128xbf16>
    %127 = vector.shape_cast %122 : vector<8x128xbf16> to vector<1x8x128xbf16>
    tpu.vector_store %arg14[%c0_108, %c0_109, %c0_110], %127 {strides = array<i32>} : memref<8x8x128xbf16, #tpu.memory_space<vmem>>, vector<1x8x128xbf16>,
    %c1_111 = arith.constant 1 : index
    %c0_112 = arith.constant 0 : index
    %c0_113 = arith.constant 0 : index
    %128 = vector.load %arg11[%c1_111, %c0_112, %c0_113] : memref<8x8x512xf32, #tpu.memory_space<vmem>>, vector<1x8x512xf32>
    %129 = vector.shape_cast %128 : vector<1x8x512xf32> to vector<8x512xf32>
    %c0_114 = arith.constant 0 : index
    %c0_115 = arith.constant 0 : index
    %130 = vector.load %arg12[%c0_114, %c0_115] : memref<8x128xbf16, #tpu.memory_space<vmem>>, vector<8x128xbf16>
    %c0_116 = arith.constant 0 : index
    %c0_117 = arith.constant 0 : index
    %131 = vector.load %arg3[%c0_116, %c0_117] : memref<128x512xbf16, #tpu.memory_space<vmem>>, vector<128x512xbf16>
    %cst_118 = arith.constant dense<0.000000e+00> : vector<8x512xf32>
    %132 = tpu.matmul %130, %131, %cst_118 {dimension_numbers = #tpu.dot_dimension_numbers<[1], [0], [0], [1], [0, 0, 1, 1], [], []>} : vector<8x128xbf16>, vector<128x512xbf16>, vector<8x512xf32> -> vector<8x512xf32>
    %133 = arith.addf %129, %132 : vector<8x512xf32>
    %134 = vector.extract_strided_slice %133 {offsets = [0, 0], sizes = [8, 128], strides = [1, 1]} : vector<8x512xf32> to vector<8x128xf32>
    %cst_119 = arith.constant 5.000000e-01 : f32
    %135 = vector.broadcast %cst_119 : f32 to vector<8x128xf32>
    %136 = arith.mulf %135, %134 : vector<8x128xf32>
    %137 = math.tanh %136 : vector<8x128xf32>
    %cst_120 = arith.constant 5.000000e-01 : f32
    %138 = vector.broadcast %cst_120 : f32 to vector<8x128xf32>
    %139 = arith.mulf %138, %137 : vector<8x128xf32>
    %cst_121 = arith.constant 5.000000e-01 : f32
    %140 = vector.broadcast %cst_121 : f32 to vector<8x128xf32>
    %141 = arith.addf %139, %140 : vector<8x128xf32>
    %142 = vector.extract_strided_slice %133 {offsets = [0, 128], sizes = [8, 128], strides = [1, 1]} : vector<8x512xf32> to vector<8x128xf32>
    %cst_122 = arith.constant 5.000000e-01 : f32
    %143 = vector.broadcast %cst_122 : f32 to vector<8x128xf32>
    %144 = arith.mulf %143, %142 : vector<8x128xf32>
    %145 = math.tanh %144 : vector<8x128xf32>
    %cst_123 = arith.constant 5.000000e-01 : f32
    %146 = vector.broadcast %cst_123 : f32 to vector<8x128xf32>
    %147 = arith.mulf %146, %145 : vector<8x128xf32>
    %cst_124 = arith.constant 5.000000e-01 : f32
    %148 = vector.broadcast %cst_124 : f32 to vector<8x128xf32>
    %149 = arith.addf %147, %148 : vector<8x128xf32>
    %150 = vector.extract_strided_slice %133 {offsets = [0, 256], sizes = [8, 128], strides = [1, 1]} : vector<8x512xf32> to vector<8x128xf32>
    %151 = math.tanh %150 : vector<8x128xf32>
    %152 = vector.extract_strided_slice %133 {offsets = [0, 384], sizes = [8, 128], strides = [1, 1]} : vector<8x512xf32> to vector<8x128xf32>
    %cst_125 = arith.constant 5.000000e-01 : f32
    %153 = vector.broadcast %cst_125 : f32 to vector<8x128xf32>
    %154 = arith.mulf %153, %152 : vector<8x128xf32>
    %155 = math.tanh %154 : vector<8x128xf32>
    %cst_126 = arith.constant 5.000000e-01 : f32
    %156 = vector.broadcast %cst_126 : f32 to vector<8x128xf32>
    %157 = arith.mulf %156, %155 : vector<8x128xf32>
    %cst_127 = arith.constant 5.000000e-01 : f32
    %158 = vector.broadcast %cst_127 : f32 to vector<8x128xf32>
    %159 = arith.addf %157, %158 : vector<8x128xf32>
    %c0_128 = arith.constant 0 : index
    %c0_129 = arith.constant 0 : index
    %160 = vector.load %arg13[%c0_128, %c0_129] : memref<8x128xf32, #tpu.memory_space<vmem>>, vector<8x128xf32>
    %161 = arith.mulf %149, %160 : vector<8x128xf32>
    %162 = arith.mulf %141, %151 : vector<8x128xf32>
    %163 = arith.addf %161, %162 : vector<8x128xf32>
    %164 = math.tanh %163 : vector<8x128xf32>
    %165 = arith.mulf %159, %164 : vector<8x128xf32>
    %166 = arith.truncf %165 : vector<8x128xf32> to vector<8x128xbf16>
    %c0_130 = arith.constant 0 : index
    %c0_131 = arith.constant 0 : index
    %167 = vector.load %arg13[%c0_130, %c0_131] : memref<8x128xf32, #tpu.memory_space<vmem>>, vector<8x128xf32>
    tpu.vector_store %arg13[%c0_130, %c0_131], %163 {strides = array<i32>} : memref<8x128xf32, #tpu.memory_space<vmem>>, vector<8x128xf32>,
    %c0_132 = arith.constant 0 : index
    %c0_133 = arith.constant 0 : index
    %168 = vector.load %arg12[%c0_132, %c0_133] : memref<8x128xbf16, #tpu.memory_space<vmem>>, vector<8x128xbf16>
    tpu.vector_store %arg12[%c0_132, %c0_133], %166 {strides = array<i32>} : memref<8x128xbf16, #tpu.memory_space<vmem>>, vector<8x128xbf16>,
    %c1_134 = arith.constant 1 : index
    %c0_135 = arith.constant 0 : index
    %c0_136 = arith.constant 0 : index
    %169 = vector.load %arg14[%c1_134, %c0_135, %c0_136] : memref<8x8x128xbf16, #tpu.memory_space<vmem>>, vector<1x8x128xbf16>
    %170 = vector.shape_cast %169 : vector<1x8x128xbf16> to vector<8x128xbf16>
    %171 = vector.shape_cast %166 : vector<8x128xbf16> to vector<1x8x128xbf16>
    tpu.vector_store %arg14[%c1_134, %c0_135, %c0_136], %171 {strides = array<i32>} : memref<8x8x128xbf16, #tpu.memory_space<vmem>>, vector<1x8x128xbf16>,
    %c2_137 = arith.constant 2 : index
    %c0_138 = arith.constant 0 : index
    %c0_139 = arith.constant 0 : index
    %172 = vector.load %arg11[%c2_137, %c0_138, %c0_139] : memref<8x8x512xf32, #tpu.memory_space<vmem>>, vector<1x8x512xf32>
    %173 = vector.shape_cast %172 : vector<1x8x512xf32> to vector<8x512xf32>
    %c0_140 = arith.constant 0 : index
    %c0_141 = arith.constant 0 : index
    %174 = vector.load %arg12[%c0_140, %c0_141] : memref<8x128xbf16, #tpu.memory_space<vmem>>, vector<8x128xbf16>
    %c0_142 = arith.constant 0 : index
    %c0_143 = arith.constant 0 : index
    %175 = vector.load %arg3[%c0_142, %c0_143] : memref<128x512xbf16, #tpu.memory_space<vmem>>, vector<128x512xbf16>
    %cst_144 = arith.constant dense<0.000000e+00> : vector<8x512xf32>
    %176 = tpu.matmul %174, %175, %cst_144 {dimension_numbers = #tpu.dot_dimension_numbers<[1], [0], [0], [1], [0, 0, 1, 1], [], []>} : vector<8x128xbf16>, vector<128x512xbf16>, vector<8x512xf32> -> vector<8x512xf32>
    %177 = arith.addf %173, %176 : vector<8x512xf32>
    %178 = vector.extract_strided_slice %177 {offsets = [0, 0], sizes = [8, 128], strides = [1, 1]} : vector<8x512xf32> to vector<8x128xf32>
    %cst_145 = arith.constant 5.000000e-01 : f32
    %179 = vector.broadcast %cst_145 : f32 to vector<8x128xf32>
    %180 = arith.mulf %179, %178 : vector<8x128xf32>
    %181 = math.tanh %180 : vector<8x128xf32>
    %cst_146 = arith.constant 5.000000e-01 : f32
    %182 = vector.broadcast %cst_146 : f32 to vector<8x128xf32>
    %183 = arith.mulf %182, %181 : vector<8x128xf32>
    %cst_147 = arith.constant 5.000000e-01 : f32
    %184 = vector.broadcast %cst_147 : f32 to vector<8x128xf32>
    %185 = arith.addf %183, %184 : vector<8x128xf32>
    %186 = vector.extract_strided_slice %177 {offsets = [0, 128], sizes = [8, 128], strides = [1, 1]} : vector<8x512xf32> to vector<8x128xf32>
    %cst_148 = arith.constant 5.000000e-01 : f32
    %187 = vector.broadcast %cst_148 : f32 to vector<8x128xf32>
    %188 = arith.mulf %187, %186 : vector<8x128xf32>
    %189 = math.tanh %188 : vector<8x128xf32>
    %cst_149 = arith.constant 5.000000e-01 : f32
    %190 = vector.broadcast %cst_149 : f32 to vector<8x128xf32>
    %191 = arith.mulf %190, %189 : vector<8x128xf32>
    %cst_150 = arith.constant 5.000000e-01 : f32
    %192 = vector.broadcast %cst_150 : f32 to vector<8x128xf32>
    %193 = arith.addf %191, %192 : vector<8x128xf32>
    %194 = vector.extract_strided_slice %177 {offsets = [0, 256], sizes = [8, 128], strides = [1, 1]} : vector<8x512xf32> to vector<8x128xf32>
    %195 = math.tanh %194 : vector<8x128xf32>
    %196 = vector.extract_strided_slice %177 {offsets = [0, 384], sizes = [8, 128], strides = [1, 1]} : vector<8x512xf32> to vector<8x128xf32>
    %cst_151 = arith.constant 5.000000e-01 : f32
    %197 = vector.broadcast %cst_151 : f32 to vector<8x128xf32>
    %198 = arith.mulf %197, %196 : vector<8x128xf32>
    %199 = math.tanh %198 : vector<8x128xf32>
    %cst_152 = arith.constant 5.000000e-01 : f32
    %200 = vector.broadcast %cst_152 : f32 to vector<8x128xf32>
    %201 = arith.mulf %200, %199 : vector<8x128xf32>
    %cst_153 = arith.constant 5.000000e-01 : f32
    %202 = vector.broadcast %cst_153 : f32 to vector<8x128xf32>
    %203 = arith.addf %201, %202 : vector<8x128xf32>
    %c0_154 = arith.constant 0 : index
    %c0_155 = arith.constant 0 : index
    %204 = vector.load %arg13[%c0_154, %c0_155] : memref<8x128xf32, #tpu.memory_space<vmem>>, vector<8x128xf32>
    %205 = arith.mulf %193, %204 : vector<8x128xf32>
    %206 = arith.mulf %185, %195 : vector<8x128xf32>
    %207 = arith.addf %205, %206 : vector<8x128xf32>
    %208 = math.tanh %207 : vector<8x128xf32>
    %209 = arith.mulf %203, %208 : vector<8x128xf32>
    %210 = arith.truncf %209 : vector<8x128xf32> to vector<8x128xbf16>
    %c0_156 = arith.constant 0 : index
    %c0_157 = arith.constant 0 : index
    %211 = vector.load %arg13[%c0_156, %c0_157] : memref<8x128xf32, #tpu.memory_space<vmem>>, vector<8x128xf32>
    tpu.vector_store %arg13[%c0_156, %c0_157], %207 {strides = array<i32>} : memref<8x128xf32, #tpu.memory_space<vmem>>, vector<8x128xf32>,
    %c0_158 = arith.constant 0 : index
    %c0_159 = arith.constant 0 : index
    %212 = vector.load %arg12[%c0_158, %c0_159] : memref<8x128xbf16, #tpu.memory_space<vmem>>, vector<8x128xbf16>
    tpu.vector_store %arg12[%c0_158, %c0_159], %210 {strides = array<i32>} : memref<8x128xbf16, #tpu.memory_space<vmem>>, vector<8x128xbf16>,
    %c2_160 = arith.constant 2 : index
    %c0_161 = arith.constant 0 : index
    %c0_162 = arith.constant 0 : index
    %213 = vector.load %arg14[%c2_160, %c0_161, %c0_162] : memref<8x8x128xbf16, #tpu.memory_space<vmem>>, vector<1x8x128xbf16>
    %214 = vector.shape_cast %213 : vector<1x8x128xbf16> to vector<8x128xbf16>
    %215 = vector.shape_cast %210 : vector<8x128xbf16> to vector<1x8x128xbf16>
    tpu.vector_store %arg14[%c2_160, %c0_161, %c0_162], %215 {strides = array<i32>} : memref<8x8x128xbf16, #tpu.memory_space<vmem>>, vector<1x8x128xbf16>,
    %c3_163 = arith.constant 3 : index
    %c0_164 = arith.constant 0 : index
    %c0_165 = arith.constant 0 : index
    %216 = vector.load %arg11[%c3_163, %c0_164, %c0_165] : memref<8x8x512xf32, #tpu.memory_space<vmem>>, vector<1x8x512xf32>
    %217 = vector.shape_cast %216 : vector<1x8x512xf32> to vector<8x512xf32>
    %c0_166 = arith.constant 0 : index
    %c0_167 = arith.constant 0 : index
    %218 = vector.load %arg12[%c0_166, %c0_167] : memref<8x128xbf16, #tpu.memory_space<vmem>>, vector<8x128xbf16>
    %c0_168 = arith.constant 0 : index
    %c0_169 = arith.constant 0 : index
    %219 = vector.load %arg3[%c0_168, %c0_169] : memref<128x512xbf16, #tpu.memory_space<vmem>>, vector<128x512xbf16>
    %cst_170 = arith.constant dense<0.000000e+00> : vector<8x512xf32>
    %220 = tpu.matmul %218, %219, %cst_170 {dimension_numbers = #tpu.dot_dimension_numbers<[1], [0], [0], [1], [0, 0, 1, 1], [], []>} : vector<8x128xbf16>, vector<128x512xbf16>, vector<8x512xf32> -> vector<8x512xf32>
    %221 = arith.addf %217, %220 : vector<8x512xf32>
    %222 = vector.extract_strided_slice %221 {offsets = [0, 0], sizes = [8, 128], strides = [1, 1]} : vector<8x512xf32> to vector<8x128xf32>
    %cst_171 = arith.constant 5.000000e-01 : f32
    %223 = vector.broadcast %cst_171 : f32 to vector<8x128xf32>
    %224 = arith.mulf %223, %222 : vector<8x128xf32>
    %225 = math.tanh %224 : vector<8x128xf32>
    %cst_172 = arith.constant 5.000000e-01 : f32
    %226 = vector.broadcast %cst_172 : f32 to vector<8x128xf32>
    %227 = arith.mulf %226, %225 : vector<8x128xf32>
    %cst_173 = arith.constant 5.000000e-01 : f32
    %228 = vector.broadcast %cst_173 : f32 to vector<8x128xf32>
    %229 = arith.addf %227, %228 : vector<8x128xf32>
    %230 = vector.extract_strided_slice %221 {offsets = [0, 128], sizes = [8, 128], strides = [1, 1]} : vector<8x512xf32> to vector<8x128xf32>
    %cst_174 = arith.constant 5.000000e-01 : f32
    %231 = vector.broadcast %cst_174 : f32 to vector<8x128xf32>
    %232 = arith.mulf %231, %230 : vector<8x128xf32>
    %233 = math.tanh %232 : vector<8x128xf32>
    %cst_175 = arith.constant 5.000000e-01 : f32
    %234 = vector.broadcast %cst_175 : f32 to vector<8x128xf32>
    %235 = arith.mulf %234, %233 : vector<8x128xf32>
    %cst_176 = arith.constant 5.000000e-01 : f32
    %236 = vector.broadcast %cst_176 : f32 to vector<8x128xf32>
    %237 = arith.addf %235, %236 : vector<8x128xf32>
    %238 = vector.extract_strided_slice %221 {offsets = [0, 256], sizes = [8, 128], strides = [1, 1]} : vector<8x512xf32> to vector<8x128xf32>
    %239 = math.tanh %238 : vector<8x128xf32>
    %240 = vector.extract_strided_slice %221 {offsets = [0, 384], sizes = [8, 128], strides = [1, 1]} : vector<8x512xf32> to vector<8x128xf32>
    %cst_177 = arith.constant 5.000000e-01 : f32
    %241 = vector.broadcast %cst_177 : f32 to vector<8x128xf32>
    %242 = arith.mulf %241, %240 : vector<8x128xf32>
    %243 = math.tanh %242 : vector<8x128xf32>
    %cst_178 = arith.constant 5.000000e-01 : f32
    %244 = vector.broadcast %cst_178 : f32 to vector<8x128xf32>
    %245 = arith.mulf %244, %243 : vector<8x128xf32>
    %cst_179 = arith.constant 5.000000e-01 : f32
    %246 = vector.broadcast %cst_179 : f32 to vector<8x128xf32>
    %247 = arith.addf %245, %246 : vector<8x128xf32>
    %c0_180 = arith.constant 0 : index
    %c0_181 = arith.constant 0 : index
    %248 = vector.load %arg13[%c0_180, %c0_181] : memref<8x128xf32, #tpu.memory_space<vmem>>, vector<8x128xf32>
    %249 = arith.mulf %237, %248 : vector<8x128xf32>
    %250 = arith.mulf %229, %239 : vector<8x128xf32>
    %251 = arith.addf %249, %250 : vector<8x128xf32>
    %252 = math.tanh %251 : vector<8x128xf32>
    %253 = arith.mulf %247, %252 : vector<8x128xf32>
    %254 = arith.truncf %253 : vector<8x128xf32> to vector<8x128xbf16>
    %c0_182 = arith.constant 0 : index
    %c0_183 = arith.constant 0 : index
    %255 = vector.load %arg13[%c0_182, %c0_183] : memref<8x128xf32, #tpu.memory_space<vmem>>, vector<8x128xf32>
    tpu.vector_store %arg13[%c0_182, %c0_183], %251 {strides = array<i32>} : memref<8x128xf32, #tpu.memory_space<vmem>>, vector<8x128xf32>,
    %c0_184 = arith.constant 0 : index
    %c0_185 = arith.constant 0 : index
    %256 = vector.load %arg12[%c0_184, %c0_185] : memref<8x128xbf16, #tpu.memory_space<vmem>>, vector<8x128xbf16>
    tpu.vector_store %arg12[%c0_184, %c0_185], %254 {strides = array<i32>} : memref<8x128xbf16, #tpu.memory_space<vmem>>, vector<8x128xbf16>,
    %c3_186 = arith.constant 3 : index
    %c0_187 = arith.constant 0 : index
    %c0_188 = arith.constant 0 : index
    %257 = vector.load %arg14[%c3_186, %c0_187, %c0_188] : memref<8x8x128xbf16, #tpu.memory_space<vmem>>, vector<1x8x128xbf16>
    %258 = vector.shape_cast %257 : vector<1x8x128xbf16> to vector<8x128xbf16>
    %259 = vector.shape_cast %254 : vector<8x128xbf16> to vector<1x8x128xbf16>
    tpu.vector_store %arg14[%c3_186, %c0_187, %c0_188], %259 {strides = array<i32>} : memref<8x8x128xbf16, #tpu.memory_space<vmem>>, vector<1x8x128xbf16>,
    %c4_189 = arith.constant 4 : index
    %c0_190 = arith.constant 0 : index
    %c0_191 = arith.constant 0 : index
    %260 = vector.load %arg11[%c4_189, %c0_190, %c0_191] : memref<8x8x512xf32, #tpu.memory_space<vmem>>, vector<1x8x512xf32>
    %261 = vector.shape_cast %260 : vector<1x8x512xf32> to vector<8x512xf32>
    %c0_192 = arith.constant 0 : index
    %c0_193 = arith.constant 0 : index
    %262 = vector.load %arg12[%c0_192, %c0_193] : memref<8x128xbf16, #tpu.memory_space<vmem>>, vector<8x128xbf16>
    %c0_194 = arith.constant 0 : index
    %c0_195 = arith.constant 0 : index
    %263 = vector.load %arg3[%c0_194, %c0_195] : memref<128x512xbf16, #tpu.memory_space<vmem>>, vector<128x512xbf16>
    %cst_196 = arith.constant dense<0.000000e+00> : vector<8x512xf32>
    %264 = tpu.matmul %262, %263, %cst_196 {dimension_numbers = #tpu.dot_dimension_numbers<[1], [0], [0], [1], [0, 0, 1, 1], [], []>} : vector<8x128xbf16>, vector<128x512xbf16>, vector<8x512xf32> -> vector<8x512xf32>
    %265 = arith.addf %261, %264 : vector<8x512xf32>
    %266 = vector.extract_strided_slice %265 {offsets = [0, 0], sizes = [8, 128], strides = [1, 1]} : vector<8x512xf32> to vector<8x128xf32>
    %cst_197 = arith.constant 5.000000e-01 : f32
    %267 = vector.broadcast %cst_197 : f32 to vector<8x128xf32>
    %268 = arith.mulf %267, %266 : vector<8x128xf32>
    %269 = math.tanh %268 : vector<8x128xf32>
    %cst_198 = arith.constant 5.000000e-01 : f32
    %270 = vector.broadcast %cst_198 : f32 to vector<8x128xf32>
    %271 = arith.mulf %270, %269 : vector<8x128xf32>
    %cst_199 = arith.constant 5.000000e-01 : f32
    %272 = vector.broadcast %cst_199 : f32 to vector<8x128xf32>
    %273 = arith.addf %271, %272 : vector<8x128xf32>
    %274 = vector.extract_strided_slice %265 {offsets = [0, 128], sizes = [8, 128], strides = [1, 1]} : vector<8x512xf32> to vector<8x128xf32>
    %cst_200 = arith.constant 5.000000e-01 : f32
    %275 = vector.broadcast %cst_200 : f32 to vector<8x128xf32>
    %276 = arith.mulf %275, %274 : vector<8x128xf32>
    %277 = math.tanh %276 : vector<8x128xf32>
    %cst_201 = arith.constant 5.000000e-01 : f32
    %278 = vector.broadcast %cst_201 : f32 to vector<8x128xf32>
    %279 = arith.mulf %278, %277 : vector<8x128xf32>
    %cst_202 = arith.constant 5.000000e-01 : f32
    %280 = vector.broadcast %cst_202 : f32 to vector<8x128xf32>
    %281 = arith.addf %279, %280 : vector<8x128xf32>
    %282 = vector.extract_strided_slice %265 {offsets = [0, 256], sizes = [8, 128], strides = [1, 1]} : vector<8x512xf32> to vector<8x128xf32>
    %283 = math.tanh %282 : vector<8x128xf32>
    %284 = vector.extract_strided_slice %265 {offsets = [0, 384], sizes = [8, 128], strides = [1, 1]} : vector<8x512xf32> to vector<8x128xf32>
    %cst_203 = arith.constant 5.000000e-01 : f32
    %285 = vector.broadcast %cst_203 : f32 to vector<8x128xf32>
    %286 = arith.mulf %285, %284 : vector<8x128xf32>
    %287 = math.tanh %286 : vector<8x128xf32>
    %cst_204 = arith.constant 5.000000e-01 : f32
    %288 = vector.broadcast %cst_204 : f32 to vector<8x128xf32>
    %289 = arith.mulf %288, %287 : vector<8x128xf32>
    %cst_205 = arith.constant 5.000000e-01 : f32
    %290 = vector.broadcast %cst_205 : f32 to vector<8x128xf32>
    %291 = arith.addf %289, %290 : vector<8x128xf32>
    %c0_206 = arith.constant 0 : index
    %c0_207 = arith.constant 0 : index
    %292 = vector.load %arg13[%c0_206, %c0_207] : memref<8x128xf32, #tpu.memory_space<vmem>>, vector<8x128xf32>
    %293 = arith.mulf %281, %292 : vector<8x128xf32>
    %294 = arith.mulf %273, %283 : vector<8x128xf32>
    %295 = arith.addf %293, %294 : vector<8x128xf32>
    %296 = math.tanh %295 : vector<8x128xf32>
    %297 = arith.mulf %291, %296 : vector<8x128xf32>
    %298 = arith.truncf %297 : vector<8x128xf32> to vector<8x128xbf16>
    %c0_208 = arith.constant 0 : index
    %c0_209 = arith.constant 0 : index
    %299 = vector.load %arg13[%c0_208, %c0_209] : memref<8x128xf32, #tpu.memory_space<vmem>>, vector<8x128xf32>
    tpu.vector_store %arg13[%c0_208, %c0_209], %295 {strides = array<i32>} : memref<8x128xf32, #tpu.memory_space<vmem>>, vector<8x128xf32>,
    %c0_210 = arith.constant 0 : index
    %c0_211 = arith.constant 0 : index
    %300 = vector.load %arg12[%c0_210, %c0_211] : memref<8x128xbf16, #tpu.memory_space<vmem>>, vector<8x128xbf16>
    tpu.vector_store %arg12[%c0_210, %c0_211], %298 {strides = array<i32>} : memref<8x128xbf16, #tpu.memory_space<vmem>>, vector<8x128xbf16>,
    %c4_212 = arith.constant 4 : index
    %c0_213 = arith.constant 0 : index
    %c0_214 = arith.constant 0 : index
    %301 = vector.load %arg14[%c4_212, %c0_213, %c0_214] : memref<8x8x128xbf16, #tpu.memory_space<vmem>>, vector<1x8x128xbf16>
    %302 = vector.shape_cast %301 : vector<1x8x128xbf16> to vector<8x128xbf16>
    %303 = vector.shape_cast %298 : vector<8x128xbf16> to vector<1x8x128xbf16>
    tpu.vector_store %arg14[%c4_212, %c0_213, %c0_214], %303 {strides = array<i32>} : memref<8x8x128xbf16, #tpu.memory_space<vmem>>, vector<1x8x128xbf16>,
    %c5_215 = arith.constant 5 : index
    %c0_216 = arith.constant 0 : index
    %c0_217 = arith.constant 0 : index
    %304 = vector.load %arg11[%c5_215, %c0_216, %c0_217] : memref<8x8x512xf32, #tpu.memory_space<vmem>>, vector<1x8x512xf32>
    %305 = vector.shape_cast %304 : vector<1x8x512xf32> to vector<8x512xf32>
    %c0_218 = arith.constant 0 : index
    %c0_219 = arith.constant 0 : index
    %306 = vector.load %arg12[%c0_218, %c0_219] : memref<8x128xbf16, #tpu.memory_space<vmem>>, vector<8x128xbf16>
    %c0_220 = arith.constant 0 : index
    %c0_221 = arith.constant 0 : index
    %307 = vector.load %arg3[%c0_220, %c0_221] : memref<128x512xbf16, #tpu.memory_space<vmem>>, vector<128x512xbf16>
    %cst_222 = arith.constant dense<0.000000e+00> : vector<8x512xf32>
    %308 = tpu.matmul %306, %307, %cst_222 {dimension_numbers = #tpu.dot_dimension_numbers<[1], [0], [0], [1], [0, 0, 1, 1], [], []>} : vector<8x128xbf16>, vector<128x512xbf16>, vector<8x512xf32> -> vector<8x512xf32>
    %309 = arith.addf %305, %308 : vector<8x512xf32>
    %310 = vector.extract_strided_slice %309 {offsets = [0, 0], sizes = [8, 128], strides = [1, 1]} : vector<8x512xf32> to vector<8x128xf32>
    %cst_223 = arith.constant 5.000000e-01 : f32
    %311 = vector.broadcast %cst_223 : f32 to vector<8x128xf32>
    %312 = arith.mulf %311, %310 : vector<8x128xf32>
    %313 = math.tanh %312 : vector<8x128xf32>
    %cst_224 = arith.constant 5.000000e-01 : f32
    %314 = vector.broadcast %cst_224 : f32 to vector<8x128xf32>
    %315 = arith.mulf %314, %313 : vector<8x128xf32>
    %cst_225 = arith.constant 5.000000e-01 : f32
    %316 = vector.broadcast %cst_225 : f32 to vector<8x128xf32>
    %317 = arith.addf %315, %316 : vector<8x128xf32>
    %318 = vector.extract_strided_slice %309 {offsets = [0, 128], sizes = [8, 128], strides = [1, 1]} : vector<8x512xf32> to vector<8x128xf32>
    %cst_226 = arith.constant 5.000000e-01 : f32
    %319 = vector.broadcast %cst_226 : f32 to vector<8x128xf32>
    %320 = arith.mulf %319, %318 : vector<8x128xf32>
    %321 = math.tanh %320 : vector<8x128xf32>
    %cst_227 = arith.constant 5.000000e-01 : f32
    %322 = vector.broadcast %cst_227 : f32 to vector<8x128xf32>
    %323 = arith.mulf %322, %321 : vector<8x128xf32>
    %cst_228 = arith.constant 5.000000e-01 : f32
    %324 = vector.broadcast %cst_228 : f32 to vector<8x128xf32>
    %325 = arith.addf %323, %324 : vector<8x128xf32>
    %326 = vector.extract_strided_slice %309 {offsets = [0, 256], sizes = [8, 128], strides = [1, 1]} : vector<8x512xf32> to vector<8x128xf32>
    %327 = math.tanh %326 : vector<8x128xf32>
    %328 = vector.extract_strided_slice %309 {offsets = [0, 384], sizes = [8, 128], strides = [1, 1]} : vector<8x512xf32> to vector<8x128xf32>
    %cst_229 = arith.constant 5.000000e-01 : f32
    %329 = vector.broadcast %cst_229 : f32 to vector<8x128xf32>
    %330 = arith.mulf %329, %328 : vector<8x128xf32>
    %331 = math.tanh %330 : vector<8x128xf32>
    %cst_230 = arith.constant 5.000000e-01 : f32
    %332 = vector.broadcast %cst_230 : f32 to vector<8x128xf32>
    %333 = arith.mulf %332, %331 : vector<8x128xf32>
    %cst_231 = arith.constant 5.000000e-01 : f32
    %334 = vector.broadcast %cst_231 : f32 to vector<8x128xf32>
    %335 = arith.addf %333, %334 : vector<8x128xf32>
    %c0_232 = arith.constant 0 : index
    %c0_233 = arith.constant 0 : index
    %336 = vector.load %arg13[%c0_232, %c0_233] : memref<8x128xf32, #tpu.memory_space<vmem>>, vector<8x128xf32>
    %337 = arith.mulf %325, %336 : vector<8x128xf32>
    %338 = arith.mulf %317, %327 : vector<8x128xf32>
    %339 = arith.addf %337, %338 : vector<8x128xf32>
    %340 = math.tanh %339 : vector<8x128xf32>
    %341 = arith.mulf %335, %340 : vector<8x128xf32>
    %342 = arith.truncf %341 : vector<8x128xf32> to vector<8x128xbf16>
    %c0_234 = arith.constant 0 : index
    %c0_235 = arith.constant 0 : index
    %343 = vector.load %arg13[%c0_234, %c0_235] : memref<8x128xf32, #tpu.memory_space<vmem>>, vector<8x128xf32>
    tpu.vector_store %arg13[%c0_234, %c0_235], %339 {strides = array<i32>} : memref<8x128xf32, #tpu.memory_space<vmem>>, vector<8x128xf32>,
    %c0_236 = arith.constant 0 : index
    %c0_237 = arith.constant 0 : index
    %344 = vector.load %arg12[%c0_236, %c0_237] : memref<8x128xbf16, #tpu.memory_space<vmem>>, vector<8x128xbf16>
    tpu.vector_store %arg12[%c0_236, %c0_237], %342 {strides = array<i32>} : memref<8x128xbf16, #tpu.memory_space<vmem>>, vector<8x128xbf16>,
    %c5_238 = arith.constant 5 : index
    %c0_239 = arith.constant 0 : index
    %c0_240 = arith.constant 0 : index
    %345 = vector.load %arg14[%c5_238, %c0_239, %c0_240] : memref<8x8x128xbf16, #tpu.memory_space<vmem>>, vector<1x8x128xbf16>
    %346 = vector.shape_cast %345 : vector<1x8x128xbf16> to vector<8x128xbf16>
    %347 = vector.shape_cast %342 : vector<8x128xbf16> to vector<1x8x128xbf16>
    tpu.vector_store %arg14[%c5_238, %c0_239, %c0_240], %347 {strides = array<i32>} : memref<8x8x128xbf16, #tpu.memory_space<vmem>>, vector<1x8x128xbf16>,
    %c6_241 = arith.constant 6 : index
    %c0_242 = arith.constant 0 : index
    %c0_243 = arith.constant 0 : index
    %348 = vector.load %arg11[%c6_241, %c0_242, %c0_243] : memref<8x8x512xf32, #tpu.memory_space<vmem>>, vector<1x8x512xf32>
    %349 = vector.shape_cast %348 : vector<1x8x512xf32> to vector<8x512xf32>
    %c0_244 = arith.constant 0 : index
    %c0_245 = arith.constant 0 : index
    %350 = vector.load %arg12[%c0_244, %c0_245] : memref<8x128xbf16, #tpu.memory_space<vmem>>, vector<8x128xbf16>
    %c0_246 = arith.constant 0 : index
    %c0_247 = arith.constant 0 : index
    %351 = vector.load %arg3[%c0_246, %c0_247] : memref<128x512xbf16, #tpu.memory_space<vmem>>, vector<128x512xbf16>
    %cst_248 = arith.constant dense<0.000000e+00> : vector<8x512xf32>
    %352 = tpu.matmul %350, %351, %cst_248 {dimension_numbers = #tpu.dot_dimension_numbers<[1], [0], [0], [1], [0, 0, 1, 1], [], []>} : vector<8x128xbf16>, vector<128x512xbf16>, vector<8x512xf32> -> vector<8x512xf32>
    %353 = arith.addf %349, %352 : vector<8x512xf32>
    %354 = vector.extract_strided_slice %353 {offsets = [0, 0], sizes = [8, 128], strides = [1, 1]} : vector<8x512xf32> to vector<8x128xf32>
    %cst_249 = arith.constant 5.000000e-01 : f32
    %355 = vector.broadcast %cst_249 : f32 to vector<8x128xf32>
    %356 = arith.mulf %355, %354 : vector<8x128xf32>
    %357 = math.tanh %356 : vector<8x128xf32>
    %cst_250 = arith.constant 5.000000e-01 : f32
    %358 = vector.broadcast %cst_250 : f32 to vector<8x128xf32>
    %359 = arith.mulf %358, %357 : vector<8x128xf32>
    %cst_251 = arith.constant 5.000000e-01 : f32
    %360 = vector.broadcast %cst_251 : f32 to vector<8x128xf32>
    %361 = arith.addf %359, %360 : vector<8x128xf32>
    %362 = vector.extract_strided_slice %353 {offsets = [0, 128], sizes = [8, 128], strides = [1, 1]} : vector<8x512xf32> to vector<8x128xf32>
    %cst_252 = arith.constant 5.000000e-01 : f32
    %363 = vector.broadcast %cst_252 : f32 to vector<8x128xf32>
    %364 = arith.mulf %363, %362 : vector<8x128xf32>
    %365 = math.tanh %364 : vector<8x128xf32>
    %cst_253 = arith.constant 5.000000e-01 : f32
    %366 = vector.broadcast %cst_253 : f32 to vector<8x128xf32>
    %367 = arith.mulf %366, %365 : vector<8x128xf32>
    %cst_254 = arith.constant 5.000000e-01 : f32
    %368 = vector.broadcast %cst_254 : f32 to vector<8x128xf32>
    %369 = arith.addf %367, %368 : vector<8x128xf32>
    %370 = vector.extract_strided_slice %353 {offsets = [0, 256], sizes = [8, 128], strides = [1, 1]} : vector<8x512xf32> to vector<8x128xf32>
    %371 = math.tanh %370 : vector<8x128xf32>
    %372 = vector.extract_strided_slice %353 {offsets = [0, 384], sizes = [8, 128], strides = [1, 1]} : vector<8x512xf32> to vector<8x128xf32>
    %cst_255 = arith.constant 5.000000e-01 : f32
    %373 = vector.broadcast %cst_255 : f32 to vector<8x128xf32>
    %374 = arith.mulf %373, %372 : vector<8x128xf32>
    %375 = math.tanh %374 : vector<8x128xf32>
    %cst_256 = arith.constant 5.000000e-01 : f32
    %376 = vector.broadcast %cst_256 : f32 to vector<8x128xf32>
    %377 = arith.mulf %376, %375 : vector<8x128xf32>
    %cst_257 = arith.constant 5.000000e-01 : f32
    %378 = vector.broadcast %cst_257 : f32 to vector<8x128xf32>
    %379 = arith.addf %377, %378 : vector<8x128xf32>
    %c0_258 = arith.constant 0 : index
    %c0_259 = arith.constant 0 : index
    %380 = vector.load %arg13[%c0_258, %c0_259] : memref<8x128xf32, #tpu.memory_space<vmem>>, vector<8x128xf32>
    %381 = arith.mulf %369, %380 : vector<8x128xf32>
    %382 = arith.mulf %361, %371 : vector<8x128xf32>
    %383 = arith.addf %381, %382 : vector<8x128xf32>
    %384 = math.tanh %383 : vector<8x128xf32>
    %385 = arith.mulf %379, %384 : vector<8x128xf32>
    %386 = arith.truncf %385 : vector<8x128xf32> to vector<8x128xbf16>
    %c0_260 = arith.constant 0 : index
    %c0_261 = arith.constant 0 : index
    %387 = vector.load %arg13[%c0_260, %c0_261] : memref<8x128xf32, #tpu.memory_space<vmem>>, vector<8x128xf32>
    tpu.vector_store %arg13[%c0_260, %c0_261], %383 {strides = array<i32>} : memref<8x128xf32, #tpu.memory_space<vmem>>, vector<8x128xf32>,
    %c0_262 = arith.constant 0 : index
    %c0_263 = arith.constant 0 : index
    %388 = vector.load %arg12[%c0_262, %c0_263] : memref<8x128xbf16, #tpu.memory_space<vmem>>, vector<8x128xbf16>
    tpu.vector_store %arg12[%c0_262, %c0_263], %386 {strides = array<i32>} : memref<8x128xbf16, #tpu.memory_space<vmem>>, vector<8x128xbf16>,
    %c6_264 = arith.constant 6 : index
    %c0_265 = arith.constant 0 : index
    %c0_266 = arith.constant 0 : index
    %389 = vector.load %arg14[%c6_264, %c0_265, %c0_266] : memref<8x8x128xbf16, #tpu.memory_space<vmem>>, vector<1x8x128xbf16>
    %390 = vector.shape_cast %389 : vector<1x8x128xbf16> to vector<8x128xbf16>
    %391 = vector.shape_cast %386 : vector<8x128xbf16> to vector<1x8x128xbf16>
    tpu.vector_store %arg14[%c6_264, %c0_265, %c0_266], %391 {strides = array<i32>} : memref<8x8x128xbf16, #tpu.memory_space<vmem>>, vector<1x8x128xbf16>,
    %c7_267 = arith.constant 7 : index
    %c0_268 = arith.constant 0 : index
    %c0_269 = arith.constant 0 : index
    %392 = vector.load %arg11[%c7_267, %c0_268, %c0_269] : memref<8x8x512xf32, #tpu.memory_space<vmem>>, vector<1x8x512xf32>
    %393 = vector.shape_cast %392 : vector<1x8x512xf32> to vector<8x512xf32>
    %c0_270 = arith.constant 0 : index
    %c0_271 = arith.constant 0 : index
    %394 = vector.load %arg12[%c0_270, %c0_271] : memref<8x128xbf16, #tpu.memory_space<vmem>>, vector<8x128xbf16>
    %c0_272 = arith.constant 0 : index
    %c0_273 = arith.constant 0 : index
    %395 = vector.load %arg3[%c0_272, %c0_273] : memref<128x512xbf16, #tpu.memory_space<vmem>>, vector<128x512xbf16>
    %cst_274 = arith.constant dense<0.000000e+00> : vector<8x512xf32>
    %396 = tpu.matmul %394, %395, %cst_274 {dimension_numbers = #tpu.dot_dimension_numbers<[1], [0], [0], [1], [0, 0, 1, 1], [], []>} : vector<8x128xbf16>, vector<128x512xbf16>, vector<8x512xf32> -> vector<8x512xf32>
    %397 = arith.addf %393, %396 : vector<8x512xf32>
    %398 = vector.extract_strided_slice %397 {offsets = [0, 0], sizes = [8, 128], strides = [1, 1]} : vector<8x512xf32> to vector<8x128xf32>
    %cst_275 = arith.constant 5.000000e-01 : f32
    %399 = vector.broadcast %cst_275 : f32 to vector<8x128xf32>
    %400 = arith.mulf %399, %398 : vector<8x128xf32>
    %401 = math.tanh %400 : vector<8x128xf32>
    %cst_276 = arith.constant 5.000000e-01 : f32
    %402 = vector.broadcast %cst_276 : f32 to vector<8x128xf32>
    %403 = arith.mulf %402, %401 : vector<8x128xf32>
    %cst_277 = arith.constant 5.000000e-01 : f32
    %404 = vector.broadcast %cst_277 : f32 to vector<8x128xf32>
    %405 = arith.addf %403, %404 : vector<8x128xf32>
    %406 = vector.extract_strided_slice %397 {offsets = [0, 128], sizes = [8, 128], strides = [1, 1]} : vector<8x512xf32> to vector<8x128xf32>
    %cst_278 = arith.constant 5.000000e-01 : f32
    %407 = vector.broadcast %cst_278 : f32 to vector<8x128xf32>
    %408 = arith.mulf %407, %406 : vector<8x128xf32>
    %409 = math.tanh %408 : vector<8x128xf32>
    %cst_279 = arith.constant 5.000000e-01 : f32
    %410 = vector.broadcast %cst_279 : f32 to vector<8x128xf32>
    %411 = arith.mulf %410, %409 : vector<8x128xf32>
    %cst_280 = arith.constant 5.000000e-01 : f32
    %412 = vector.broadcast %cst_280 : f32 to vector<8x128xf32>
    %413 = arith.addf %411, %412 : vector<8x128xf32>
    %414 = vector.extract_strided_slice %397 {offsets = [0, 256], sizes = [8, 128], strides = [1, 1]} : vector<8x512xf32> to vector<8x128xf32>
    %415 = math.tanh %414 : vector<8x128xf32>
    %416 = vector.extract_strided_slice %397 {offsets = [0, 384], sizes = [8, 128], strides = [1, 1]} : vector<8x512xf32> to vector<8x128xf32>
    %cst_281 = arith.constant 5.000000e-01 : f32
    %417 = vector.broadcast %cst_281 : f32 to vector<8x128xf32>
    %418 = arith.mulf %417, %416 : vector<8x128xf32>
    %419 = math.tanh %418 : vector<8x128xf32>
    %cst_282 = arith.constant 5.000000e-01 : f32
    %420 = vector.broadcast %cst_282 : f32 to vector<8x128xf32>
    %421 = arith.mulf %420, %419 : vector<8x128xf32>
    %cst_283 = arith.constant 5.000000e-01 : f32
    %422 = vector.broadcast %cst_283 : f32 to vector<8x128xf32>
    %423 = arith.addf %421, %422 : vector<8x128xf32>
    %c0_284 = arith.constant 0 : index
    %c0_285 = arith.constant 0 : index
    %424 = vector.load %arg13[%c0_284, %c0_285] : memref<8x128xf32, #tpu.memory_space<vmem>>, vector<8x128xf32>
    %425 = arith.mulf %413, %424 : vector<8x128xf32>
    %426 = arith.mulf %405, %415 : vector<8x128xf32>
    %427 = arith.addf %425, %426 : vector<8x128xf32>
    %428 = math.tanh %427 : vector<8x128xf32>
    %429 = arith.mulf %423, %428 : vector<8x128xf32>
    %430 = arith.truncf %429 : vector<8x128xf32> to vector<8x128xbf16>
    %c0_286 = arith.constant 0 : index
    %c0_287 = arith.constant 0 : index
    %431 = vector.load %arg13[%c0_286, %c0_287] : memref<8x128xf32, #tpu.memory_space<vmem>>, vector<8x128xf32>
    tpu.vector_store %arg13[%c0_286, %c0_287], %427 {strides = array<i32>} : memref<8x128xf32, #tpu.memory_space<vmem>>, vector<8x128xf32>,
    %c0_288 = arith.constant 0 : index
    %c0_289 = arith.constant 0 : index
    %432 = vector.load %arg12[%c0_288, %c0_289] : memref<8x128xbf16, #tpu.memory_space<vmem>>, vector<8x128xbf16>
    tpu.vector_store %arg12[%c0_288, %c0_289], %430 {strides = array<i32>} : memref<8x128xbf16, #tpu.memory_space<vmem>>, vector<8x128xbf16>,
    %c7_290 = arith.constant 7 : index
    %c0_291 = arith.constant 0 : index
    %c0_292 = arith.constant 0 : index
    %433 = vector.load %arg14[%c7_290, %c0_291, %c0_292] : memref<8x8x128xbf16, #tpu.memory_space<vmem>>, vector<1x8x128xbf16>
    %434 = vector.shape_cast %433 : vector<1x8x128xbf16> to vector<8x128xbf16>
    %435 = vector.shape_cast %430 : vector<8x128xbf16> to vector<1x8x128xbf16>
    tpu.vector_store %arg14[%c7_290, %c0_291, %c0_292], %435 {strides = array<i32>} : memref<8x8x128xbf16, #tpu.memory_space<vmem>>, vector<1x8x128xbf16>,
    %c0_293 = arith.constant 0 : index
    %c0_294 = arith.constant 0 : index
    %c0_295 = arith.constant 0 : index
    %436 = vector.load %arg14[%c0_293, %c0_294, %c0_295] : memref<8x8x128xbf16, #tpu.memory_space<vmem>>, vector<1x8x128xbf16>
    %437 = vector.shape_cast %436 : vector<1x8x128xbf16> to vector<8x128xbf16>
    %c0_296 = arith.constant 0 : index
    %c0_297 = arith.constant 0 : index
    %438 = vector.load %arg5[%c0_296, %c0_297] : memref<128x512xbf16, #tpu.memory_space<vmem>>, vector<128x512xbf16>
    %cst_298 = arith.constant dense<0.000000e+00> : vector<8x512xf32>
    %439 = tpu.matmul %437, %438, %cst_298 {dimension_numbers = #tpu.dot_dimension_numbers<[1], [0], [0], [1], [0, 0, 1, 1], [], []>} : vector<8x128xbf16>, vector<128x512xbf16>, vector<8x512xf32> -> vector<8x512xf32>
    %c0_299 = arith.constant 0 : index
    %c0_300 = arith.constant 0 : index
    %440 = vector.load %arg7[%c0_299, %c0_300] : memref<1x512xf32, #tpu.memory_space<vmem>>, vector<1x512xf32>
    %441 = vector.broadcast %440 : vector<1x512xf32> to vector<8x512xf32>
    %442 = arith.addf %439, %441 : vector<8x512xf32>
    %c0_301 = arith.constant 0 : index
    %c0_302 = arith.constant 0 : index
    %c0_303 = arith.constant 0 : index
    %443 = vector.load %arg11[%c0_301, %c0_302, %c0_303] : memref<8x8x512xf32, #tpu.memory_space<vmem>>, vector<1x8x512xf32>
    %444 = vector.shape_cast %443 : vector<1x8x512xf32> to vector<8x512xf32>
    %445 = vector.shape_cast %442 : vector<8x512xf32> to vector<1x8x512xf32>
    tpu.vector_store %arg11[%c0_301, %c0_302, %c0_303], %445 {strides = array<i32>} : memref<8x8x512xf32, #tpu.memory_space<vmem>>, vector<1x8x512xf32>,
    %c1_304 = arith.constant 1 : index
    %c0_305 = arith.constant 0 : index
    %c0_306 = arith.constant 0 : index
    %446 = vector.load %arg14[%c1_304, %c0_305, %c0_306] : memref<8x8x128xbf16, #tpu.memory_space<vmem>>, vector<1x8x128xbf16>
    %447 = vector.shape_cast %446 : vector<1x8x128xbf16> to vector<8x128xbf16>
    %c0_307 = arith.constant 0 : index
    %c0_308 = arith.constant 0 : index
    %448 = vector.load %arg5[%c0_307, %c0_308] : memref<128x512xbf16, #tpu.memory_space<vmem>>, vector<128x512xbf16>
    %cst_309 = arith.constant dense<0.000000e+00> : vector<8x512xf32>
    %449 = tpu.matmul %447, %448, %cst_309 {dimension_numbers = #tpu.dot_dimension_numbers<[1], [0], [0], [1], [0, 0, 1, 1], [], []>} : vector<8x128xbf16>, vector<128x512xbf16>, vector<8x512xf32> -> vector<8x512xf32>
    %c0_310 = arith.constant 0 : index
    %c0_311 = arith.constant 0 : index
    %450 = vector.load %arg7[%c0_310, %c0_311] : memref<1x512xf32, #tpu.memory_space<vmem>>, vector<1x512xf32>
    %451 = vector.broadcast %450 : vector<1x512xf32> to vector<8x512xf32>
    %452 = arith.addf %449, %451 : vector<8x512xf32>
    %c1_312 = arith.constant 1 : index
    %c0_313 = arith.constant 0 : index
    %c0_314 = arith.constant 0 : index
    %453 = vector.load %arg11[%c1_312, %c0_313, %c0_314] : memref<8x8x512xf32, #tpu.memory_space<vmem>>, vector<1x8x512xf32>
    %454 = vector.shape_cast %453 : vector<1x8x512xf32> to vector<8x512xf32>
    %455 = vector.shape_cast %452 : vector<8x512xf32> to vector<1x8x512xf32>
    tpu.vector_store %arg11[%c1_312, %c0_313, %c0_314], %455 {strides = array<i32>} : memref<8x8x512xf32, #tpu.memory_space<vmem>>, vector<1x8x512xf32>,
    %c2_315 = arith.constant 2 : index
    %c0_316 = arith.constant 0 : index
    %c0_317 = arith.constant 0 : index
    %456 = vector.load %arg14[%c2_315, %c0_316, %c0_317] : memref<8x8x128xbf16, #tpu.memory_space<vmem>>, vector<1x8x128xbf16>
    %457 = vector.shape_cast %456 : vector<1x8x128xbf16> to vector<8x128xbf16>
    %c0_318 = arith.constant 0 : index
    %c0_319 = arith.constant 0 : index
    %458 = vector.load %arg5[%c0_318, %c0_319] : memref<128x512xbf16, #tpu.memory_space<vmem>>, vector<128x512xbf16>
    %cst_320 = arith.constant dense<0.000000e+00> : vector<8x512xf32>
    %459 = tpu.matmul %457, %458, %cst_320 {dimension_numbers = #tpu.dot_dimension_numbers<[1], [0], [0], [1], [0, 0, 1, 1], [], []>} : vector<8x128xbf16>, vector<128x512xbf16>, vector<8x512xf32> -> vector<8x512xf32>
    %c0_321 = arith.constant 0 : index
    %c0_322 = arith.constant 0 : index
    %460 = vector.load %arg7[%c0_321, %c0_322] : memref<1x512xf32, #tpu.memory_space<vmem>>, vector<1x512xf32>
    %461 = vector.broadcast %460 : vector<1x512xf32> to vector<8x512xf32>
    %462 = arith.addf %459, %461 : vector<8x512xf32>
    %c2_323 = arith.constant 2 : index
    %c0_324 = arith.constant 0 : index
    %c0_325 = arith.constant 0 : index
    %463 = vector.load %arg11[%c2_323, %c0_324, %c0_325] : memref<8x8x512xf32, #tpu.memory_space<vmem>>, vector<1x8x512xf32>
    %464 = vector.shape_cast %463 : vector<1x8x512xf32> to vector<8x512xf32>
    %465 = vector.shape_cast %462 : vector<8x512xf32> to vector<1x8x512xf32>
    tpu.vector_store %arg11[%c2_323, %c0_324, %c0_325], %465 {strides = array<i32>} : memref<8x8x512xf32, #tpu.memory_space<vmem>>, vector<1x8x512xf32>,
    %c3_326 = arith.constant 3 : index
    %c0_327 = arith.constant 0 : index
    %c0_328 = arith.constant 0 : index
    %466 = vector.load %arg14[%c3_326, %c0_327, %c0_328] : memref<8x8x128xbf16, #tpu.memory_space<vmem>>, vector<1x8x128xbf16>
    %467 = vector.shape_cast %466 : vector<1x8x128xbf16> to vector<8x128xbf16>
    %c0_329 = arith.constant 0 : index
    %c0_330 = arith.constant 0 : index
    %468 = vector.load %arg5[%c0_329, %c0_330] : memref<128x512xbf16, #tpu.memory_space<vmem>>, vector<128x512xbf16>
    %cst_331 = arith.constant dense<0.000000e+00> : vector<8x512xf32>
    %469 = tpu.matmul %467, %468, %cst_331 {dimension_numbers = #tpu.dot_dimension_numbers<[1], [0], [0], [1], [0, 0, 1, 1], [], []>} : vector<8x128xbf16>, vector<128x512xbf16>, vector<8x512xf32> -> vector<8x512xf32>
    %c0_332 = arith.constant 0 : index
    %c0_333 = arith.constant 0 : index
    %470 = vector.load %arg7[%c0_332, %c0_333] : memref<1x512xf32, #tpu.memory_space<vmem>>, vector<1x512xf32>
    %471 = vector.broadcast %470 : vector<1x512xf32> to vector<8x512xf32>
    %472 = arith.addf %469, %471 : vector<8x512xf32>
    %c3_334 = arith.constant 3 : index
    %c0_335 = arith.constant 0 : index
    %c0_336 = arith.constant 0 : index
    %473 = vector.load %arg11[%c3_334, %c0_335, %c0_336] : memref<8x8x512xf32, #tpu.memory_space<vmem>>, vector<1x8x512xf32>
    %474 = vector.shape_cast %473 : vector<1x8x512xf32> to vector<8x512xf32>
    %475 = vector.shape_cast %472 : vector<8x512xf32> to vector<1x8x512xf32>
    tpu.vector_store %arg11[%c3_334, %c0_335, %c0_336], %475 {strides = array<i32>} : memref<8x8x512xf32, #tpu.memory_space<vmem>>, vector<1x8x512xf32>,
    %c4_337 = arith.constant 4 : index
    %c0_338 = arith.constant 0 : index
    %c0_339 = arith.constant 0 : index
    %476 = vector.load %arg14[%c4_337, %c0_338, %c0_339] : memref<8x8x128xbf16, #tpu.memory_space<vmem>>, vector<1x8x128xbf16>
    %477 = vector.shape_cast %476 : vector<1x8x128xbf16> to vector<8x128xbf16>
    %c0_340 = arith.constant 0 : index
    %c0_341 = arith.constant 0 : index
    %478 = vector.load %arg5[%c0_340, %c0_341] : memref<128x512xbf16, #tpu.memory_space<vmem>>, vector<128x512xbf16>
    %cst_342 = arith.constant dense<0.000000e+00> : vector<8x512xf32>
    %479 = tpu.matmul %477, %478, %cst_342 {dimension_numbers = #tpu.dot_dimension_numbers<[1], [0], [0], [1], [0, 0, 1, 1], [], []>} : vector<8x128xbf16>, vector<128x512xbf16>, vector<8x512xf32> -> vector<8x512xf32>
    %c0_343 = arith.constant 0 : index
    %c0_344 = arith.constant 0 : index
    %480 = vector.load %arg7[%c0_343, %c0_344] : memref<1x512xf32, #tpu.memory_space<vmem>>, vector<1x512xf32>
    %481 = vector.broadcast %480 : vector<1x512xf32> to vector<8x512xf32>
    %482 = arith.addf %479, %481 : vector<8x512xf32>
    %c4_345 = arith.constant 4 : index
    %c0_346 = arith.constant 0 : index
    %c0_347 = arith.constant 0 : index
    %483 = vector.load %arg11[%c4_345, %c0_346, %c0_347] : memref<8x8x512xf32, #tpu.memory_space<vmem>>, vector<1x8x512xf32>
    %484 = vector.shape_cast %483 : vector<1x8x512xf32> to vector<8x512xf32>
    %485 = vector.shape_cast %482 : vector<8x512xf32> to vector<1x8x512xf32>
    tpu.vector_store %arg11[%c4_345, %c0_346, %c0_347], %485 {strides = array<i32>} : memref<8x8x512xf32, #tpu.memory_space<vmem>>, vector<1x8x512xf32>,
    %c5_348 = arith.constant 5 : index
    %c0_349 = arith.constant 0 : index
    %c0_350 = arith.constant 0 : index
    %486 = vector.load %arg14[%c5_348, %c0_349, %c0_350] : memref<8x8x128xbf16, #tpu.memory_space<vmem>>, vector<1x8x128xbf16>
    %487 = vector.shape_cast %486 : vector<1x8x128xbf16> to vector<8x128xbf16>
    %c0_351 = arith.constant 0 : index
    %c0_352 = arith.constant 0 : index
    %488 = vector.load %arg5[%c0_351, %c0_352] : memref<128x512xbf16, #tpu.memory_space<vmem>>, vector<128x512xbf16>
    %cst_353 = arith.constant dense<0.000000e+00> : vector<8x512xf32>
    %489 = tpu.matmul %487, %488, %cst_353 {dimension_numbers = #tpu.dot_dimension_numbers<[1], [0], [0], [1], [0, 0, 1, 1], [], []>} : vector<8x128xbf16>, vector<128x512xbf16>, vector<8x512xf32> -> vector<8x512xf32>
    %c0_354 = arith.constant 0 : index
    %c0_355 = arith.constant 0 : index
    %490 = vector.load %arg7[%c0_354, %c0_355] : memref<1x512xf32, #tpu.memory_space<vmem>>, vector<1x512xf32>
    %491 = vector.broadcast %490 : vector<1x512xf32> to vector<8x512xf32>
    %492 = arith.addf %489, %491 : vector<8x512xf32>
    %c5_356 = arith.constant 5 : index
    %c0_357 = arith.constant 0 : index
    %c0_358 = arith.constant 0 : index
    %493 = vector.load %arg11[%c5_356, %c0_357, %c0_358] : memref<8x8x512xf32, #tpu.memory_space<vmem>>, vector<1x8x512xf32>
    %494 = vector.shape_cast %493 : vector<1x8x512xf32> to vector<8x512xf32>
    %495 = vector.shape_cast %492 : vector<8x512xf32> to vector<1x8x512xf32>
    tpu.vector_store %arg11[%c5_356, %c0_357, %c0_358], %495 {strides = array<i32>} : memref<8x8x512xf32, #tpu.memory_space<vmem>>, vector<1x8x512xf32>,
    %c6_359 = arith.constant 6 : index
    %c0_360 = arith.constant 0 : index
    %c0_361 = arith.constant 0 : index
    %496 = vector.load %arg14[%c6_359, %c0_360, %c0_361] : memref<8x8x128xbf16, #tpu.memory_space<vmem>>, vector<1x8x128xbf16>
    %497 = vector.shape_cast %496 : vector<1x8x128xbf16> to vector<8x128xbf16>
    %c0_362 = arith.constant 0 : index
    %c0_363 = arith.constant 0 : index
    %498 = vector.load %arg5[%c0_362, %c0_363] : memref<128x512xbf16, #tpu.memory_space<vmem>>, vector<128x512xbf16>
    %cst_364 = arith.constant dense<0.000000e+00> : vector<8x512xf32>
    %499 = tpu.matmul %497, %498, %cst_364 {dimension_numbers = #tpu.dot_dimension_numbers<[1], [0], [0], [1], [0, 0, 1, 1], [], []>} : vector<8x128xbf16>, vector<128x512xbf16>, vector<8x512xf32> -> vector<8x512xf32>
    %c0_365 = arith.constant 0 : index
    %c0_366 = arith.constant 0 : index
    %500 = vector.load %arg7[%c0_365, %c0_366] : memref<1x512xf32, #tpu.memory_space<vmem>>, vector<1x512xf32>
    %501 = vector.broadcast %500 : vector<1x512xf32> to vector<8x512xf32>
    %502 = arith.addf %499, %501 : vector<8x512xf32>
    %c6_367 = arith.constant 6 : index
    %c0_368 = arith.constant 0 : index
    %c0_369 = arith.constant 0 : index
    %503 = vector.load %arg11[%c6_367, %c0_368, %c0_369] : memref<8x8x512xf32, #tpu.memory_space<vmem>>, vector<1x8x512xf32>
    %504 = vector.shape_cast %503 : vector<1x8x512xf32> to vector<8x512xf32>
    %505 = vector.shape_cast %502 : vector<8x512xf32> to vector<1x8x512xf32>
    tpu.vector_store %arg11[%c6_367, %c0_368, %c0_369], %505 {strides = array<i32>} : memref<8x8x512xf32, #tpu.memory_space<vmem>>, vector<1x8x512xf32>,
    %c7_370 = arith.constant 7 : index
    %c0_371 = arith.constant 0 : index
    %c0_372 = arith.constant 0 : index
    %506 = vector.load %arg14[%c7_370, %c0_371, %c0_372] : memref<8x8x128xbf16, #tpu.memory_space<vmem>>, vector<1x8x128xbf16>
    %507 = vector.shape_cast %506 : vector<1x8x128xbf16> to vector<8x128xbf16>
    %c0_373 = arith.constant 0 : index
    %c0_374 = arith.constant 0 : index
    %508 = vector.load %arg5[%c0_373, %c0_374] : memref<128x512xbf16, #tpu.memory_space<vmem>>, vector<128x512xbf16>
    %cst_375 = arith.constant dense<0.000000e+00> : vector<8x512xf32>
    %509 = tpu.matmul %507, %508, %cst_375 {dimension_numbers = #tpu.dot_dimension_numbers<[1], [0], [0], [1], [0, 0, 1, 1], [], []>} : vector<8x128xbf16>, vector<128x512xbf16>, vector<8x512xf32> -> vector<8x512xf32>
    %c0_376 = arith.constant 0 : index
    %c0_377 = arith.constant 0 : index
    %510 = vector.load %arg7[%c0_376, %c0_377] : memref<1x512xf32, #tpu.memory_space<vmem>>, vector<1x512xf32>
    %511 = vector.broadcast %510 : vector<1x512xf32> to vector<8x512xf32>
    %512 = arith.addf %509, %511 : vector<8x512xf32>
    %c7_378 = arith.constant 7 : index
    %c0_379 = arith.constant 0 : index
    %c0_380 = arith.constant 0 : index
    %513 = vector.load %arg11[%c7_378, %c0_379, %c0_380] : memref<8x8x512xf32, #tpu.memory_space<vmem>>, vector<1x8x512xf32>
    %514 = vector.shape_cast %513 : vector<1x8x512xf32> to vector<8x512xf32>
    %515 = vector.shape_cast %512 : vector<8x512xf32> to vector<1x8x512xf32>
    tpu.vector_store %arg11[%c7_378, %c0_379, %c0_380], %515 {strides = array<i32>} : memref<8x8x512xf32, #tpu.memory_space<vmem>>, vector<1x8x512xf32>,
    %cst_381 = arith.constant 0.000000e+00 : bf16
    %516 = vector.broadcast %cst_381 : bf16 to vector<8x128xbf16>
    %c0_382 = arith.constant 0 : index
    %c0_383 = arith.constant 0 : index
    %517 = vector.load %arg12[%c0_382, %c0_383] : memref<8x128xbf16, #tpu.memory_space<vmem>>, vector<8x128xbf16>
    tpu.vector_store %arg12[%c0_382, %c0_383], %516 {strides = array<i32>} : memref<8x128xbf16, #tpu.memory_space<vmem>>, vector<8x128xbf16>,
    %cst_384 = arith.constant 0.000000e+00 : f32
    %518 = vector.broadcast %cst_384 : f32 to vector<8x128xf32>
    %c0_385 = arith.constant 0 : index
    %c0_386 = arith.constant 0 : index
    %519 = vector.load %arg13[%c0_385, %c0_386] : memref<8x128xf32, #tpu.memory_space<vmem>>, vector<8x128xf32>
    tpu.vector_store %arg13[%c0_385, %c0_386], %518 {strides = array<i32>} : memref<8x128xf32, #tpu.memory_space<vmem>>, vector<8x128xf32>,
    %c0_387 = arith.constant 0 : index
    %c0_388 = arith.constant 0 : index
    %c0_389 = arith.constant 0 : index
    %520 = vector.load %arg11[%c0_387, %c0_388, %c0_389] : memref<8x8x512xf32, #tpu.memory_space<vmem>>, vector<1x8x512xf32>
    %521 = vector.shape_cast %520 : vector<1x8x512xf32> to vector<8x512xf32>
    %c0_390 = arith.constant 0 : index
    %c0_391 = arith.constant 0 : index
    %522 = vector.load %arg12[%c0_390, %c0_391] : memref<8x128xbf16, #tpu.memory_space<vmem>>, vector<8x128xbf16>
    %c0_392 = arith.constant 0 : index
    %c0_393 = arith.constant 0 : index
    %523 = vector.load %arg6[%c0_392, %c0_393] : memref<128x512xbf16, #tpu.memory_space<vmem>>, vector<128x512xbf16>
    %cst_394 = arith.constant dense<0.000000e+00> : vector<8x512xf32>
    %524 = tpu.matmul %522, %523, %cst_394 {dimension_numbers = #tpu.dot_dimension_numbers<[1], [0], [0], [1], [0, 0, 1, 1], [], []>} : vector<8x128xbf16>, vector<128x512xbf16>, vector<8x512xf32> -> vector<8x512xf32>
    %525 = arith.addf %521, %524 : vector<8x512xf32>
    %526 = vector.extract_strided_slice %525 {offsets = [0, 0], sizes = [8, 128], strides = [1, 1]} : vector<8x512xf32> to vector<8x128xf32>
    %cst_395 = arith.constant 5.000000e-01 : f32
    %527 = vector.broadcast %cst_395 : f32 to vector<8x128xf32>
    %528 = arith.mulf %527, %526 : vector<8x128xf32>
    %529 = math.tanh %528 : vector<8x128xf32>
    %cst_396 = arith.constant 5.000000e-01 : f32
    %530 = vector.broadcast %cst_396 : f32 to vector<8x128xf32>
    %531 = arith.mulf %530, %529 : vector<8x128xf32>
    %cst_397 = arith.constant 5.000000e-01 : f32
    %532 = vector.broadcast %cst_397 : f32 to vector<8x128xf32>
    %533 = arith.addf %531, %532 : vector<8x128xf32>
    %534 = vector.extract_strided_slice %525 {offsets = [0, 128], sizes = [8, 128], strides = [1, 1]} : vector<8x512xf32> to vector<8x128xf32>
    %cst_398 = arith.constant 5.000000e-01 : f32
    %535 = vector.broadcast %cst_398 : f32 to vector<8x128xf32>
    %536 = arith.mulf %535, %534 : vector<8x128xf32>
    %537 = math.tanh %536 : vector<8x128xf32>
    %cst_399 = arith.constant 5.000000e-01 : f32
    %538 = vector.broadcast %cst_399 : f32 to vector<8x128xf32>
    %539 = arith.mulf %538, %537 : vector<8x128xf32>
    %cst_400 = arith.constant 5.000000e-01 : f32
    %540 = vector.broadcast %cst_400 : f32 to vector<8x128xf32>
    %541 = arith.addf %539, %540 : vector<8x128xf32>
    %542 = vector.extract_strided_slice %525 {offsets = [0, 256], sizes = [8, 128], strides = [1, 1]} : vector<8x512xf32> to vector<8x128xf32>
    %543 = math.tanh %542 : vector<8x128xf32>
    %544 = vector.extract_strided_slice %525 {offsets = [0, 384], sizes = [8, 128], strides = [1, 1]} : vector<8x512xf32> to vector<8x128xf32>
    %cst_401 = arith.constant 5.000000e-01 : f32
    %545 = vector.broadcast %cst_401 : f32 to vector<8x128xf32>
    %546 = arith.mulf %545, %544 : vector<8x128xf32>
    %547 = math.tanh %546 : vector<8x128xf32>
    %cst_402 = arith.constant 5.000000e-01 : f32
    %548 = vector.broadcast %cst_402 : f32 to vector<8x128xf32>
    %549 = arith.mulf %548, %547 : vector<8x128xf32>
    %cst_403 = arith.constant 5.000000e-01 : f32
    %550 = vector.broadcast %cst_403 : f32 to vector<8x128xf32>
    %551 = arith.addf %549, %550 : vector<8x128xf32>
    %c0_404 = arith.constant 0 : index
    %c0_405 = arith.constant 0 : index
    %552 = vector.load %arg13[%c0_404, %c0_405] : memref<8x128xf32, #tpu.memory_space<vmem>>, vector<8x128xf32>
    %553 = arith.mulf %541, %552 : vector<8x128xf32>
    %554 = arith.mulf %533, %543 : vector<8x128xf32>
    %555 = arith.addf %553, %554 : vector<8x128xf32>
    %556 = math.tanh %555 : vector<8x128xf32>
    %557 = arith.mulf %551, %556 : vector<8x128xf32>
    %558 = arith.truncf %557 : vector<8x128xf32> to vector<8x128xbf16>
    %c0_406 = arith.constant 0 : index
    %c0_407 = arith.constant 0 : index
    %559 = vector.load %arg13[%c0_406, %c0_407] : memref<8x128xf32, #tpu.memory_space<vmem>>, vector<8x128xf32>
    tpu.vector_store %arg13[%c0_406, %c0_407], %555 {strides = array<i32>} : memref<8x128xf32, #tpu.memory_space<vmem>>, vector<8x128xf32>,
    %c0_408 = arith.constant 0 : index
    %c0_409 = arith.constant 0 : index
    %560 = vector.load %arg12[%c0_408, %c0_409] : memref<8x128xbf16, #tpu.memory_space<vmem>>, vector<8x128xbf16>
    tpu.vector_store %arg12[%c0_408, %c0_409], %558 {strides = array<i32>} : memref<8x128xbf16, #tpu.memory_space<vmem>>, vector<8x128xbf16>,
    %c1_410 = arith.constant 1 : index
    %c0_411 = arith.constant 0 : index
    %c0_412 = arith.constant 0 : index
    %561 = vector.load %arg11[%c1_410, %c0_411, %c0_412] : memref<8x8x512xf32, #tpu.memory_space<vmem>>, vector<1x8x512xf32>
    %562 = vector.shape_cast %561 : vector<1x8x512xf32> to vector<8x512xf32>
    %c0_413 = arith.constant 0 : index
    %c0_414 = arith.constant 0 : index
    %563 = vector.load %arg12[%c0_413, %c0_414] : memref<8x128xbf16, #tpu.memory_space<vmem>>, vector<8x128xbf16>
    %c0_415 = arith.constant 0 : index
    %c0_416 = arith.constant 0 : index
    %564 = vector.load %arg6[%c0_415, %c0_416] : memref<128x512xbf16, #tpu.memory_space<vmem>>, vector<128x512xbf16>
    %cst_417 = arith.constant dense<0.000000e+00> : vector<8x512xf32>
    %565 = tpu.matmul %563, %564, %cst_417 {dimension_numbers = #tpu.dot_dimension_numbers<[1], [0], [0], [1], [0, 0, 1, 1], [], []>} : vector<8x128xbf16>, vector<128x512xbf16>, vector<8x512xf32> -> vector<8x512xf32>
    %566 = arith.addf %562, %565 : vector<8x512xf32>
    %567 = vector.extract_strided_slice %566 {offsets = [0, 0], sizes = [8, 128], strides = [1, 1]} : vector<8x512xf32> to vector<8x128xf32>
    %cst_418 = arith.constant 5.000000e-01 : f32
    %568 = vector.broadcast %cst_418 : f32 to vector<8x128xf32>
    %569 = arith.mulf %568, %567 : vector<8x128xf32>
    %570 = math.tanh %569 : vector<8x128xf32>
    %cst_419 = arith.constant 5.000000e-01 : f32
    %571 = vector.broadcast %cst_419 : f32 to vector<8x128xf32>
    %572 = arith.mulf %571, %570 : vector<8x128xf32>
    %cst_420 = arith.constant 5.000000e-01 : f32
    %573 = vector.broadcast %cst_420 : f32 to vector<8x128xf32>
    %574 = arith.addf %572, %573 : vector<8x128xf32>
    %575 = vector.extract_strided_slice %566 {offsets = [0, 128], sizes = [8, 128], strides = [1, 1]} : vector<8x512xf32> to vector<8x128xf32>
    %cst_421 = arith.constant 5.000000e-01 : f32
    %576 = vector.broadcast %cst_421 : f32 to vector<8x128xf32>
    %577 = arith.mulf %576, %575 : vector<8x128xf32>
    %578 = math.tanh %577 : vector<8x128xf32>
    %cst_422 = arith.constant 5.000000e-01 : f32
    %579 = vector.broadcast %cst_422 : f32 to vector<8x128xf32>
    %580 = arith.mulf %579, %578 : vector<8x128xf32>
    %cst_423 = arith.constant 5.000000e-01 : f32
    %581 = vector.broadcast %cst_423 : f32 to vector<8x128xf32>
    %582 = arith.addf %580, %581 : vector<8x128xf32>
    %583 = vector.extract_strided_slice %566 {offsets = [0, 256], sizes = [8, 128], strides = [1, 1]} : vector<8x512xf32> to vector<8x128xf32>
    %584 = math.tanh %583 : vector<8x128xf32>
    %585 = vector.extract_strided_slice %566 {offsets = [0, 384], sizes = [8, 128], strides = [1, 1]} : vector<8x512xf32> to vector<8x128xf32>
    %cst_424 = arith.constant 5.000000e-01 : f32
    %586 = vector.broadcast %cst_424 : f32 to vector<8x128xf32>
    %587 = arith.mulf %586, %585 : vector<8x128xf32>
    %588 = math.tanh %587 : vector<8x128xf32>
    %cst_425 = arith.constant 5.000000e-01 : f32
    %589 = vector.broadcast %cst_425 : f32 to vector<8x128xf32>
    %590 = arith.mulf %589, %588 : vector<8x128xf32>
    %cst_426 = arith.constant 5.000000e-01 : f32
    %591 = vector.broadcast %cst_426 : f32 to vector<8x128xf32>
    %592 = arith.addf %590, %591 : vector<8x128xf32>
    %c0_427 = arith.constant 0 : index
    %c0_428 = arith.constant 0 : index
    %593 = vector.load %arg13[%c0_427, %c0_428] : memref<8x128xf32, #tpu.memory_space<vmem>>, vector<8x128xf32>
    %594 = arith.mulf %582, %593 : vector<8x128xf32>
    %595 = arith.mulf %574, %584 : vector<8x128xf32>
    %596 = arith.addf %594, %595 : vector<8x128xf32>
    %597 = math.tanh %596 : vector<8x128xf32>
    %598 = arith.mulf %592, %597 : vector<8x128xf32>
    %599 = arith.truncf %598 : vector<8x128xf32> to vector<8x128xbf16>
    %c0_429 = arith.constant 0 : index
    %c0_430 = arith.constant 0 : index
    %600 = vector.load %arg13[%c0_429, %c0_430] : memref<8x128xf32, #tpu.memory_space<vmem>>, vector<8x128xf32>
    tpu.vector_store %arg13[%c0_429, %c0_430], %596 {strides = array<i32>} : memref<8x128xf32, #tpu.memory_space<vmem>>, vector<8x128xf32>,
    %c0_431 = arith.constant 0 : index
    %c0_432 = arith.constant 0 : index
    %601 = vector.load %arg12[%c0_431, %c0_432] : memref<8x128xbf16, #tpu.memory_space<vmem>>, vector<8x128xbf16>
    tpu.vector_store %arg12[%c0_431, %c0_432], %599 {strides = array<i32>} : memref<8x128xbf16, #tpu.memory_space<vmem>>, vector<8x128xbf16>,
    %c2_433 = arith.constant 2 : index
    %c0_434 = arith.constant 0 : index
    %c0_435 = arith.constant 0 : index
    %602 = vector.load %arg11[%c2_433, %c0_434, %c0_435] : memref<8x8x512xf32, #tpu.memory_space<vmem>>, vector<1x8x512xf32>
    %603 = vector.shape_cast %602 : vector<1x8x512xf32> to vector<8x512xf32>
    %c0_436 = arith.constant 0 : index
    %c0_437 = arith.constant 0 : index
    %604 = vector.load %arg12[%c0_436, %c0_437] : memref<8x128xbf16, #tpu.memory_space<vmem>>, vector<8x128xbf16>
    %c0_438 = arith.constant 0 : index
    %c0_439 = arith.constant 0 : index
    %605 = vector.load %arg6[%c0_438, %c0_439] : memref<128x512xbf16, #tpu.memory_space<vmem>>, vector<128x512xbf16>
    %cst_440 = arith.constant dense<0.000000e+00> : vector<8x512xf32>
    %606 = tpu.matmul %604, %605, %cst_440 {dimension_numbers = #tpu.dot_dimension_numbers<[1], [0], [0], [1], [0, 0, 1, 1], [], []>} : vector<8x128xbf16>, vector<128x512xbf16>, vector<8x512xf32> -> vector<8x512xf32>
    %607 = arith.addf %603, %606 : vector<8x512xf32>
    %608 = vector.extract_strided_slice %607 {offsets = [0, 0], sizes = [8, 128], strides = [1, 1]} : vector<8x512xf32> to vector<8x128xf32>
    %cst_441 = arith.constant 5.000000e-01 : f32
    %609 = vector.broadcast %cst_441 : f32 to vector<8x128xf32>
    %610 = arith.mulf %609, %608 : vector<8x128xf32>
    %611 = math.tanh %610 : vector<8x128xf32>
    %cst_442 = arith.constant 5.000000e-01 : f32
    %612 = vector.broadcast %cst_442 : f32 to vector<8x128xf32>
    %613 = arith.mulf %612, %611 : vector<8x128xf32>
    %cst_443 = arith.constant 5.000000e-01 : f32
    %614 = vector.broadcast %cst_443 : f32 to vector<8x128xf32>
    %615 = arith.addf %613, %614 : vector<8x128xf32>
    %616 = vector.extract_strided_slice %607 {offsets = [0, 128], sizes = [8, 128], strides = [1, 1]} : vector<8x512xf32> to vector<8x128xf32>
    %cst_444 = arith.constant 5.000000e-01 : f32
    %617 = vector.broadcast %cst_444 : f32 to vector<8x128xf32>
    %618 = arith.mulf %617, %616 : vector<8x128xf32>
    %619 = math.tanh %618 : vector<8x128xf32>
    %cst_445 = arith.constant 5.000000e-01 : f32
    %620 = vector.broadcast %cst_445 : f32 to vector<8x128xf32>
    %621 = arith.mulf %620, %619 : vector<8x128xf32>
    %cst_446 = arith.constant 5.000000e-01 : f32
    %622 = vector.broadcast %cst_446 : f32 to vector<8x128xf32>
    %623 = arith.addf %621, %622 : vector<8x128xf32>
    %624 = vector.extract_strided_slice %607 {offsets = [0, 256], sizes = [8, 128], strides = [1, 1]} : vector<8x512xf32> to vector<8x128xf32>
    %625 = math.tanh %624 : vector<8x128xf32>
    %626 = vector.extract_strided_slice %607 {offsets = [0, 384], sizes = [8, 128], strides = [1, 1]} : vector<8x512xf32> to vector<8x128xf32>
    %cst_447 = arith.constant 5.000000e-01 : f32
    %627 = vector.broadcast %cst_447 : f32 to vector<8x128xf32>
    %628 = arith.mulf %627, %626 : vector<8x128xf32>
    %629 = math.tanh %628 : vector<8x128xf32>
    %cst_448 = arith.constant 5.000000e-01 : f32
    %630 = vector.broadcast %cst_448 : f32 to vector<8x128xf32>
    %631 = arith.mulf %630, %629 : vector<8x128xf32>
    %cst_449 = arith.constant 5.000000e-01 : f32
    %632 = vector.broadcast %cst_449 : f32 to vector<8x128xf32>
    %633 = arith.addf %631, %632 : vector<8x128xf32>
    %c0_450 = arith.constant 0 : index
    %c0_451 = arith.constant 0 : index
    %634 = vector.load %arg13[%c0_450, %c0_451] : memref<8x128xf32, #tpu.memory_space<vmem>>, vector<8x128xf32>
    %635 = arith.mulf %623, %634 : vector<8x128xf32>
    %636 = arith.mulf %615, %625 : vector<8x128xf32>
    %637 = arith.addf %635, %636 : vector<8x128xf32>
    %638 = math.tanh %637 : vector<8x128xf32>
    %639 = arith.mulf %633, %638 : vector<8x128xf32>
    %640 = arith.truncf %639 : vector<8x128xf32> to vector<8x128xbf16>
    %c0_452 = arith.constant 0 : index
    %c0_453 = arith.constant 0 : index
    %641 = vector.load %arg13[%c0_452, %c0_453] : memref<8x128xf32, #tpu.memory_space<vmem>>, vector<8x128xf32>
    tpu.vector_store %arg13[%c0_452, %c0_453], %637 {strides = array<i32>} : memref<8x128xf32, #tpu.memory_space<vmem>>, vector<8x128xf32>,
    %c0_454 = arith.constant 0 : index
    %c0_455 = arith.constant 0 : index
    %642 = vector.load %arg12[%c0_454, %c0_455] : memref<8x128xbf16, #tpu.memory_space<vmem>>, vector<8x128xbf16>
    tpu.vector_store %arg12[%c0_454, %c0_455], %640 {strides = array<i32>} : memref<8x128xbf16, #tpu.memory_space<vmem>>, vector<8x128xbf16>,
    %c3_456 = arith.constant 3 : index
    %c0_457 = arith.constant 0 : index
    %c0_458 = arith.constant 0 : index
    %643 = vector.load %arg11[%c3_456, %c0_457, %c0_458] : memref<8x8x512xf32, #tpu.memory_space<vmem>>, vector<1x8x512xf32>
    %644 = vector.shape_cast %643 : vector<1x8x512xf32> to vector<8x512xf32>
    %c0_459 = arith.constant 0 : index
    %c0_460 = arith.constant 0 : index
    %645 = vector.load %arg12[%c0_459, %c0_460] : memref<8x128xbf16, #tpu.memory_space<vmem>>, vector<8x128xbf16>
    %c0_461 = arith.constant 0 : index
    %c0_462 = arith.constant 0 : index
    %646 = vector.load %arg6[%c0_461, %c0_462] : memref<128x512xbf16, #tpu.memory_space<vmem>>, vector<128x512xbf16>
    %cst_463 = arith.constant dense<0.000000e+00> : vector<8x512xf32>
    %647 = tpu.matmul %645, %646, %cst_463 {dimension_numbers = #tpu.dot_dimension_numbers<[1], [0], [0], [1], [0, 0, 1, 1], [], []>} : vector<8x128xbf16>, vector<128x512xbf16>, vector<8x512xf32> -> vector<8x512xf32>
    %648 = arith.addf %644, %647 : vector<8x512xf32>
    %649 = vector.extract_strided_slice %648 {offsets = [0, 0], sizes = [8, 128], strides = [1, 1]} : vector<8x512xf32> to vector<8x128xf32>
    %cst_464 = arith.constant 5.000000e-01 : f32
    %650 = vector.broadcast %cst_464 : f32 to vector<8x128xf32>
    %651 = arith.mulf %650, %649 : vector<8x128xf32>
    %652 = math.tanh %651 : vector<8x128xf32>
    %cst_465 = arith.constant 5.000000e-01 : f32
    %653 = vector.broadcast %cst_465 : f32 to vector<8x128xf32>
    %654 = arith.mulf %653, %652 : vector<8x128xf32>
    %cst_466 = arith.constant 5.000000e-01 : f32
    %655 = vector.broadcast %cst_466 : f32 to vector<8x128xf32>
    %656 = arith.addf %654, %655 : vector<8x128xf32>
    %657 = vector.extract_strided_slice %648 {offsets = [0, 128], sizes = [8, 128], strides = [1, 1]} : vector<8x512xf32> to vector<8x128xf32>
    %cst_467 = arith.constant 5.000000e-01 : f32
    %658 = vector.broadcast %cst_467 : f32 to vector<8x128xf32>
    %659 = arith.mulf %658, %657 : vector<8x128xf32>
    %660 = math.tanh %659 : vector<8x128xf32>
    %cst_468 = arith.constant 5.000000e-01 : f32
    %661 = vector.broadcast %cst_468 : f32 to vector<8x128xf32>
    %662 = arith.mulf %661, %660 : vector<8x128xf32>
    %cst_469 = arith.constant 5.000000e-01 : f32
    %663 = vector.broadcast %cst_469 : f32 to vector<8x128xf32>
    %664 = arith.addf %662, %663 : vector<8x128xf32>
    %665 = vector.extract_strided_slice %648 {offsets = [0, 256], sizes = [8, 128], strides = [1, 1]} : vector<8x512xf32> to vector<8x128xf32>
    %666 = math.tanh %665 : vector<8x128xf32>
    %667 = vector.extract_strided_slice %648 {offsets = [0, 384], sizes = [8, 128], strides = [1, 1]} : vector<8x512xf32> to vector<8x128xf32>
    %cst_470 = arith.constant 5.000000e-01 : f32
    %668 = vector.broadcast %cst_470 : f32 to vector<8x128xf32>
    %669 = arith.mulf %668, %667 : vector<8x128xf32>
    %670 = math.tanh %669 : vector<8x128xf32>
    %cst_471 = arith.constant 5.000000e-01 : f32
    %671 = vector.broadcast %cst_471 : f32 to vector<8x128xf32>
    %672 = arith.mulf %671, %670 : vector<8x128xf32>
    %cst_472 = arith.constant 5.000000e-01 : f32
    %673 = vector.broadcast %cst_472 : f32 to vector<8x128xf32>
    %674 = arith.addf %672, %673 : vector<8x128xf32>
    %c0_473 = arith.constant 0 : index
    %c0_474 = arith.constant 0 : index
    %675 = vector.load %arg13[%c0_473, %c0_474] : memref<8x128xf32, #tpu.memory_space<vmem>>, vector<8x128xf32>
    %676 = arith.mulf %664, %675 : vector<8x128xf32>
    %677 = arith.mulf %656, %666 : vector<8x128xf32>
    %678 = arith.addf %676, %677 : vector<8x128xf32>
    %679 = math.tanh %678 : vector<8x128xf32>
    %680 = arith.mulf %674, %679 : vector<8x128xf32>
    %681 = arith.truncf %680 : vector<8x128xf32> to vector<8x128xbf16>
    %c0_475 = arith.constant 0 : index
    %c0_476 = arith.constant 0 : index
    %682 = vector.load %arg13[%c0_475, %c0_476] : memref<8x128xf32, #tpu.memory_space<vmem>>, vector<8x128xf32>
    tpu.vector_store %arg13[%c0_475, %c0_476], %678 {strides = array<i32>} : memref<8x128xf32, #tpu.memory_space<vmem>>, vector<8x128xf32>,
    %c0_477 = arith.constant 0 : index
    %c0_478 = arith.constant 0 : index
    %683 = vector.load %arg12[%c0_477, %c0_478] : memref<8x128xbf16, #tpu.memory_space<vmem>>, vector<8x128xbf16>
    tpu.vector_store %arg12[%c0_477, %c0_478], %681 {strides = array<i32>} : memref<8x128xbf16, #tpu.memory_space<vmem>>, vector<8x128xbf16>,
    %c4_479 = arith.constant 4 : index
    %c0_480 = arith.constant 0 : index
    %c0_481 = arith.constant 0 : index
    %684 = vector.load %arg11[%c4_479, %c0_480, %c0_481] : memref<8x8x512xf32, #tpu.memory_space<vmem>>, vector<1x8x512xf32>
    %685 = vector.shape_cast %684 : vector<1x8x512xf32> to vector<8x512xf32>
    %c0_482 = arith.constant 0 : index
    %c0_483 = arith.constant 0 : index
    %686 = vector.load %arg12[%c0_482, %c0_483] : memref<8x128xbf16, #tpu.memory_space<vmem>>, vector<8x128xbf16>
    %c0_484 = arith.constant 0 : index
    %c0_485 = arith.constant 0 : index
    %687 = vector.load %arg6[%c0_484, %c0_485] : memref<128x512xbf16, #tpu.memory_space<vmem>>, vector<128x512xbf16>
    %cst_486 = arith.constant dense<0.000000e+00> : vector<8x512xf32>
    %688 = tpu.matmul %686, %687, %cst_486 {dimension_numbers = #tpu.dot_dimension_numbers<[1], [0], [0], [1], [0, 0, 1, 1], [], []>} : vector<8x128xbf16>, vector<128x512xbf16>, vector<8x512xf32> -> vector<8x512xf32>
    %689 = arith.addf %685, %688 : vector<8x512xf32>
    %690 = vector.extract_strided_slice %689 {offsets = [0, 0], sizes = [8, 128], strides = [1, 1]} : vector<8x512xf32> to vector<8x128xf32>
    %cst_487 = arith.constant 5.000000e-01 : f32
    %691 = vector.broadcast %cst_487 : f32 to vector<8x128xf32>
    %692 = arith.mulf %691, %690 : vector<8x128xf32>
    %693 = math.tanh %692 : vector<8x128xf32>
    %cst_488 = arith.constant 5.000000e-01 : f32
    %694 = vector.broadcast %cst_488 : f32 to vector<8x128xf32>
    %695 = arith.mulf %694, %693 : vector<8x128xf32>
    %cst_489 = arith.constant 5.000000e-01 : f32
    %696 = vector.broadcast %cst_489 : f32 to vector<8x128xf32>
    %697 = arith.addf %695, %696 : vector<8x128xf32>
    %698 = vector.extract_strided_slice %689 {offsets = [0, 128], sizes = [8, 128], strides = [1, 1]} : vector<8x512xf32> to vector<8x128xf32>
    %cst_490 = arith.constant 5.000000e-01 : f32
    %699 = vector.broadcast %cst_490 : f32 to vector<8x128xf32>
    %700 = arith.mulf %699, %698 : vector<8x128xf32>
    %701 = math.tanh %700 : vector<8x128xf32>
    %cst_491 = arith.constant 5.000000e-01 : f32
    %702 = vector.broadcast %cst_491 : f32 to vector<8x128xf32>
    %703 = arith.mulf %702, %701 : vector<8x128xf32>
    %cst_492 = arith.constant 5.000000e-01 : f32
    %704 = vector.broadcast %cst_492 : f32 to vector<8x128xf32>
    %705 = arith.addf %703, %704 : vector<8x128xf32>
    %706 = vector.extract_strided_slice %689 {offsets = [0, 256], sizes = [8, 128], strides = [1, 1]} : vector<8x512xf32> to vector<8x128xf32>
    %707 = math.tanh %706 : vector<8x128xf32>
    %708 = vector.extract_strided_slice %689 {offsets = [0, 384], sizes = [8, 128], strides = [1, 1]} : vector<8x512xf32> to vector<8x128xf32>
    %cst_493 = arith.constant 5.000000e-01 : f32
    %709 = vector.broadcast %cst_493 : f32 to vector<8x128xf32>
    %710 = arith.mulf %709, %708 : vector<8x128xf32>
    %711 = math.tanh %710 : vector<8x128xf32>
    %cst_494 = arith.constant 5.000000e-01 : f32
    %712 = vector.broadcast %cst_494 : f32 to vector<8x128xf32>
    %713 = arith.mulf %712, %711 : vector<8x128xf32>
    %cst_495 = arith.constant 5.000000e-01 : f32
    %714 = vector.broadcast %cst_495 : f32 to vector<8x128xf32>
    %715 = arith.addf %713, %714 : vector<8x128xf32>
    %c0_496 = arith.constant 0 : index
    %c0_497 = arith.constant 0 : index
    %716 = vector.load %arg13[%c0_496, %c0_497] : memref<8x128xf32, #tpu.memory_space<vmem>>, vector<8x128xf32>
    %717 = arith.mulf %705, %716 : vector<8x128xf32>
    %718 = arith.mulf %697, %707 : vector<8x128xf32>
    %719 = arith.addf %717, %718 : vector<8x128xf32>
    %720 = math.tanh %719 : vector<8x128xf32>
    %721 = arith.mulf %715, %720 : vector<8x128xf32>
    %722 = arith.truncf %721 : vector<8x128xf32> to vector<8x128xbf16>
    %c0_498 = arith.constant 0 : index
    %c0_499 = arith.constant 0 : index
    %723 = vector.load %arg13[%c0_498, %c0_499] : memref<8x128xf32, #tpu.memory_space<vmem>>, vector<8x128xf32>
    tpu.vector_store %arg13[%c0_498, %c0_499], %719 {strides = array<i32>} : memref<8x128xf32, #tpu.memory_space<vmem>>, vector<8x128xf32>,
    %c0_500 = arith.constant 0 : index
    %c0_501 = arith.constant 0 : index
    %724 = vector.load %arg12[%c0_500, %c0_501] : memref<8x128xbf16, #tpu.memory_space<vmem>>, vector<8x128xbf16>
    tpu.vector_store %arg12[%c0_500, %c0_501], %722 {strides = array<i32>} : memref<8x128xbf16, #tpu.memory_space<vmem>>, vector<8x128xbf16>,
    %c5_502 = arith.constant 5 : index
    %c0_503 = arith.constant 0 : index
    %c0_504 = arith.constant 0 : index
    %725 = vector.load %arg11[%c5_502, %c0_503, %c0_504] : memref<8x8x512xf32, #tpu.memory_space<vmem>>, vector<1x8x512xf32>
    %726 = vector.shape_cast %725 : vector<1x8x512xf32> to vector<8x512xf32>
    %c0_505 = arith.constant 0 : index
    %c0_506 = arith.constant 0 : index
    %727 = vector.load %arg12[%c0_505, %c0_506] : memref<8x128xbf16, #tpu.memory_space<vmem>>, vector<8x128xbf16>
    %c0_507 = arith.constant 0 : index
    %c0_508 = arith.constant 0 : index
    %728 = vector.load %arg6[%c0_507, %c0_508] : memref<128x512xbf16, #tpu.memory_space<vmem>>, vector<128x512xbf16>
    %cst_509 = arith.constant dense<0.000000e+00> : vector<8x512xf32>
    %729 = tpu.matmul %727, %728, %cst_509 {dimension_numbers = #tpu.dot_dimension_numbers<[1], [0], [0], [1], [0, 0, 1, 1], [], []>} : vector<8x128xbf16>, vector<128x512xbf16>, vector<8x512xf32> -> vector<8x512xf32>
    %730 = arith.addf %726, %729 : vector<8x512xf32>
    %731 = vector.extract_strided_slice %730 {offsets = [0, 0], sizes = [8, 128], strides = [1, 1]} : vector<8x512xf32> to vector<8x128xf32>
    %cst_510 = arith.constant 5.000000e-01 : f32
    %732 = vector.broadcast %cst_510 : f32 to vector<8x128xf32>
    %733 = arith.mulf %732, %731 : vector<8x128xf32>
    %734 = math.tanh %733 : vector<8x128xf32>
    %cst_511 = arith.constant 5.000000e-01 : f32
    %735 = vector.broadcast %cst_511 : f32 to vector<8x128xf32>
    %736 = arith.mulf %735, %734 : vector<8x128xf32>
    %cst_512 = arith.constant 5.000000e-01 : f32
    %737 = vector.broadcast %cst_512 : f32 to vector<8x128xf32>
    %738 = arith.addf %736, %737 : vector<8x128xf32>
    %739 = vector.extract_strided_slice %730 {offsets = [0, 128], sizes = [8, 128], strides = [1, 1]} : vector<8x512xf32> to vector<8x128xf32>
    %cst_513 = arith.constant 5.000000e-01 : f32
    %740 = vector.broadcast %cst_513 : f32 to vector<8x128xf32>
    %741 = arith.mulf %740, %739 : vector<8x128xf32>
    %742 = math.tanh %741 : vector<8x128xf32>
    %cst_514 = arith.constant 5.000000e-01 : f32
    %743 = vector.broadcast %cst_514 : f32 to vector<8x128xf32>
    %744 = arith.mulf %743, %742 : vector<8x128xf32>
    %cst_515 = arith.constant 5.000000e-01 : f32
    %745 = vector.broadcast %cst_515 : f32 to vector<8x128xf32>
    %746 = arith.addf %744, %745 : vector<8x128xf32>
    %747 = vector.extract_strided_slice %730 {offsets = [0, 256], sizes = [8, 128], strides = [1, 1]} : vector<8x512xf32> to vector<8x128xf32>
    %748 = math.tanh %747 : vector<8x128xf32>
    %749 = vector.extract_strided_slice %730 {offsets = [0, 384], sizes = [8, 128], strides = [1, 1]} : vector<8x512xf32> to vector<8x128xf32>
    %cst_516 = arith.constant 5.000000e-01 : f32
    %750 = vector.broadcast %cst_516 : f32 to vector<8x128xf32>
    %751 = arith.mulf %750, %749 : vector<8x128xf32>
    %752 = math.tanh %751 : vector<8x128xf32>
    %cst_517 = arith.constant 5.000000e-01 : f32
    %753 = vector.broadcast %cst_517 : f32 to vector<8x128xf32>
    %754 = arith.mulf %753, %752 : vector<8x128xf32>
    %cst_518 = arith.constant 5.000000e-01 : f32
    %755 = vector.broadcast %cst_518 : f32 to vector<8x128xf32>
    %756 = arith.addf %754, %755 : vector<8x128xf32>
    %c0_519 = arith.constant 0 : index
    %c0_520 = arith.constant 0 : index
    %757 = vector.load %arg13[%c0_519, %c0_520] : memref<8x128xf32, #tpu.memory_space<vmem>>, vector<8x128xf32>
    %758 = arith.mulf %746, %757 : vector<8x128xf32>
    %759 = arith.mulf %738, %748 : vector<8x128xf32>
    %760 = arith.addf %758, %759 : vector<8x128xf32>
    %761 = math.tanh %760 : vector<8x128xf32>
    %762 = arith.mulf %756, %761 : vector<8x128xf32>
    %763 = arith.truncf %762 : vector<8x128xf32> to vector<8x128xbf16>
    %c0_521 = arith.constant 0 : index
    %c0_522 = arith.constant 0 : index
    %764 = vector.load %arg13[%c0_521, %c0_522] : memref<8x128xf32, #tpu.memory_space<vmem>>, vector<8x128xf32>
    tpu.vector_store %arg13[%c0_521, %c0_522], %760 {strides = array<i32>} : memref<8x128xf32, #tpu.memory_space<vmem>>, vector<8x128xf32>,
    %c0_523 = arith.constant 0 : index
    %c0_524 = arith.constant 0 : index
    %765 = vector.load %arg12[%c0_523, %c0_524] : memref<8x128xbf16, #tpu.memory_space<vmem>>, vector<8x128xbf16>
    tpu.vector_store %arg12[%c0_523, %c0_524], %763 {strides = array<i32>} : memref<8x128xbf16, #tpu.memory_space<vmem>>, vector<8x128xbf16>,
    %c6_525 = arith.constant 6 : index
    %c0_526 = arith.constant 0 : index
    %c0_527 = arith.constant 0 : index
    %766 = vector.load %arg11[%c6_525, %c0_526, %c0_527] : memref<8x8x512xf32, #tpu.memory_space<vmem>>, vector<1x8x512xf32>
    %767 = vector.shape_cast %766 : vector<1x8x512xf32> to vector<8x512xf32>
    %c0_528 = arith.constant 0 : index
    %c0_529 = arith.constant 0 : index
    %768 = vector.load %arg12[%c0_528, %c0_529] : memref<8x128xbf16, #tpu.memory_space<vmem>>, vector<8x128xbf16>
    %c0_530 = arith.constant 0 : index
    %c0_531 = arith.constant 0 : index
    %769 = vector.load %arg6[%c0_530, %c0_531] : memref<128x512xbf16, #tpu.memory_space<vmem>>, vector<128x512xbf16>
    %cst_532 = arith.constant dense<0.000000e+00> : vector<8x512xf32>
    %770 = tpu.matmul %768, %769, %cst_532 {dimension_numbers = #tpu.dot_dimension_numbers<[1], [0], [0], [1], [0, 0, 1, 1], [], []>} : vector<8x128xbf16>, vector<128x512xbf16>, vector<8x512xf32> -> vector<8x512xf32>
    %771 = arith.addf %767, %770 : vector<8x512xf32>
    %772 = vector.extract_strided_slice %771 {offsets = [0, 0], sizes = [8, 128], strides = [1, 1]} : vector<8x512xf32> to vector<8x128xf32>
    %cst_533 = arith.constant 5.000000e-01 : f32
    %773 = vector.broadcast %cst_533 : f32 to vector<8x128xf32>
    %774 = arith.mulf %773, %772 : vector<8x128xf32>
    %775 = math.tanh %774 : vector<8x128xf32>
    %cst_534 = arith.constant 5.000000e-01 : f32
    %776 = vector.broadcast %cst_534 : f32 to vector<8x128xf32>
    %777 = arith.mulf %776, %775 : vector<8x128xf32>
    %cst_535 = arith.constant 5.000000e-01 : f32
    %778 = vector.broadcast %cst_535 : f32 to vector<8x128xf32>
    %779 = arith.addf %777, %778 : vector<8x128xf32>
    %780 = vector.extract_strided_slice %771 {offsets = [0, 128], sizes = [8, 128], strides = [1, 1]} : vector<8x512xf32> to vector<8x128xf32>
    %cst_536 = arith.constant 5.000000e-01 : f32
    %781 = vector.broadcast %cst_536 : f32 to vector<8x128xf32>
    %782 = arith.mulf %781, %780 : vector<8x128xf32>
    %783 = math.tanh %782 : vector<8x128xf32>
    %cst_537 = arith.constant 5.000000e-01 : f32
    %784 = vector.broadcast %cst_537 : f32 to vector<8x128xf32>
    %785 = arith.mulf %784, %783 : vector<8x128xf32>
    %cst_538 = arith.constant 5.000000e-01 : f32
    %786 = vector.broadcast %cst_538 : f32 to vector<8x128xf32>
    %787 = arith.addf %785, %786 : vector<8x128xf32>
    %788 = vector.extract_strided_slice %771 {offsets = [0, 256], sizes = [8, 128], strides = [1, 1]} : vector<8x512xf32> to vector<8x128xf32>
    %789 = math.tanh %788 : vector<8x128xf32>
    %790 = vector.extract_strided_slice %771 {offsets = [0, 384], sizes = [8, 128], strides = [1, 1]} : vector<8x512xf32> to vector<8x128xf32>
    %cst_539 = arith.constant 5.000000e-01 : f32
    %791 = vector.broadcast %cst_539 : f32 to vector<8x128xf32>
    %792 = arith.mulf %791, %790 : vector<8x128xf32>
    %793 = math.tanh %792 : vector<8x128xf32>
    %cst_540 = arith.constant 5.000000e-01 : f32
    %794 = vector.broadcast %cst_540 : f32 to vector<8x128xf32>
    %795 = arith.mulf %794, %793 : vector<8x128xf32>
    %cst_541 = arith.constant 5.000000e-01 : f32
    %796 = vector.broadcast %cst_541 : f32 to vector<8x128xf32>
    %797 = arith.addf %795, %796 : vector<8x128xf32>
    %c0_542 = arith.constant 0 : index
    %c0_543 = arith.constant 0 : index
    %798 = vector.load %arg13[%c0_542, %c0_543] : memref<8x128xf32, #tpu.memory_space<vmem>>, vector<8x128xf32>
    %799 = arith.mulf %787, %798 : vector<8x128xf32>
    %800 = arith.mulf %779, %789 : vector<8x128xf32>
    %801 = arith.addf %799, %800 : vector<8x128xf32>
    %802 = math.tanh %801 : vector<8x128xf32>
    %803 = arith.mulf %797, %802 : vector<8x128xf32>
    %804 = arith.truncf %803 : vector<8x128xf32> to vector<8x128xbf16>
    %c0_544 = arith.constant 0 : index
    %c0_545 = arith.constant 0 : index
    %805 = vector.load %arg13[%c0_544, %c0_545] : memref<8x128xf32, #tpu.memory_space<vmem>>, vector<8x128xf32>
    tpu.vector_store %arg13[%c0_544, %c0_545], %801 {strides = array<i32>} : memref<8x128xf32, #tpu.memory_space<vmem>>, vector<8x128xf32>,
    %c0_546 = arith.constant 0 : index
    %c0_547 = arith.constant 0 : index
    %806 = vector.load %arg12[%c0_546, %c0_547] : memref<8x128xbf16, #tpu.memory_space<vmem>>, vector<8x128xbf16>
    tpu.vector_store %arg12[%c0_546, %c0_547], %804 {strides = array<i32>} : memref<8x128xbf16, #tpu.memory_space<vmem>>, vector<8x128xbf16>,
    %c7_548 = arith.constant 7 : index
    %c0_549 = arith.constant 0 : index
    %c0_550 = arith.constant 0 : index
    %807 = vector.load %arg11[%c7_548, %c0_549, %c0_550] : memref<8x8x512xf32, #tpu.memory_space<vmem>>, vector<1x8x512xf32>
    %808 = vector.shape_cast %807 : vector<1x8x512xf32> to vector<8x512xf32>
    %c0_551 = arith.constant 0 : index
    %c0_552 = arith.constant 0 : index
    %809 = vector.load %arg12[%c0_551, %c0_552] : memref<8x128xbf16, #tpu.memory_space<vmem>>, vector<8x128xbf16>
    %c0_553 = arith.constant 0 : index
    %c0_554 = arith.constant 0 : index
    %810 = vector.load %arg6[%c0_553, %c0_554] : memref<128x512xbf16, #tpu.memory_space<vmem>>, vector<128x512xbf16>
    %cst_555 = arith.constant dense<0.000000e+00> : vector<8x512xf32>
    %811 = tpu.matmul %809, %810, %cst_555 {dimension_numbers = #tpu.dot_dimension_numbers<[1], [0], [0], [1], [0, 0, 1, 1], [], []>} : vector<8x128xbf16>, vector<128x512xbf16>, vector<8x512xf32> -> vector<8x512xf32>
    %812 = arith.addf %808, %811 : vector<8x512xf32>
    %813 = vector.extract_strided_slice %812 {offsets = [0, 0], sizes = [8, 128], strides = [1, 1]} : vector<8x512xf32> to vector<8x128xf32>
    %cst_556 = arith.constant 5.000000e-01 : f32
    %814 = vector.broadcast %cst_556 : f32 to vector<8x128xf32>
    %815 = arith.mulf %814, %813 : vector<8x128xf32>
    %816 = math.tanh %815 : vector<8x128xf32>
    %cst_557 = arith.constant 5.000000e-01 : f32
    %817 = vector.broadcast %cst_557 : f32 to vector<8x128xf32>
    %818 = arith.mulf %817, %816 : vector<8x128xf32>
    %cst_558 = arith.constant 5.000000e-01 : f32
    %819 = vector.broadcast %cst_558 : f32 to vector<8x128xf32>
    %820 = arith.addf %818, %819 : vector<8x128xf32>
    %821 = vector.extract_strided_slice %812 {offsets = [0, 128], sizes = [8, 128], strides = [1, 1]} : vector<8x512xf32> to vector<8x128xf32>
    %cst_559 = arith.constant 5.000000e-01 : f32
    %822 = vector.broadcast %cst_559 : f32 to vector<8x128xf32>
    %823 = arith.mulf %822, %821 : vector<8x128xf32>
    %824 = math.tanh %823 : vector<8x128xf32>
    %cst_560 = arith.constant 5.000000e-01 : f32
    %825 = vector.broadcast %cst_560 : f32 to vector<8x128xf32>
    %826 = arith.mulf %825, %824 : vector<8x128xf32>
    %cst_561 = arith.constant 5.000000e-01 : f32
    %827 = vector.broadcast %cst_561 : f32 to vector<8x128xf32>
    %828 = arith.addf %826, %827 : vector<8x128xf32>
    %829 = vector.extract_strided_slice %812 {offsets = [0, 256], sizes = [8, 128], strides = [1, 1]} : vector<8x512xf32> to vector<8x128xf32>
    %830 = math.tanh %829 : vector<8x128xf32>
    %831 = vector.extract_strided_slice %812 {offsets = [0, 384], sizes = [8, 128], strides = [1, 1]} : vector<8x512xf32> to vector<8x128xf32>
    %cst_562 = arith.constant 5.000000e-01 : f32
    %832 = vector.broadcast %cst_562 : f32 to vector<8x128xf32>
    %833 = arith.mulf %832, %831 : vector<8x128xf32>
    %834 = math.tanh %833 : vector<8x128xf32>
    %cst_563 = arith.constant 5.000000e-01 : f32
    %835 = vector.broadcast %cst_563 : f32 to vector<8x128xf32>
    %836 = arith.mulf %835, %834 : vector<8x128xf32>
    %cst_564 = arith.constant 5.000000e-01 : f32
    %837 = vector.broadcast %cst_564 : f32 to vector<8x128xf32>
    %838 = arith.addf %836, %837 : vector<8x128xf32>
    %c0_565 = arith.constant 0 : index
    %c0_566 = arith.constant 0 : index
    %839 = vector.load %arg13[%c0_565, %c0_566] : memref<8x128xf32, #tpu.memory_space<vmem>>, vector<8x128xf32>
    %840 = arith.mulf %828, %839 : vector<8x128xf32>
    %841 = arith.mulf %820, %830 : vector<8x128xf32>
    %842 = arith.addf %840, %841 : vector<8x128xf32>
    %843 = math.tanh %842 : vector<8x128xf32>
    %844 = arith.mulf %838, %843 : vector<8x128xf32>
    %845 = arith.truncf %844 : vector<8x128xf32> to vector<8x128xbf16>
    %c0_567 = arith.constant 0 : index
    %c0_568 = arith.constant 0 : index
    %846 = vector.load %arg13[%c0_567, %c0_568] : memref<8x128xf32, #tpu.memory_space<vmem>>, vector<8x128xf32>
    tpu.vector_store %arg13[%c0_567, %c0_568], %842 {strides = array<i32>} : memref<8x128xf32, #tpu.memory_space<vmem>>, vector<8x128xf32>,
    %c0_569 = arith.constant 0 : index
    %c0_570 = arith.constant 0 : index
    %847 = vector.load %arg12[%c0_569, %c0_570] : memref<8x128xbf16, #tpu.memory_space<vmem>>, vector<8x128xbf16>
    tpu.vector_store %arg12[%c0_569, %c0_570], %845 {strides = array<i32>} : memref<8x128xbf16, #tpu.memory_space<vmem>>, vector<8x128xbf16>,
    %c0_571 = arith.constant 0 : index
    %c0_572 = arith.constant 0 : index
    %848 = vector.load %arg12[%c0_571, %c0_572] : memref<8x128xbf16, #tpu.memory_space<vmem>>, vector<8x128xbf16>
    %c0_573 = arith.constant 0 : index
    %c0_574 = arith.constant 0 : index
    %849 = vector.load %arg8[%c0_573, %c0_574] : memref<128x128xbf16, #tpu.memory_space<vmem>>, vector<128x128xbf16>
    %cst_575 = arith.constant dense<0.000000e+00> : vector<8x128xf32>
    %850 = tpu.matmul %848, %849, %cst_575 {dimension_numbers = #tpu.dot_dimension_numbers<[1], [0], [0], [1], [0, 0, 1, 1], [], []>} : vector<8x128xbf16>, vector<128x128xbf16>, vector<8x128xf32> -> vector<8x128xf32>
    %c0_576 = arith.constant 0 : index
    %c0_577 = arith.constant 0 : index
    %851 = vector.load %arg9[%c0_576, %c0_577] : memref<1x128xf32, #tpu.memory_space<vmem>>, vector<1x128xf32>
    %852 = vector.broadcast %851 : vector<1x128xf32> to vector<8x128xf32>
    %853 = arith.addf %850, %852 : vector<8x128xf32>
    %c0_578 = arith.constant 0 : index
    %c0_579 = arith.constant 0 : index
    %854 = vector.load %arg10[%c0_578, %c0_579] : memref<8x128xf32, #tpu.memory_space<vmem>>, vector<8x128xf32>
    tpu.vector_store %arg10[%c0_578, %c0_579], %853 {strides = array<i32>} : memref<8x128xf32, #tpu.memory_space<vmem>>, vector<8x128xf32>,
    return
  }
  func.func @transform_0(%arg0: i32) -> (i32, i32, i32) {
    %c0_i32 = arith.constant 0 : i32
    %c0_i32_0 = arith.constant 0 : i32
    %c0_i32_1 = arith.constant 0 : i32
    return %c0_i32, %arg0, %c0_i32_0 : i32, i32, i32
  }
  func.func @transform_1(%arg0: i32) -> (i32, i32) {
    %c0_i32 = arith.constant 0 : i32
    %c0_i32_0 = arith.constant 0 : i32
    %c0_i32_1 = arith.constant 0 : i32
    return %c0_i32, %c0_i32_0 : i32, i32
  }
  func.func @transform_2(%arg0: i32) -> (i32, i32) {
    %c0_i32 = arith.constant 0 : i32
    %c0_i32_0 = arith.constant 0 : i32
    %c0_i32_1 = arith.constant 0 : i32
    return %c0_i32, %c0_i32_0 : i32, i32
  }
  func.func @transform_3(%arg0: i32) -> (i32, i32) {
    %c0_i32 = arith.constant 0 : i32
    %c0_i32_0 = arith.constant 0 : i32
    %c0_i32_1 = arith.constant 0 : i32
    return %c0_i32, %c0_i32_0 : i32, i32
  }
  func.func @transform_4(%arg0: i32) -> (i32, i32) {
    %c0_i32 = arith.constant 0 : i32
    %c0_i32_0 = arith.constant 0 : i32
    %c0_i32_1 = arith.constant 0 : i32
    return %c0_i32, %c0_i32_0 : i32, i32
  }
  func.func @transform_5(%arg0: i32) -> (i32, i32) {
    %c0_i32 = arith.constant 0 : i32
    %c0_i32_0 = arith.constant 0 : i32
    %c0_i32_1 = arith.constant 0 : i32
    return %c0_i32, %c0_i32_0 : i32, i32
  }
  func.func @transform_6(%arg0: i32) -> (i32, i32) {
    %c0_i32 = arith.constant 0 : i32
    %c0_i32_0 = arith.constant 0 : i32
    %c0_i32_1 = arith.constant 0 : i32
    return %c0_i32, %c0_i32_0 : i32, i32
  }
  func.func @transform_7(%arg0: i32) -> (i32, i32) {
    %c0_i32 = arith.constant 0 : i32
    %c0_i32_0 = arith.constant 0 : i32
    %c0_i32_1 = arith.constant 0 : i32
    return %c0_i32, %c0_i32_0 : i32, i32
  }
  func.func @transform_8(%arg0: i32) -> (i32, i32) {
    %c0_i32 = arith.constant 0 : i32
    %c0_i32_0 = arith.constant 0 : i32
    %c0_i32_1 = arith.constant 0 : i32
    return %c0_i32, %c0_i32_0 : i32, i32
  }
  func.func @transform_9(%arg0: i32) -> (i32, i32) {
    %c0_i32 = arith.constant 0 : i32
    %c0_i32_0 = arith.constant 0 : i32
    return %arg0, %c0_i32 : i32, i32
  }
}

</mosaic_0001>

<bundles_post_ra>
// kernel: _lambda_.1
= control target key start
LH: loop header
LB: loop body
LE: loop exit
PB: predicated region body
PF: predicated region fallthrough
CT: control target
= control target key end

     0   :  { %14 = vsyncpa [#allocation7], 0  ;;  %s13730_s0 = inlined_call_operand.vmem [shape: bf16[8,8,128], index: 0, kind: input, shape index: {}]   ;;  %s13731_s1 = inlined_call_operand.hbm [shape: bf16[128,512], index: 1, kind: input, shape index: {}]   ;;  %s13732_s2 = inlined_call_operand.hbm [shape: bf16[128,512], index: 2, kind: input, shape index: {}]   ;;  %s13733_s3 = inlined_call_operand.vmem [shape: f32[1,512], index: 3, kind: input, shape index: {}]   ;;  %s13734_s4 = inlined_call_operand.hbm [shape: bf16[128,512], index: 4, kind: input, shape index: {}]   ;;  %s13735_s5 = inlined_call_operand.hbm [shape: bf16[128,512], index: 5, kind: input, shape index: {}]   ;;  %s13736_s6 = inlined_call_operand.vmem [shape: f32[1,512], index: 6, kind: input, shape index: {}]   ;;  %s13737_s7 = inlined_call_operand.vmem [shape: bf16[128,128], index: 7, kind: input, shape index: {}]   ;;  %s13738_s8 = inlined_call_operand.vmem [shape: f32[1,128], index: 8, kind: input, shape index: {}]   ;;  %s13739_s9 = inlined_call_operand.vmem [shape: f32[8,128], index: 9, kind: output, shape index: {}]  }
   0x1   :  { %15 = vsyncpa [#allocation9], 0 }
   0x2   :  { %16 = vsyncpa [#allocation12], 0  ;;  %s11853_s30 = smov [#allocation8]   ;;  %s11854_s11 = smov [#allocation6]  }
   0x3   :  { %s36_s10 = sshll.u32 %s11853_s30, 4  ;;  %s24_s12 = sshll.u32 %s11854_s11, 4  ;;  %s37_s10 = int_to_ptr.vmem [resolvable:$true] %s36_s10  ;;  %s11912_s12 = int_to_ptr.vmem [resolvable:$true] %s24_s12 }
   0x4   :  { %s11759_s15 = scalar_lea.hbm %s13732_s2, 4096 }
   0x5   :  { %p11760_p0 = scmp.ne.s32.totalorder %s13732_s2, %s11759_s15  ;;  %p11763_p1 = scmp.lt.u32.totalorder %s11759_s15, %s13732_s2 }
   0x7   :  { %p11765_p2 = pnand %p11763_p1, %p11760_p0 }
   0x9   :  { %11768 = shalt.err (!%p11765_p2)
}
   0xa   :  { %s11769_s20 = scalar_lea.vmem %s37_s10, 4096  ;;  %p11774_p4 = scmp.lt.s32.totalorder %s37_s10, %s37_s10 }
   0xb   :  { %p11770_p3 = scmp.ne.s32.totalorder %s37_s10, %s11769_s20  ;;  %p11775_p5 = scmp.lt.s32.totalorder %s11769_s20, %s11769_s20 }
   0xd   :  { %p11776_p6 = por %p11775_p5, %p11774_p4 }
   0xf   :  { %p11777_p7 = pnand %p11776_p6, %p11770_p3 }
  0x11   :  { %11780 = shalt.err (!%p11777_p7)
}
  0x12   :  { %s11855_s21 = smov 256   ;;  %s11856_s22 = smov 16  }
  0x13   :  { %42 = dma.hbm_to_vmem [thread:$0]  %s13732_s2, 4096, %s37_s10, [#allocation9], %s11855_s21, %s11855_s21, %s11856_s22  }
  0x14   :  { %s11781_s27 = scalar_lea.hbm %s13731_s1, 4096 }
  0x15   :  { %p11782_p8 = scmp.ne.s32.totalorder %s13731_s1, %s11781_s27  ;;  %p11785_p9 = scmp.lt.u32.totalorder %s11781_s27, %s13731_s1 }
  0x17   :  { %p11787_p10 = pnand %p11785_p9, %p11782_p8 }
  0x19   :  { %11790 = shalt.err (!%p11787_p10)
}
  0x1a   :  { %s11791_s13 = scalar_lea.vmem %s11912_s12, 4096  ;;  %p11796_p12 = scmp.lt.s32.totalorder %s11912_s12, %s11912_s12 }
  0x1b   :  { %p11792_p11 = scmp.ne.s32.totalorder %s11912_s12, %s11791_s13  ;;  %p11797_p13 = scmp.lt.s32.totalorder %s11791_s13, %s11791_s13 }
  0x1d   :  { %p11798_p0 = por %p11797_p13, %p11796_p12 }
  0x1f   :  { %p11799_p1 = pnand %p11798_p0, %p11792_p11 }
  0x21   :  { %11802 = shalt.err (!%p11799_p1)
}
  0x22   :  { %30 = dma.hbm_to_vmem [thread:$0]  %s13731_s1, 4096, %s11912_s12, [#allocation7], %s11855_s21, %s11855_s21, %s11856_s22  }
  0x23   :  { %s11857_s14 = smov [#allocation10]   ;;  %s11858_s16 = smov [#allocation11]  }
  0x24   :  { %s50_s15 = sshll.u32 %s11857_s14, 4  ;;  %s62_s17 = sshll.u32 %s11858_s16, 4  ;;  %s51_s15 = int_to_ptr.vmem [resolvable:$true] %s50_s15  ;;  %s11949_s17 = int_to_ptr.vmem [resolvable:$true] %s62_s17 }
  0x25   :  { %s11803_s20 = scalar_lea.hbm %s13734_s4, 4096 }
  0x26   :  { %p11804_p2 = scmp.ne.s32.totalorder %s13734_s4, %s11803_s20  ;;  %p11807_p3 = scmp.lt.u32.totalorder %s11803_s20, %s13734_s4 }
  0x28   :  { %p11809_p4 = pnand %p11807_p3, %p11804_p2 }
  0x2a   :  { %11812 = shalt.err (!%p11809_p4)
}
  0x2b   :  { %s11813_s1 = scalar_lea.vmem %s51_s15, 4096  ;;  %p11818_p6 = scmp.lt.s32.totalorder %s51_s15, %s51_s15 }
  0x2c   :  { %p11814_p5 = scmp.ne.s32.totalorder %s51_s15, %s11813_s1  ;;  %p11819_p7 = scmp.lt.s32.totalorder %s11813_s1, %s11813_s1 }
  0x2e   :  { %p11820_p8 = por %p11819_p7, %p11818_p6 }
  0x30   :  { %p11821_p9 = pnand %p11820_p8, %p11814_p5 }
  0x32   :  { %11824 = shalt.err (!%p11821_p9)
}
  0x33   :  { %56 = dma.hbm_to_vmem [thread:$0]  %s13734_s4, 4096, %s51_s15, [#allocation9], %s11855_s21, %s11855_s21, %s11856_s22  }
  0x34   :  { %s11825_s30 = scalar_lea.hbm %s13735_s5, 4096 }
  0x35   :  { %p11826_p10 = scmp.ne.s32.totalorder %s13735_s5, %s11825_s30  ;;  %p11829_p11 = scmp.lt.u32.totalorder %s11825_s30, %s13735_s5 }
  0x37   :  { %p11831_p12 = pnand %p11829_p11, %p11826_p10 }
  0x39   :  { %11834 = shalt.err (!%p11831_p12)
}
  0x3a   :  { %s11835_s14 = scalar_lea.vmem %s11949_s17, 4096  ;;  %p11840_p0 = scmp.lt.s32.totalorder %s11949_s17, %s11949_s17 }
  0x3b   :  { %p11836_p13 = scmp.ne.s32.totalorder %s11949_s17, %s11835_s14  ;;  %p11841_p1 = scmp.lt.s32.totalorder %s11835_s14, %s11835_s14 }
  0x3d   :  { %p11842_p2 = por %p11841_p1, %p11840_p0 }
  0x3f   :  { %p11843_p3 = pnand %p11842_p2, %p11836_p13 }
  0x41   :  { %11846 = shalt.err (!%p11843_p3)
}
  0x42   :  { %68 = dma.hbm_to_vmem [thread:$0]  %s13735_s5, 4096, %s11949_s17, [#allocation12], %s11855_s21, %s11855_s21, %s11856_s22  }
  0x43   :  { %11847 = dma.done.wait [#allocation7], 4096  }
  0x44   :  { %11848 = vsyncadd [#allocation7], 4294963200 }
  0x45   :  { %11849 = dma.done.wait [#allocation9], 8192  }
  0x46   :  { %11850 = vsyncadd [#allocation9], 4294959104 }
  0x47   :  { %11851 = dma.done.wait [#allocation12], 4096  }
  0x48   :  { %11852 = vsyncadd [#allocation12], 4294963200  ;;  %v11859_v0 = vmov 0   ;;  %v11989_v1 = vld [vmem:[#allocation6 + $0x4] ss:$16 sps:$4 sm:$0xff]   ;;  %vm11861_vm0 = vmmov 0  }
  0x49   :  { %335 = vmatprep.mubr.bf16.mxu0 %v11859_v0  ;;  %2510 = vst [vmem:[#allocation3] sm:$0xf] %v11859_v0  ;;  %376 = vmatprep.mubr.bf16.mxu1 %v11859_v0  ;;  %v11991_v2 = vld [vmem:[#allocation6 + $0xc] ss:$16 sps:$4 sm:$0xff]   ;;  %v11994_v3 = vld [vmem:[#allocation6] ss:$16 sps:$4 sm:$0xff]  }
  0x4a   :  { %303 = vmatprep.subr.bf16.mxu0 %v11989_v1  ;;  %v11996_v4 = vld [vmem:[#allocation6 + $0x8] ss:$16 sps:$4 sm:$0xff]   ;;  %344 = vmatprep.subr.bf16.mxu1 %v11991_v2  ;;  %v11999_v5 = vld [vmem:[#allocation6 + $0x24] ss:$16 sps:$4 sm:$0xff]   ;;  %v12003_v6 = vld [vmem:[#allocation6 + $0x2c] ss:$16 sps:$4 sm:$0xff]  }
  0x4b   :  { %304 = vmatpush1.bf16.msra.mxu0 %v11994_v3  ;;  %345 = vmatpush1.bf16.msra.mxu1 %v11996_v4  ;;  %v12005_v7 = vld [vmem:[#allocation6 + $0x20] ss:$16 sps:$4 sm:$0xff]   ;;  %v12008_v8 = vld [vmem:[#allocation6 + $0x28] ss:$16 sps:$4 sm:$0xff]   ;;  %v12011_v9 = vld [vmem:[#allocation6 + $0x44] ss:$16 sps:$4 sm:$0xff]  }
  0x4c   :  { %305 = vmatprep.subr.bf16.mxu0 %v11999_v5  ;;  %346 = vmatprep.subr.bf16.mxu1 %v12003_v6  ;;  %v12013_v10 = vld [vmem:[#allocation6 + $0x4c] ss:$16 sps:$4 sm:$0xff]   ;;  %v12015_v11 = vld [vmem:[#allocation6 + $0x40] ss:$16 sps:$4 sm:$0xff]   ;;  %v12017_v12 = vld [vmem:[#allocation6 + $0x48] ss:$16 sps:$4 sm:$0xff]  }
  0x4d   :  { %v12021_v13 = vld [vmem:[#allocation6 + $0x64] ss:$16 sps:$4 sm:$0xff]   ;;  %v12025_v14 = vld [vmem:[#allocation6 + $0x6c] ss:$16 sps:$4 sm:$0xff]   ;;  %v12027_v15 = vld [vmem:[#allocation6 + $0x60] ss:$16 sps:$4 sm:$0xff]  }
  0x4e   :  { %v12031_v16 = vld [vmem:[#allocation6 + $0x68] ss:$16 sps:$4 sm:$0xff]   ;;  %v12033_v17 = vld [vmem:[#allocation6 + $0x84] ss:$16 sps:$4 sm:$0xff]   ;;  %v12037_v18 = vld [vmem:[#allocation6 + $0x8c] ss:$16 sps:$4 sm:$0xff]  }
  0x4f   :  { %306 = vmatpush1.bf16.msra.mxu0 %v12005_v7  ;;  %347 = vmatpush1.bf16.msra.mxu1 %v12008_v8  ;;  %v12039_v19 = vld [vmem:[#allocation6 + $0x80] ss:$16 sps:$4 sm:$0xff]   ;;  %v12041_v20 = vld [vmem:[#allocation6 + $0x88] ss:$16 sps:$4 sm:$0xff]   ;;  %v12045_v21 = vld [vmem:[#allocation6 + $0xa4] ss:$16 sps:$4 sm:$0xff]  }
  0x50   :  { %307 = vmatprep.subr.bf16.mxu0 %v12011_v9  ;;  %348 = vmatprep.subr.bf16.mxu1 %v12013_v10  ;;  %v12049_v22 = vld [vmem:[#allocation6 + $0xac] ss:$16 sps:$4 sm:$0xff]   ;;  %v12053_v23 = vld [vmem:[#allocation6 + $0xa0] ss:$16 sps:$4 sm:$0xff]   ;;  %v12055_v24 = vld [vmem:[#allocation6 + $0xa8] ss:$16 sps:$4 sm:$0xff]  }
  0x51   :  { %v12059_v25 = vld [vmem:[#allocation6 + $0xc4] ss:$16 sps:$4 sm:$0xff]   ;;  %v12061_v26 = vld [vmem:[#allocation6 + $0xcc] ss:$16 sps:$4 sm:$0xff]   ;;  %v12063_v27 = vld [vmem:[#allocation6 + $0xc0] ss:$16 sps:$4 sm:$0xff]  }
  0x52   :  { %v12065_v28 = vld [vmem:[#allocation6 + $0xc8] ss:$16 sps:$4 sm:$0xff]   ;;  %v12067_v29 = vld [vmem:[#allocation6 + $0xe4] ss:$16 sps:$4 sm:$0xff]   ;;  %v12069_v30 = vld [vmem:[#allocation6 + $0xec] ss:$16 sps:$4 sm:$0xff]  }
  0x53   :  { %308 = vmatpush1.bf16.msra.mxu0 %v12015_v11  ;;  %349 = vmatpush1.bf16.msra.mxu1 %v12017_v12  ;;  %v12075_v31 = vld [vmem:[#allocation6 + $0xe0] ss:$16 sps:$4 sm:$0xff]   ;;  %v12077_v32 = vld [vmem:[#allocation6 + $0xe8] ss:$16 sps:$4 sm:$0xff]   ;;  %v88_v33 = vld [vmem:[%s13730_s0] sm:$0xf] }
  0x54   :  { %309 = vmatprep.subr.bf16.mxu0 %v12021_v13  ;;  %350 = vmatprep.subr.bf16.mxu1 %v12025_v14  ;;  %v9969_v34 = vld [vmem:[%s13730_s0 + $0x4] sm:$0xf]  ;;  %v10002_v35 = vld [vmem:[%s13730_s0 + $0x8] sm:$0xf]  ;;  %v10035_v36 = vld [vmem:[%s13730_s0 + $0xc] sm:$0xf] }
  0x55   :  { %v10068_v37 = vld [vmem:[%s13730_s0 + $0x10] sm:$0xf]  ;;  %v12268_v38 = vld [vmem:[#allocation6 + $0x4] ss:$16 sps:$4 sm:$0xff]   ;;  %v12274_v40 = vld [vmem:[#allocation6] ss:$16 sps:$4 sm:$0xff]  }
  0x56   :  { %v12270_v39 = vld [vmem:[#allocation6 + $0xc] ss:$16 sps:$4 sm:$0xff]   ;;  %v12276_v41 = vld [vmem:[#allocation6 + $0x8] ss:$16 sps:$4 sm:$0xff]   ;;  %v10101_v42 = vld [vmem:[%s13730_s0 + $0x14] sm:$0xf] }
  0x57   :  { %310 = vmatpush1.bf16.msra.mxu0 %v12027_v15  ;;  %351 = vmatpush1.bf16.msra.mxu1 %v12031_v16  ;;  %v12283_v43 = vld [vmem:[#allocation6 + $0x24] ss:$16 sps:$4 sm:$0xff]   ;;  %v12285_v44 = vld [vmem:[#allocation6 + $0x2c] ss:$16 sps:$4 sm:$0xff]   ;;  %v12289_v45 = vld [vmem:[#allocation6 + $0x20] ss:$16 sps:$4 sm:$0xff]  }
  0x58   :  { %311 = vmatprep.subr.bf16.mxu0 %v12033_v17  ;;  %352 = vmatprep.subr.bf16.mxu1 %v12037_v18  ;;  %v12291_v46 = vld [vmem:[#allocation6 + $0x28] ss:$16 sps:$4 sm:$0xff]   ;;  %v12295_v47 = vld [vmem:[#allocation6 + $0x44] ss:$16 sps:$4 sm:$0xff]   ;;  %v12297_v48 = vld [vmem:[#allocation6 + $0x4c] ss:$16 sps:$4 sm:$0xff]  }
  0x59   :  { %v11267_v49 = vld [vmem:[#allocation6 + $0x40] ss:$16 sps:$4 sm:$0xff]   ;;  %v11270_v50 = vld [vmem:[#allocation6 + $0x48] ss:$16 sps:$4 sm:$0xff]   ;;  %v11275_v51 = vld [vmem:[#allocation6 + $0x64] ss:$16 sps:$4 sm:$0xff]  }
  0x5a   :  { %v11278_v52 = vld [vmem:[#allocation6 + $0x6c] ss:$16 sps:$4 sm:$0xff]   ;;  %v11273_v53 = vld [vmem:[#allocation6 + $0x60] ss:$16 sps:$4 sm:$0xff]   ;;  %v11276_v54 = vld [vmem:[#allocation6 + $0x68] ss:$16 sps:$4 sm:$0xff]  }
  0x5b   :  { %312 = vmatpush1.bf16.msra.mxu0 %v12039_v19  ;;  %353 = vmatpush1.bf16.msra.mxu1 %v12041_v20  ;;  %v11281_v55 = vld [vmem:[#allocation6 + $0x84] ss:$16 sps:$4 sm:$0xff]   ;;  %v11284_v56 = vld [vmem:[#allocation6 + $0x8c] ss:$16 sps:$4 sm:$0xff]   ;;  %v11279_v57 = vld [vmem:[#allocation6 + $0x80] ss:$16 sps:$4 sm:$0xff]  }
  0x5c   :  { %313 = vmatprep.subr.bf16.mxu0 %v12045_v21  ;;  %354 = vmatprep.subr.bf16.mxu1 %v12049_v22  ;;  %v11282_v58 = vld [vmem:[#allocation6 + $0x88] ss:$16 sps:$4 sm:$0xff]   ;;  %v11287_v59 = vld [vmem:[#allocation6 + $0xa4] ss:$16 sps:$4 sm:$0xff]   ;;  %v11290_v60 = vld [vmem:[#allocation6 + $0xac] ss:$16 sps:$4 sm:$0xff]  }
  0x5d   :  { %v11285_v61 = vld [vmem:[#allocation6 + $0xa0] ss:$16 sps:$4 sm:$0xff]   ;;  %v11288_v62 = vld [vmem:[#allocation6 + $0xa8] ss:$16 sps:$4 sm:$0xff]   ;;  %v11293_v63 = vld [vmem:[#allocation6 + $0xc4] ss:$16 sps:$4 sm:$0xff]  }
  0x5f   :  { %314 = vmatpush1.bf16.msra.mxu0 %v12053_v23  ;;  %355 = vmatpush1.bf16.msra.mxu1 %v12055_v24 }
  0x60   :  { %315 = vmatprep.subr.bf16.mxu0 %v12059_v25  ;;  %356 = vmatprep.subr.bf16.mxu1 %v12061_v26 }
  0x63   :  { %316 = vmatpush1.bf16.msra.mxu0 %v12063_v27  ;;  %357 = vmatpush1.bf16.msra.mxu1 %v12065_v28 }
  0x64   :  { %317 = vmatprep.subr.bf16.mxu0 %v12067_v29  ;;  %358 = vmatprep.subr.bf16.mxu1 %v12069_v30 }
  0x67   :  { %318 = vmatpush1.bf16.msra.mxu0 %v12075_v31  ;;  %359 = vmatpush1.bf16.msra.mxu1 %v12077_v32 }
  0x68   :  { %605 = vmatprep.subr.bf16.mxu0 %v11989_v1  ;;  %646 = vmatprep.subr.bf16.mxu1 %v11991_v2 }
  0x6a   :  { %336 = vmatmul.mubr.bf16.vlgmr.msra.gmra.mrb[0].mxu0 %v88_v33  ;;  %377 = vmatmul.mubr.bf16.vlgmr.msra.gmra.mrb[0].mxu1 %v88_v33  ;;  %v12391_v33 = vld [vmem:[#allocation8 + $0xa8] ss:$16 sps:$4 sm:$0xff]  }
  0x6b   :  { %606 = vmatpush1.bf16.msra.mxu0 %v11994_v3  ;;  %647 = vmatpush1.bf16.msra.mxu1 %v11996_v4 }
  0x6c   :  { %607 = vmatprep.subr.bf16.mxu0 %v11999_v5  ;;  %648 = vmatprep.subr.bf16.mxu1 %v12003_v6 }
  0x6d   :  { %637 = vmatprep.mubr.bf16.mxu0 %v11859_v0  ;;  %678 = vmatprep.mubr.bf16.mxu1 %v11859_v0 }
  0x6f   :  { %608 = vmatpush1.bf16.msra.mxu0 %v12005_v7  ;;  %649 = vmatpush1.bf16.msra.mxu1 %v12008_v8 }
  0x70   :  { %609 = vmatprep.subr.bf16.mxu0 %v12011_v9  ;;  %650 = vmatprep.subr.bf16.mxu1 %v12013_v10 }
  0x73   :  { %610 = vmatpush1.bf16.msra.mxu0 %v12015_v11  ;;  %651 = vmatpush1.bf16.msra.mxu1 %v12017_v12 }
  0x74   :  { %611 = vmatprep.subr.bf16.mxu0 %v12021_v13  ;;  %652 = vmatprep.subr.bf16.mxu1 %v12025_v14 }
  0x77   :  { %612 = vmatpush1.bf16.msra.mxu0 %v12027_v15  ;;  %653 = vmatpush1.bf16.msra.mxu1 %v12031_v16 }
  0x78   :  { %613 = vmatprep.subr.bf16.mxu0 %v12033_v17  ;;  %654 = vmatprep.subr.bf16.mxu1 %v12037_v18 }
  0x7b   :  { %614 = vmatpush1.bf16.msra.mxu0 %v12039_v19  ;;  %655 = vmatpush1.bf16.msra.mxu1 %v12041_v20 }
  0x7c   :  { %615 = vmatprep.subr.bf16.mxu0 %v12045_v21  ;;  %656 = vmatprep.subr.bf16.mxu1 %v12049_v22 }
  0x7f   :  { %616 = vmatpush1.bf16.msra.mxu0 %v12053_v23  ;;  %657 = vmatpush1.bf16.msra.mxu1 %v12055_v24 }
  0x80   :  { %617 = vmatprep.subr.bf16.mxu0 %v12059_v25  ;;  %658 = vmatprep.subr.bf16.mxu1 %v12061_v26 }
  0x83   :  { %618 = vmatpush1.bf16.msra.mxu0 %v12063_v27  ;;  %659 = vmatpush1.bf16.msra.mxu1 %v12065_v28 }
  0x84   :  { %619 = vmatprep.subr.bf16.mxu0 %v12067_v29  ;;  %660 = vmatprep.subr.bf16.mxu1 %v12069_v30 }
  0x87   :  { %620 = vmatpush1.bf16.msra.mxu0 %v12075_v31  ;;  %661 = vmatpush1.bf16.msra.mxu1 %v12077_v32 }
  0x88   :  { %908 = vmatprep.subr.bf16.mxu0 %v11989_v1  ;;  %949 = vmatprep.subr.bf16.mxu1 %v11991_v2 }
  0x8a   :  { %638 = vmatmul.mubr.bf16.vlgmr.msra.gmra.mrb[4].mxu0 %v9969_v34  ;;  %679 = vmatmul.mubr.bf16.vlgmr.msra.gmra.mrb[4].mxu1 %v9969_v34  ;;  %v12395_v34 = vld [vmem:[#allocation8 + $0xc4] ss:$16 sps:$4 sm:$0xff]  }
  0x8b   :  { %909 = vmatpush1.bf16.msra.mxu0 %v11994_v3  ;;  %950 = vmatpush1.bf16.msra.mxu1 %v11996_v4 }
  0x8c   :  { %910 = vmatprep.subr.bf16.mxu0 %v11999_v5  ;;  %951 = vmatprep.subr.bf16.mxu1 %v12003_v6 }
  0x8d   :  { %940 = vmatprep.mubr.bf16.mxu0 %v11859_v0  ;;  %981 = vmatprep.mubr.bf16.mxu1 %v11859_v0 }
  0x8f   :  { %911 = vmatpush1.bf16.msra.mxu0 %v12005_v7  ;;  %952 = vmatpush1.bf16.msra.mxu1 %v12008_v8 }
  0x90   :  { %912 = vmatprep.subr.bf16.mxu0 %v12011_v9  ;;  %953 = vmatprep.subr.bf16.mxu1 %v12013_v10 }
  0x93   :  { %913 = vmatpush1.bf16.msra.mxu0 %v12015_v11  ;;  %954 = vmatpush1.bf16.msra.mxu1 %v12017_v12 }
  0x94   :  { %914 = vmatprep.subr.bf16.mxu0 %v12021_v13  ;;  %955 = vmatprep.subr.bf16.mxu1 %v12025_v14 }
  0x97   :  { %915 = vmatpush1.bf16.msra.mxu0 %v12027_v15  ;;  %956 = vmatpush1.bf16.msra.mxu1 %v12031_v16 }
  0x98   :  { %916 = vmatprep.subr.bf16.mxu0 %v12033_v17  ;;  %957 = vmatprep.subr.bf16.mxu1 %v12037_v18 }
  0x9b   :  { %917 = vmatpush1.bf16.msra.mxu0 %v12039_v19  ;;  %958 = vmatpush1.bf16.msra.mxu1 %v12041_v20 }
  0x9c   :  { %918 = vmatprep.subr.bf16.mxu0 %v12045_v21  ;;  %959 = vmatprep.subr.bf16.mxu1 %v12049_v22 }
  0x9f   :  { %919 = vmatpush1.bf16.msra.mxu0 %v12053_v23  ;;  %960 = vmatpush1.bf16.msra.mxu1 %v12055_v24 }
  0xa0   :  { %920 = vmatprep.subr.bf16.mxu0 %v12059_v25  ;;  %961 = vmatprep.subr.bf16.mxu1 %v12061_v26 }
  0xa3   :  { %921 = vmatpush1.bf16.msra.mxu0 %v12063_v27  ;;  %962 = vmatpush1.bf16.msra.mxu1 %v12065_v28 }
  0xa4   :  { %922 = vmatprep.subr.bf16.mxu0 %v12067_v29  ;;  %963 = vmatprep.subr.bf16.mxu1 %v12069_v30 }
  0xa7   :  { %923 = vmatpush1.bf16.msra.mxu0 %v12075_v31  ;;  %964 = vmatpush1.bf16.msra.mxu1 %v12077_v32 }
  0xa8   :  { %1211 = vmatprep.subr.bf16.mxu0 %v11989_v1  ;;  %1252 = vmatprep.subr.bf16.mxu1 %v11991_v2 }
  0xaa   :  { %941 = vmatmul.mubr.bf16.vlgmr.msra.gmra.mrb[8].mxu0 %v10002_v35  ;;  %982 = vmatmul.mubr.bf16.vlgmr.msra.gmra.mrb[8].mxu1 %v10002_v35  ;;  %v12397_v35 = vld [vmem:[#allocation8 + $0xcc] ss:$16 sps:$4 sm:$0xff]  }
  0xab   :  { %1212 = vmatpush1.bf16.msra.mxu0 %v11994_v3  ;;  %1253 = vmatpush1.bf16.msra.mxu1 %v11996_v4 }
  0xac   :  { %1213 = vmatprep.subr.bf16.mxu0 %v11999_v5  ;;  %1254 = vmatprep.subr.bf16.mxu1 %v12003_v6 }
  0xad   :  { %1243 = vmatprep.mubr.bf16.mxu0 %v11859_v0  ;;  %1284 = vmatprep.mubr.bf16.mxu1 %v11859_v0 }
  0xaf   :  { %1214 = vmatpush1.bf16.msra.mxu0 %v12005_v7  ;;  %1255 = vmatpush1.bf16.msra.mxu1 %v12008_v8 }
  0xb0   :  { %1215 = vmatprep.subr.bf16.mxu0 %v12011_v9  ;;  %1256 = vmatprep.subr.bf16.mxu1 %v12013_v10 }
  0xb3   :  { %1216 = vmatpush1.bf16.msra.mxu0 %v12015_v11  ;;  %1257 = vmatpush1.bf16.msra.mxu1 %v12017_v12 }
  0xb4   :  { %1217 = vmatprep.subr.bf16.mxu0 %v12021_v13  ;;  %1258 = vmatprep.subr.bf16.mxu1 %v12025_v14 }
  0xb7   :  { %1218 = vmatpush1.bf16.msra.mxu0 %v12027_v15  ;;  %1259 = vmatpush1.bf16.msra.mxu1 %v12031_v16 }
  0xb8   :  { %1219 = vmatprep.subr.bf16.mxu0 %v12033_v17  ;;  %1260 = vmatprep.subr.bf16.mxu1 %v12037_v18 }
  0xbb   :  { %1220 = vmatpush1.bf16.msra.mxu0 %v12039_v19  ;;  %1261 = vmatpush1.bf16.msra.mxu1 %v12041_v20 }
  0xbc   :  { %1221 = vmatprep.subr.bf16.mxu0 %v12045_v21  ;;  %1262 = vmatprep.subr.bf16.mxu1 %v12049_v22 }
  0xbf   :  { %1222 = vmatpush1.bf16.msra.mxu0 %v12053_v23  ;;  %1263 = vmatpush1.bf16.msra.mxu1 %v12055_v24 }
  0xc0   :  { %1223 = vmatprep.subr.bf16.mxu0 %v12059_v25  ;;  %1264 = vmatprep.subr.bf16.mxu1 %v12061_v26 }
  0xc3   :  { %1224 = vmatpush1.bf16.msra.mxu0 %v12063_v27  ;;  %1265 = vmatpush1.bf16.msra.mxu1 %v12065_v28 }
  0xc4   :  { %1225 = vmatprep.subr.bf16.mxu0 %v12067_v29  ;;  %1266 = vmatprep.subr.bf16.mxu1 %v12069_v30 }
  0xc7   :  { %1226 = vmatpush1.bf16.msra.mxu0 %v12075_v31  ;;  %1267 = vmatpush1.bf16.msra.mxu1 %v12077_v32 }
  0xc8   :  { %1514 = vmatprep.subr.bf16.mxu0 %v11989_v1  ;;  %1555 = vmatprep.subr.bf16.mxu1 %v11991_v2 }
  0xca   :  { %1244 = vmatmul.mubr.bf16.vlgmr.msra.gmra.mrb[12].mxu0 %v10035_v36  ;;  %1285 = vmatmul.mubr.bf16.vlgmr.msra.gmra.mrb[12].mxu1 %v10035_v36  ;;  %v12401_v36 = vld [vmem:[#allocation8 + $0xc0] ss:$16 sps:$4 sm:$0xff]  }
  0xcb   :  { %1515 = vmatpush1.bf16.msra.mxu0 %v11994_v3  ;;  %1556 = vmatpush1.bf16.msra.mxu1 %v11996_v4 }
  0xcc   :  { %1516 = vmatprep.subr.bf16.mxu0 %v11999_v5  ;;  %1557 = vmatprep.subr.bf16.mxu1 %v12003_v6 }
  0xcd   :  { %1546 = vmatprep.mubr.bf16.mxu0 %v11859_v0  ;;  %1587 = vmatprep.mubr.bf16.mxu1 %v11859_v0 }
  0xcf   :  { %1517 = vmatpush1.bf16.msra.mxu0 %v12005_v7  ;;  %1558 = vmatpush1.bf16.msra.mxu1 %v12008_v8 }
  0xd0   :  { %1518 = vmatprep.subr.bf16.mxu0 %v12011_v9  ;;  %1559 = vmatprep.subr.bf16.mxu1 %v12013_v10 }
  0xd3   :  { %1519 = vmatpush1.bf16.msra.mxu0 %v12015_v11  ;;  %1560 = vmatpush1.bf16.msra.mxu1 %v12017_v12 }
  0xd4   :  { %1520 = vmatprep.subr.bf16.mxu0 %v12021_v13  ;;  %1561 = vmatprep.subr.bf16.mxu1 %v12025_v14 }
  0xd7   :  { %1521 = vmatpush1.bf16.msra.mxu0 %v12027_v15  ;;  %1562 = vmatpush1.bf16.msra.mxu1 %v12031_v16 }
  0xd8   :  { %1522 = vmatprep.subr.bf16.mxu0 %v12033_v17  ;;  %1563 = vmatprep.subr.bf16.mxu1 %v12037_v18 }
  0xdb   :  { %1523 = vmatpush1.bf16.msra.mxu0 %v12039_v19  ;;  %1564 = vmatpush1.bf16.msra.mxu1 %v12041_v20 }
  0xdc   :  { %1524 = vmatprep.subr.bf16.mxu0 %v12045_v21  ;;  %1565 = vmatprep.subr.bf16.mxu1 %v12049_v22 }
  0xdf   :  { %1525 = vmatpush1.bf16.msra.mxu0 %v12053_v23  ;;  %1566 = vmatpush1.bf16.msra.mxu1 %v12055_v24 }
  0xe0   :  { %1526 = vmatprep.subr.bf16.mxu0 %v12059_v25  ;;  %1567 = vmatprep.subr.bf16.mxu1 %v12061_v26 }
  0xe3   :  { %1527 = vmatpush1.bf16.msra.mxu0 %v12063_v27  ;;  %1568 = vmatpush1.bf16.msra.mxu1 %v12065_v28 }
  0xe4   :  { %1528 = vmatprep.subr.bf16.mxu0 %v12067_v29  ;;  %1569 = vmatprep.subr.bf16.mxu1 %v12069_v30 }
  0xe7   :  { %1529 = vmatpush1.bf16.msra.mxu0 %v12075_v31  ;;  %1570 = vmatpush1.bf16.msra.mxu1 %v12077_v32 }
  0xe8   :  { %1817 = vmatprep.subr.bf16.mxu0 %v11989_v1  ;;  %1858 = vmatprep.subr.bf16.mxu1 %v11991_v2  ;;  %v11296_v1 = vld [vmem:[#allocation6 + $0xcc] ss:$16 sps:$4 sm:$0xff]   ;;  %v11291_v2 = vld [vmem:[#allocation6 + $0xc0] ss:$16 sps:$4 sm:$0xff]  }
  0xea   :  { %1547 = vmatmul.mubr.bf16.vlgmr.msra.gmra.mrb[16].mxu0 %v10068_v37  ;;  %1588 = vmatmul.mubr.bf16.vlgmr.msra.gmra.mrb[16].mxu1 %v10068_v37  ;;  %v12403_v37 = vld [vmem:[#allocation8 + $0xc8] ss:$16 sps:$4 sm:$0xff]  }
  0xeb   :  { %1818 = vmatpush1.bf16.msra.mxu0 %v11994_v3  ;;  %1859 = vmatpush1.bf16.msra.mxu1 %v11996_v4  ;;  %v11294_v3 = vld [vmem:[#allocation6 + $0xc8] ss:$16 sps:$4 sm:$0xff]   ;;  %v11299_v4 = vld [vmem:[#allocation6 + $0xe4] ss:$16 sps:$4 sm:$0xff]  }
  0xec   :  { %1819 = vmatprep.subr.bf16.mxu0 %v11999_v5  ;;  %1860 = vmatprep.subr.bf16.mxu1 %v12003_v6  ;;  %v11302_v5 = vld [vmem:[#allocation6 + $0xec] ss:$16 sps:$4 sm:$0xff]   ;;  %v11297_v6 = vld [vmem:[#allocation6 + $0xe0] ss:$16 sps:$4 sm:$0xff]  }
  0xed   :  { %1849 = vmatprep.mubr.bf16.mxu0 %v11859_v0  ;;  %1890 = vmatprep.mubr.bf16.mxu1 %v11859_v0 }
  0xef   :  { %1820 = vmatpush1.bf16.msra.mxu0 %v12005_v7  ;;  %1861 = vmatpush1.bf16.msra.mxu1 %v12008_v8  ;;  %v11300_v7 = vld [vmem:[#allocation6 + $0xe8] ss:$16 sps:$4 sm:$0xff]   ;;  %v10134_v8 = vld [vmem:[%s13730_s0 + $0x18] sm:$0xf] }
  0xf0   :  { %1821 = vmatprep.subr.bf16.mxu0 %v12011_v9  ;;  %1862 = vmatprep.subr.bf16.mxu1 %v12013_v10  ;;  %v12320_v9 = vld [vmem:[#allocation8 + $0x4] ss:$16 sps:$4 sm:$0xff]   ;;  %v12322_v10 = vld [vmem:[#allocation8 + $0xc] ss:$16 sps:$4 sm:$0xff]  }
  0xf3   :  { %1822 = vmatpush1.bf16.msra.mxu0 %v12015_v11  ;;  %1863 = vmatpush1.bf16.msra.mxu1 %v12017_v12  ;;  %v12324_v11 = vld [vmem:[#allocation8] ss:$16 sps:$4 sm:$0xff]   ;;  %v12326_v12 = vld [vmem:[#allocation8 + $0x8] ss:$16 sps:$4 sm:$0xff]  }
  0xf4   :  { %1823 = vmatprep.subr.bf16.mxu0 %v12021_v13  ;;  %1864 = vmatprep.subr.bf16.mxu1 %v12025_v14  ;;  %v10167_v13 = vld [vmem:[%s13730_s0 + $0x1c] sm:$0xf]  ;;  %v12333_v14 = vld [vmem:[#allocation8 + $0x24] ss:$16 sps:$4 sm:$0xff]  }
  0xf7   :  { %1824 = vmatpush1.bf16.msra.mxu0 %v12027_v15  ;;  %1865 = vmatpush1.bf16.msra.mxu1 %v12031_v16  ;;  %v12335_v15 = vld [vmem:[#allocation8 + $0x2c] ss:$16 sps:$4 sm:$0xff]   ;;  %v12339_v16 = vld [vmem:[#allocation8 + $0x20] ss:$16 sps:$4 sm:$0xff]  }
  0xf8   :  { %1825 = vmatprep.subr.bf16.mxu0 %v12033_v17  ;;  %1866 = vmatprep.subr.bf16.mxu1 %v12037_v18  ;;  %v12341_v17 = vld [vmem:[#allocation8 + $0x28] ss:$16 sps:$4 sm:$0xff]   ;;  %v12345_v18 = vld [vmem:[#allocation8 + $0x44] ss:$16 sps:$4 sm:$0xff]  }
  0xfb   :  { %1826 = vmatpush1.bf16.msra.mxu0 %v12039_v19  ;;  %1867 = vmatpush1.bf16.msra.mxu1 %v12041_v20  ;;  %v12347_v19 = vld [vmem:[#allocation8 + $0x4c] ss:$16 sps:$4 sm:$0xff]   ;;  %v12353_v20 = vld [vmem:[#allocation8 + $0x40] ss:$16 sps:$4 sm:$0xff]  }
  0xfc   :  { %1827 = vmatprep.subr.bf16.mxu0 %v12045_v21  ;;  %1868 = vmatprep.subr.bf16.mxu1 %v12049_v22  ;;  %v12355_v21 = vld [vmem:[#allocation8 + $0x48] ss:$16 sps:$4 sm:$0xff]   ;;  %v12359_v22 = vld [vmem:[#allocation8 + $0x64] ss:$16 sps:$4 sm:$0xff]  }
  0xff   :  { %1828 = vmatpush1.bf16.msra.mxu0 %v12053_v23  ;;  %1869 = vmatpush1.bf16.msra.mxu1 %v12055_v24  ;;  %v12361_v23 = vld [vmem:[#allocation8 + $0x6c] ss:$16 sps:$4 sm:$0xff]   ;;  %v12365_v24 = vld [vmem:[#allocation8 + $0x60] ss:$16 sps:$4 sm:$0xff]  }
 0x100   :  { %1829 = vmatprep.subr.bf16.mxu0 %v12059_v25  ;;  %1870 = vmatprep.subr.bf16.mxu1 %v12061_v26  ;;  %v12367_v25 = vld [vmem:[#allocation8 + $0x68] ss:$16 sps:$4 sm:$0xff]   ;;  %v12371_v26 = vld [vmem:[#allocation8 + $0x84] ss:$16 sps:$4 sm:$0xff]  }
 0x103   :  { %1830 = vmatpush1.bf16.msra.mxu0 %v12063_v27  ;;  %1871 = vmatpush1.bf16.msra.mxu1 %v12065_v28  ;;  %v12373_v27 = vld [vmem:[#allocation8 + $0x8c] ss:$16 sps:$4 sm:$0xff]   ;;  %v12377_v28 = vld [vmem:[#allocation8 + $0x80] ss:$16 sps:$4 sm:$0xff]  }
 0x104   :  { %1831 = vmatprep.subr.bf16.mxu0 %v12067_v29  ;;  %1872 = vmatprep.subr.bf16.mxu1 %v12069_v30  ;;  %v12379_v29 = vld [vmem:[#allocation8 + $0x88] ss:$16 sps:$4 sm:$0xff]   ;;  %v12383_v30 = vld [vmem:[#allocation8 + $0xa4] ss:$16 sps:$4 sm:$0xff]  }
 0x107   :  { %1832 = vmatpush1.bf16.msra.mxu0 %v12075_v31  ;;  %1873 = vmatpush1.bf16.msra.mxu1 %v12077_v32  ;;  %v12385_v31 = vld [vmem:[#allocation8 + $0xac] ss:$16 sps:$4 sm:$0xff]   ;;  %v12389_v32 = vld [vmem:[#allocation8 + $0xa0] ss:$16 sps:$4 sm:$0xff]  }
 0x108   :  { %2120 = vmatprep.subr.bf16.mxu0 %v12268_v38  ;;  %2161 = vmatprep.subr.bf16.mxu1 %v12270_v39 }
 0x10a   :  { %1850 = vmatmul.mubr.bf16.vlgmr.msra.gmra.mrb[20].mxu0 %v10101_v42  ;;  %1891 = vmatmul.mubr.bf16.vlgmr.msra.gmra.mrb[20].mxu1 %v10101_v42  ;;  %v2516_v42 = vld [vmem:[#allocation3] sm:$0xf] }
 0x10b   :  { %2121 = vmatpush1.bf16.msra.mxu0 %v12274_v40  ;;  %2162 = vmatpush1.bf16.msra.mxu1 %v12276_v41 }
 0x10c   :  { %2122 = vmatprep.subr.bf16.mxu0 %v12283_v43  ;;  %2163 = vmatprep.subr.bf16.mxu1 %v12285_v44 }
 0x10d   :  { %2152 = vmatprep.mubr.bf16.mxu0 %v11859_v0  ;;  %2193 = vmatprep.mubr.bf16.mxu1 %v11859_v0 }
 0x10f   :  { %2123 = vmatpush1.bf16.msra.mxu0 %v12289_v45  ;;  %2164 = vmatpush1.bf16.msra.mxu1 %v12291_v46 }
 0x110   :  { %2124 = vmatprep.subr.bf16.mxu0 %v12295_v47  ;;  %2165 = vmatprep.subr.bf16.mxu1 %v12297_v48 }
 0x113   :  { %2125 = vmatpush1.bf16.msra.mxu0 %v11267_v49  ;;  %2166 = vmatpush1.bf16.msra.mxu1 %v11270_v50 }
 0x114   :  { %2126 = vmatprep.subr.bf16.mxu0 %v11275_v51  ;;  %2167 = vmatprep.subr.bf16.mxu1 %v11278_v52 }
 0x117   :  { %2127 = vmatpush1.bf16.msra.mxu0 %v11273_v53  ;;  %2168 = vmatpush1.bf16.msra.mxu1 %v11276_v54 }
 0x118   :  { %2128 = vmatprep.subr.bf16.mxu0 %v11281_v55  ;;  %2169 = vmatprep.subr.bf16.mxu1 %v11284_v56 }
 0x11b   :  { %2129 = vmatpush1.bf16.msra.mxu0 %v11279_v57  ;;  %2170 = vmatpush1.bf16.msra.mxu1 %v11282_v58 }
 0x11c   :  { %2130 = vmatprep.subr.bf16.mxu0 %v11287_v59  ;;  %2171 = vmatprep.subr.bf16.mxu1 %v11290_v60 }
 0x11f   :  { %2131 = vmatpush1.bf16.msra.mxu0 %v11285_v61  ;;  %2172 = vmatpush1.bf16.msra.mxu1 %v11288_v62 }
 0x120   :  { %2132 = vmatprep.subr.bf16.mxu0 %v11293_v63  ;;  %2173 = vmatprep.subr.bf16.mxu1 %v11296_v1 }
 0x123   :  { %2133 = vmatpush1.bf16.msra.mxu0 %v11291_v2  ;;  %2174 = vmatpush1.bf16.msra.mxu1 %v11294_v3 }
 0x124   :  { %2134 = vmatprep.subr.bf16.mxu0 %v11299_v4  ;;  %2175 = vmatprep.subr.bf16.mxu1 %v11302_v5 }
 0x127   :  { %2135 = vmatpush1.bf16.msra.mxu0 %v11297_v6  ;;  %2176 = vmatpush1.bf16.msra.mxu1 %v11300_v7 }
 0x128   :  { %2423 = vmatprep.subr.bf16.mxu0 %v12268_v38  ;;  %2464 = vmatprep.subr.bf16.mxu1 %v12270_v39  ;;  %v12407_v38 = vld [vmem:[#allocation8 + $0xe4] ss:$16 sps:$4 sm:$0xff]   ;;  %v12409_v39 = vld [vmem:[#allocation8 + $0xec] ss:$16 sps:$4 sm:$0xff]  }
 0x12a   :  { %2153 = vmatmul.mubr.bf16.vlgmr.msra.gmra.mrb[24].mxu0 %v10134_v8  ;;  %2194 = vmatmul.mubr.bf16.vlgmr.msra.gmra.mrb[24].mxu1 %v10134_v8 }
 0x12b   :  { %2424 = vmatpush1.bf16.msra.mxu0 %v12274_v40  ;;  %2465 = vmatpush1.bf16.msra.mxu1 %v12276_v41  ;;  %v12413_v40 = vld [vmem:[#allocation8 + $0xe0] ss:$16 sps:$4 sm:$0xff]   ;;  %v12415_v41 = vld [vmem:[#allocation8 + $0xe8] ss:$16 sps:$4 sm:$0xff]  }
 0x12c   :  { %2425 = vmatprep.subr.bf16.mxu0 %v12283_v43  ;;  %2466 = vmatprep.subr.bf16.mxu1 %v12285_v44  ;;  %v123_v43 = vlaneseq }
 0x12d   :  { %2455 = vmatprep.mubr.bf16.mxu0 %v11859_v0  ;;  %2496 = vmatprep.mubr.bf16.mxu1 %v11859_v0 }
 0x12e   :  { %v124_v44 = vshrl.u32 %v123_v43, 7 }
 0x12f   :  { %2426 = vmatpush1.bf16.msra.mxu0 %v12289_v45  ;;  %2467 = vmatpush1.bf16.msra.mxu1 %v12291_v46  ;;  %v121_v46 = vld [vmem:[%s13733_s3] sm:$0xf] }
 0x130   :  { %2427 = vmatprep.subr.bf16.mxu0 %v12295_v47  ;;  %2468 = vmatprep.subr.bf16.mxu1 %v12297_v48  ;;  %v12457_v45 = vsub.s32 0, %v124_v44  ;;  %v12462_v47 = vsub.s32 1, %v124_v44 }
 0x132   :  { %v126_v48 = vrot.slane %v121_v46, %v12457_v45 }
 0x133   :  { %2428 = vmatpush1.bf16.msra.mxu0 %v11267_v49  ;;  %2469 = vmatpush1.bf16.msra.mxu1 %v11270_v50  ;;  %v12465_v49 = vsub.s32 2, %v124_v44  ;;  %v130_v50 = vrot.slane %v121_v46, %v12462_v47 }
 0x134   :  { %2429 = vmatprep.subr.bf16.mxu0 %v11275_v51  ;;  %2470 = vmatprep.subr.bf16.mxu1 %v11278_v52 }
 0x137   :  { %2430 = vmatpush1.bf16.msra.mxu0 %v11273_v53  ;;  %2471 = vmatpush1.bf16.msra.mxu1 %v11276_v54  ;;  %v134_v54 = vrot.slane %v121_v46, %v12465_v49 }
 0x138   :  { %2431 = vmatprep.subr.bf16.mxu0 %v11281_v55  ;;  %2472 = vmatprep.subr.bf16.mxu1 %v11284_v56  ;;  %v12469_v56 = vsub.s32 3, %v124_v44 }
 0x13b   :  { %2432 = vmatpush1.bf16.msra.mxu0 %v11279_v57  ;;  %2473 = vmatpush1.bf16.msra.mxu1 %v11282_v58 }
 0x13c   :  { %2433 = vmatprep.subr.bf16.mxu0 %v11287_v59  ;;  %2474 = vmatprep.subr.bf16.mxu1 %v11290_v60 }
 0x13f   :  { %2434 = vmatpush1.bf16.msra.mxu0 %v11285_v61  ;;  %2475 = vmatpush1.bf16.msra.mxu1 %v11288_v62 }
 0x140   :  { %2435 = vmatprep.subr.bf16.mxu0 %v11293_v63  ;;  %2476 = vmatprep.subr.bf16.mxu1 %v11296_v1 }
 0x143   :  { %2436 = vmatpush1.bf16.msra.mxu0 %v11291_v2  ;;  %2477 = vmatpush1.bf16.msra.mxu1 %v11294_v3  ;;  %v138_v3 = vrot.slane %v121_v46, %v12469_v56 }
 0x144   :  { %2437 = vmatprep.subr.bf16.mxu0 %v11299_v4  ;;  %2478 = vmatprep.subr.bf16.mxu1 %v11302_v5 }
 0x147   :  { %2438 = vmatpush1.bf16.msra.mxu0 %v11297_v6  ;;  %2479 = vmatpush1.bf16.msra.mxu1 %v11300_v7 }
 0x148   :  { %2709 = vmatprep.subr.bf16.mxu0 %v12320_v9  ;;  %2750 = vmatprep.subr.bf16.mxu1 %v12322_v10 }
 0x14a   :  { %2456 = vmatmul.mubr.bf16.vlgmr.msra.gmra.mrb[28].mxu0 %v10167_v13  ;;  %2497 = vmatmul.mubr.bf16.vlgmr.msra.gmra.mrb[28].mxu1 %v10167_v13 }
 0x14b   :  { %2710 = vmatpush1.bf16.msra.mxu0 %v12324_v11  ;;  %2751 = vmatpush1.bf16.msra.mxu1 %v12326_v12 }
 0x14c   :  { %2711 = vmatprep.subr.bf16.mxu0 %v12333_v14  ;;  %2752 = vmatprep.subr.bf16.mxu1 %v12335_v15 }
 0x14d   :  { %2741 = vmatprep.mubr.bf16.mxu0 %v11859_v0  ;;  %2782 = vmatprep.mubr.bf16.mxu1 %v11859_v0 }
 0x14f   :  { %2712 = vmatpush1.bf16.msra.mxu0 %v12339_v16  ;;  %2753 = vmatpush1.bf16.msra.mxu1 %v12341_v17 }
 0x150   :  { %2713 = vmatprep.subr.bf16.mxu0 %v12345_v18  ;;  %2754 = vmatprep.subr.bf16.mxu1 %v12347_v19 }
 0x153   :  { %2714 = vmatpush1.bf16.msra.mxu0 %v12353_v20  ;;  %2755 = vmatpush1.bf16.msra.mxu1 %v12355_v21 }
 0x154   :  { %2715 = vmatprep.subr.bf16.mxu0 %v12359_v22  ;;  %2756 = vmatprep.subr.bf16.mxu1 %v12361_v23 }
 0x157   :  { %2716 = vmatpush1.bf16.msra.mxu0 %v12365_v24  ;;  %2757 = vmatpush1.bf16.msra.mxu1 %v12367_v25 }
 0x158   :  { %2717 = vmatprep.subr.bf16.mxu0 %v12371_v26  ;;  %2758 = vmatprep.subr.bf16.mxu1 %v12373_v27 }
 0x15b   :  { %2718 = vmatpush1.bf16.msra.mxu0 %v12377_v28  ;;  %2759 = vmatpush1.bf16.msra.mxu1 %v12379_v29 }
 0x15c   :  { %2719 = vmatprep.subr.bf16.mxu0 %v12383_v30  ;;  %2760 = vmatprep.subr.bf16.mxu1 %v12385_v31 }
 0x15f   :  { %2720 = vmatpush1.bf16.msra.mxu0 %v12389_v32  ;;  %2761 = vmatpush1.bf16.msra.mxu1 %v12391_v33 }
 0x160   :  { %2721 = vmatprep.subr.bf16.mxu0 %v12395_v34  ;;  %2762 = vmatprep.subr.bf16.mxu1 %v12397_v35 }
 0x163   :  { %2722 = vmatpush1.bf16.msra.mxu0 %v12401_v36  ;;  %2763 = vmatpush1.bf16.msra.mxu1 %v12403_v37 }
 0x164   :  { %2723 = vmatprep.subr.bf16.mxu0 %v12407_v38  ;;  %2764 = vmatprep.subr.bf16.mxu1 %v12409_v39 }
 0x167   :  { %2724 = vmatpush1.bf16.msra.mxu0 %v12413_v40  ;;  %2765 = vmatpush1.bf16.msra.mxu1 %v12415_v41 }
 0x168   :  { %3015 = vmatprep.subr.bf16.mxu0 %v12320_v9  ;;  %3056 = vmatprep.subr.bf16.mxu1 %v12322_v10 }
 0x16a   :  { %2742 = vmatmul.mubr.bf16.vlgmr.msra.gmra.mrb[0].mxu0 %v2516_v42  ;;  %2783 = vmatmul.mubr.bf16.vlgmr.msra.gmra.mrb[0].mxu1 %v2516_v42 }
 0x16b   :  { %3016 = vmatpush1.bf16.msra.mxu0 %v12324_v11  ;;  %3057 = vmatpush1.bf16.msra.mxu1 %v12326_v12 }
 0x16c   :  { %3017 = vmatprep.subr.bf16.mxu0 %v12333_v14  ;;  %3058 = vmatprep.subr.bf16.mxu1 %v12335_v15 }
 0x16d   :  { %3047 = vmatprep.mubr.bf16.mxu0 %v11859_v0  ;;  %3088 = vmatprep.mubr.bf16.mxu1 %v11859_v0 }
 0x16f   :  { %3018 = vmatpush1.bf16.msra.mxu0 %v12339_v16  ;;  %3059 = vmatpush1.bf16.msra.mxu1 %v12341_v17 }
 0x170   :  { %3019 = vmatprep.subr.bf16.mxu0 %v12345_v18  ;;  %3060 = vmatprep.subr.bf16.mxu1 %v12347_v19 }
 0x173   :  { %3020 = vmatpush1.bf16.msra.mxu0 %v12353_v20  ;;  %3061 = vmatpush1.bf16.msra.mxu1 %v12355_v21 }
 0x174   :  { %3021 = vmatprep.subr.bf16.mxu0 %v12359_v22  ;;  %3062 = vmatprep.subr.bf16.mxu1 %v12361_v23 }
 0x177   :  { %3022 = vmatpush1.bf16.msra.mxu0 %v12365_v24  ;;  %3063 = vmatpush1.bf16.msra.mxu1 %v12367_v25 }
 0x178   :  { %3023 = vmatprep.subr.bf16.mxu0 %v12371_v26  ;;  %3064 = vmatprep.subr.bf16.mxu1 %v12373_v27 }
 0x17b   :  { %3024 = vmatpush1.bf16.msra.mxu0 %v12377_v28  ;;  %3065 = vmatpush1.bf16.msra.mxu1 %v12379_v29 }
 0x17c   :  { %3025 = vmatprep.subr.bf16.mxu0 %v12383_v30  ;;  %3066 = vmatprep.subr.bf16.mxu1 %v12385_v31 }
 0x17f   :  { %3026 = vmatpush1.bf16.msra.mxu0 %v12389_v32  ;;  %3067 = vmatpush1.bf16.msra.mxu1 %v12391_v33 }
 0x180   :  { %3027 = vmatprep.subr.bf16.mxu0 %v12395_v34  ;;  %3068 = vmatprep.subr.bf16.mxu1 %v12397_v35 }
 0x183   :  { %3028 = vmatpush1.bf16.msra.mxu0 %v12401_v36  ;;  %3069 = vmatpush1.bf16.msra.mxu1 %v12403_v37 }
 0x184   :  { %3029 = vmatprep.subr.bf16.mxu0 %v12407_v38  ;;  %3070 = vmatprep.subr.bf16.mxu1 %v12409_v39 }
 0x187   :  { %3030 = vmatpush1.bf16.msra.mxu0 %v12413_v40  ;;  %3071 = vmatpush1.bf16.msra.mxu1 %v12415_v41 }
 0x188   :  { %3322 = vmatprep.subr.bf16.mxu0 %v12320_v9  ;;  %3363 = vmatprep.subr.bf16.mxu1 %v12322_v10 }
 0x23d   :  { %v2743_v51 = vpop.f32.mrb[0].mxu0  ;;  %v2784_v52 = vpop.f32.mrb[0].mxu1 }
 0x23e   :  { %v11006_v53 = vadd.f32 %v2743_v51, %v126_v48  ;;  %v2745_v55 = vpop.f32.mrb[1].mxu0  ;;  %v2786_v57 = vpop.f32.mrb[1].mxu1  ;;  %v11008_v2 = vadd.f32 %v2784_v52, %v134_v54 }
 0x23f   :  { %v11007_v58 = vadd.f32 %v2745_v55, %v130_v50  ;;  %v2747_v59 = vpop.f32.mrb[2].mxu0  ;;  %v2788_v60 = vpop.f32.mrb[2].mxu1  ;;  %v11009_v4 = vadd.f32 %v2786_v57, %v138_v3 }
 0x240   :  { %v2795_v61 = vmul.f32 0.5, %v11006_v53  ;;  %v2748_v62 = vpop.f32.mrb[3].mxu0  ;;  %v2789_v63 = vpop.f32.mrb[3].mxu1  ;;  %v423_v59 = vld [vmem:[%s13733_s3] sm:$0xf] }
 0x241   :  { %v2799_v1 = vmul.f32 0.5, %v11007_v58  ;;  %v2804_v5 = vmul.f32 0.5, %v11009_v4  ;;  %v428_v60 = vrot.slane %v423_v59, %v12457_v45 }
 0x242   :  { %11599 = vtanh.f32 %v2795_v61  ;;  %v432_v61 = vrot.slane %v423_v59, %v12462_v47 }
 0x243   :  { %11601 = vtanh.f32 %v2799_v1 }
 0x244   :  { %11603 = vtanh.f32 %v11008_v2  ;;  %v436_v2 = vrot.slane %v423_v59, %v12465_v49 }
 0x245   :  { %11605 = vtanh.f32 %v2804_v5 }
 0x24c   :  { %v11600_v6 = vpop.eup %11599 }
 0x24d   :  { %v11602_v7 = vpop.eup %11601  ;;  %v2797_v8 = vmul.f32 0.5, %v11600_v6 }
 0x24e   :  { %v2801_v13 = vmul.f32 0.5, %v11602_v7  ;;  %v11604_v43 = vpop.eup %11603 }
 0x24f   :  { %v2798_v42 = vadd.f32 0.5, %v2797_v8  ;;  %v11606_v52 = vpop.eup %11605 }
 0x250   :  { %v2802_v44 = vadd.f32 0.5, %v2801_v13  ;;  %v2806_v46 = vmul.f32 0.5, %v11606_v52 }
 0x251   :  { %v2810_v48 = vmul.f32 %v11604_v43, %v2798_v42  ;;  %v440_v43 = vrot.slane %v423_v59, %v12469_v56 }
 0x252   :  { %v2809_v50 = vmul.f32 0.0, %v2802_v44  ;;  %v2807_v53 = vadd.f32 0.5, %v2806_v46 }
 0x254   :  { %v12472_v51 = vadd.f32 %v2810_v48, %v2809_v50 }
 0x256   :  { %11607 = vtanh.f32 %v12472_v51 }
 0x260   :  { %v11608_v54 = vpop.eup %11607 }
 0x261   :  { %v2813_v55 = vmul.f32 %v11608_v54, %v2807_v53 }
 0x263   :  { %v2814_v57 = vpack.c.bf16 %v2813_v55, %v2813_v55 }
 0x265   :  { %2816 = vst [vmem:[#allocation3] sm:$0xf] %v2814_v57  ;;  %2817 = vst [vmem:[#allocation5] sm:$0xf] %v2814_v57 }
 0x26c   :  { %v2822_v58 = vld [vmem:[#allocation3] sm:$0xf] }
 0x26d   :  { %3048 = vmatmul.mubr.bf16.vlgmr.msra.gmra.mrb[4].mxu0 %v2822_v58  ;;  %3089 = vmatmul.mubr.bf16.vlgmr.msra.gmra.mrb[4].mxu1 %v2822_v58 }
 0x26e   :  { %3323 = vmatpush1.bf16.msra.mxu0 %v12324_v11  ;;  %3364 = vmatpush1.bf16.msra.mxu1 %v12326_v12 }
 0x26f   :  { %3324 = vmatprep.subr.bf16.mxu0 %v12333_v14  ;;  %3365 = vmatprep.subr.bf16.mxu1 %v12335_v15 }
 0x270   :  { %3354 = vmatprep.mubr.bf16.mxu0 %v11859_v0  ;;  %3395 = vmatprep.mubr.bf16.mxu1 %v11859_v0 }
 0x272   :  { %3325 = vmatpush1.bf16.msra.mxu0 %v12339_v16  ;;  %3366 = vmatpush1.bf16.msra.mxu1 %v12341_v17 }
 0x273   :  { %3326 = vmatprep.subr.bf16.mxu0 %v12345_v18  ;;  %3367 = vmatprep.subr.bf16.mxu1 %v12347_v19 }
 0x276   :  { %3327 = vmatpush1.bf16.msra.mxu0 %v12353_v20  ;;  %3368 = vmatpush1.bf16.msra.mxu1 %v12355_v21 }
 0x277   :  { %3328 = vmatprep.subr.bf16.mxu0 %v12359_v22  ;;  %3369 = vmatprep.subr.bf16.mxu1 %v12361_v23 }
 0x27a   :  { %3329 = vmatpush1.bf16.msra.mxu0 %v12365_v24  ;;  %3370 = vmatpush1.bf16.msra.mxu1 %v12367_v25 }
 0x27b   :  { %3330 = vmatprep.subr.bf16.mxu0 %v12371_v26  ;;  %3371 = vmatprep.subr.bf16.mxu1 %v12373_v27 }
 0x27e   :  { %3331 = vmatpush1.bf16.msra.mxu0 %v12377_v28  ;;  %3372 = vmatpush1.bf16.msra.mxu1 %v12379_v29 }
 0x27f   :  { %3332 = vmatprep.subr.bf16.mxu0 %v12383_v30  ;;  %3373 = vmatprep.subr.bf16.mxu1 %v12385_v31 }
 0x282   :  { %3333 = vmatpush1.bf16.msra.mxu0 %v12389_v32  ;;  %3374 = vmatpush1.bf16.msra.mxu1 %v12391_v33 }
 0x283   :  { %3334 = vmatprep.subr.bf16.mxu0 %v12395_v34  ;;  %3375 = vmatprep.subr.bf16.mxu1 %v12397_v35 }
 0x286   :  { %3335 = vmatpush1.bf16.msra.mxu0 %v12401_v36  ;;  %3376 = vmatpush1.bf16.msra.mxu1 %v12403_v37 }
 0x287   :  { %3336 = vmatprep.subr.bf16.mxu0 %v12407_v38  ;;  %3377 = vmatprep.subr.bf16.mxu1 %v12409_v39 }
 0x28a   :  { %3337 = vmatpush1.bf16.msra.mxu0 %v12413_v40  ;;  %3378 = vmatpush1.bf16.msra.mxu1 %v12415_v41 }
 0x28b   :  { %3629 = vmatprep.subr.bf16.mxu0 %v12320_v9  ;;  %3670 = vmatprep.subr.bf16.mxu1 %v12322_v10 }
 0x340   :  { %v3049_v62 = vpop.f32.mrb[4].mxu0  ;;  %v3090_v63 = vpop.f32.mrb[4].mxu1 }
 0x341   :  { %v11010_v1 = vadd.f32 %v3049_v62, %v428_v60  ;;  %v3051_v3 = vpop.f32.mrb[5].mxu0  ;;  %v3092_v4 = vpop.f32.mrb[5].mxu1  ;;  %v11012_v42 = vadd.f32 %v3090_v63, %v436_v2 }
 0x342   :  { %v11011_v5 = vadd.f32 %v3051_v3, %v432_v61  ;;  %v3053_v6 = vpop.f32.mrb[6].mxu0  ;;  %v3094_v9 = vpop.f32.mrb[6].mxu1  ;;  %v11013_v44 = vadd.f32 %v3092_v4, %v440_v43  ;;  %v12569_v43 = vld [vmem:[#allocation8] ss:$16 sps:$4 sm:$0xff]  }
 0x343   :  { %v3101_v7 = vmul.f32 0.5, %v11010_v1  ;;  %v3054_v10 = vpop.f32.mrb[7].mxu0  ;;  %v3095_v8 = vpop.f32.mrb[7].mxu1 }
 0x344   :  { %v3105_v13 = vmul.f32 0.5, %v11011_v5  ;;  %v3110_v48 = vmul.f32 0.5, %v11013_v44  ;;  %v12571_v44 = vld [vmem:[#allocation8 + $0x8] ss:$16 sps:$4 sm:$0xff]  }
 0x345   :  { %11609 = vtanh.f32 %v3101_v7 }
 0x346   :  { %11611 = vtanh.f32 %v3105_v13  ;;  %v12565_v13 = vld [vmem:[#allocation8 + $0x4] ss:$16 sps:$4 sm:$0xff]  }
 0x347   :  { %11613 = vtanh.f32 %v11012_v42  ;;  %v12567_v42 = vld [vmem:[#allocation8 + $0xc] ss:$16 sps:$4 sm:$0xff]  }
 0x348   :  { %11615 = vtanh.f32 %v3110_v48  ;;  %v12577_v48 = vld [vmem:[#allocation8 + $0x24] ss:$16 sps:$4 sm:$0xff]  }
 0x34f   :  { %v11610_v50 = vpop.eup %11609 }
 0x350   :  { %v11612_v52 = vpop.eup %11611  ;;  %v3103_v46 = vmul.f32 0.5, %v11610_v50  ;;  %v12579_v50 = vld [vmem:[#allocation8 + $0x2c] ss:$16 sps:$4 sm:$0xff]  }
 0x351   :  { %v3107_v53 = vmul.f32 0.5, %v11612_v52  ;;  %v11614_v55 = vpop.eup %11613  ;;  %v12581_v52 = vld [vmem:[#allocation8 + $0x20] ss:$16 sps:$4 sm:$0xff]  }
 0x352   :  { %v3104_v54 = vadd.f32 0.5, %v3103_v46  ;;  %v11616_v59 = vpop.eup %11615  ;;  %v12583_v46 = vld [vmem:[#allocation8 + $0x28] ss:$16 sps:$4 sm:$0xff]  }
 0x353   :  { %v3108_v57 = vadd.f32 0.5, %v3107_v53  ;;  %v3112_v62 = vmul.f32 0.5, %v11616_v59  ;;  %v12589_v53 = vld [vmem:[#allocation8 + $0x44] ss:$16 sps:$4 sm:$0xff]   ;;  %v12607_v59 = vld [vmem:[#allocation8 + $0x68] ss:$16 sps:$4 sm:$0xff]  }
 0x354   :  { %v3116_v58 = vmul.f32 %v11614_v55, %v3104_v54  ;;  %v12591_v54 = vld [vmem:[#allocation8 + $0x4c] ss:$16 sps:$4 sm:$0xff]   ;;  %v12593_v55 = vld [vmem:[#allocation8 + $0x40] ss:$16 sps:$4 sm:$0xff]  }
 0x355   :  { %v3115_v60 = vmul.f32 %v3108_v57, %v12472_v51  ;;  %v3113_v63 = vadd.f32 0.5, %v3112_v62  ;;  %v12595_v57 = vld [vmem:[#allocation8 + $0x48] ss:$16 sps:$4 sm:$0xff]   ;;  %v12613_v62 = vld [vmem:[#allocation8 + $0x84] ss:$16 sps:$4 sm:$0xff]  }
 0x357   :  { %v12517_v61 = vadd.f32 %v3116_v58, %v3115_v60  ;;  %v12601_v58 = vld [vmem:[#allocation8 + $0x64] ss:$16 sps:$4 sm:$0xff]   ;;  %v12603_v60 = vld [vmem:[#allocation8 + $0x6c] ss:$16 sps:$4 sm:$0xff]  }
 0x359   :  { %11617 = vtanh.f32 %v12517_v61 }
 0x363   :  { %v11618_v1 = vpop.eup %11617 }
 0x364   :  { %v3119_v2 = vmul.f32 %v11618_v1, %v3113_v63  ;;  %v12615_v63 = vld [vmem:[#allocation8 + $0x8c] ss:$16 sps:$4 sm:$0xff]   ;;  %v12617_v1 = vld [vmem:[#allocation8 + $0x80] ss:$16 sps:$4 sm:$0xff]  }
 0x366   :  { %v3120_v3 = vpack.c.bf16 %v3119_v2, %v3119_v2  ;;  %v12619_v2 = vld [vmem:[#allocation8 + $0x88] ss:$16 sps:$4 sm:$0xff]  }
 0x368   :  { %3122 = vst [vmem:[#allocation3] sm:$0xf] %v3120_v3  ;;  %3124 = vst [vmem:[#allocation5 + $0x4] sm:$0xf] %v3120_v3  ;;  %v12625_v3 = vld [vmem:[#allocation8 + $0xa4] ss:$16 sps:$4 sm:$0xff]  }
 0x36f   :  { %v3129_v4 = vld [vmem:[#allocation3] sm:$0xf] }
 0x370   :  { %3355 = vmatmul.mubr.bf16.vlgmr.msra.gmra.mrb[8].mxu0 %v3129_v4  ;;  %3396 = vmatmul.mubr.bf16.vlgmr.msra.gmra.mrb[8].mxu1 %v3129_v4  ;;  %v12627_v4 = vld [vmem:[#allocation8 + $0xac] ss:$16 sps:$4 sm:$0xff]  }
 0x371   :  { %3630 = vmatpush1.bf16.msra.mxu0 %v12324_v11  ;;  %3671 = vmatpush1.bf16.msra.mxu1 %v12326_v12  ;;  %v726_v11 = vld [vmem:[%s13733_s3] sm:$0xf] }
 0x372   :  { %3631 = vmatprep.subr.bf16.mxu0 %v12333_v14  ;;  %3672 = vmatprep.subr.bf16.mxu1 %v12335_v15  ;;  %v731_v12 = vrot.slane %v726_v11, %v12457_v45  ;;  %v735_v14 = vrot.slane %v726_v11, %v12462_v47 }
 0x373   :  { %3661 = vmatprep.mubr.bf16.mxu0 %v11859_v0  ;;  %3702 = vmatprep.mubr.bf16.mxu1 %v11859_v0 }
 0x375   :  { %3632 = vmatpush1.bf16.msra.mxu0 %v12339_v16  ;;  %3673 = vmatpush1.bf16.msra.mxu1 %v12341_v17 }
 0x376   :  { %3633 = vmatprep.subr.bf16.mxu0 %v12345_v18  ;;  %3674 = vmatprep.subr.bf16.mxu1 %v12347_v19  ;;  %v739_v18 = vrot.slane %v726_v11, %v12465_v49 }
 0x379   :  { %3634 = vmatpush1.bf16.msra.mxu0 %v12353_v20  ;;  %3675 = vmatpush1.bf16.msra.mxu1 %v12355_v21 }
 0x37a   :  { %3635 = vmatprep.subr.bf16.mxu0 %v12359_v22  ;;  %3676 = vmatprep.subr.bf16.mxu1 %v12361_v23 }
 0x37d   :  { %3636 = vmatpush1.bf16.msra.mxu0 %v12365_v24  ;;  %3677 = vmatpush1.bf16.msra.mxu1 %v12367_v25 }
 0x37e   :  { %3637 = vmatprep.subr.bf16.mxu0 %v12371_v26  ;;  %3678 = vmatprep.subr.bf16.mxu1 %v12373_v27 }
 0x381   :  { %3638 = vmatpush1.bf16.msra.mxu0 %v12377_v28  ;;  %3679 = vmatpush1.bf16.msra.mxu1 %v12379_v29  ;;  %v743_v29 = vrot.slane %v726_v11, %v12469_v56  ;;  %v12629_v11 = vld [vmem:[#allocation8 + $0xa0] ss:$16 sps:$4 sm:$0xff]  }
 0x382   :  { %3639 = vmatprep.subr.bf16.mxu0 %v12383_v30  ;;  %3680 = vmatprep.subr.bf16.mxu1 %v12385_v31 }
 0x385   :  { %3640 = vmatpush1.bf16.msra.mxu0 %v12389_v32  ;;  %3681 = vmatpush1.bf16.msra.mxu1 %v12391_v33 }
 0x386   :  { %3641 = vmatprep.subr.bf16.mxu0 %v12395_v34  ;;  %3682 = vmatprep.subr.bf16.mxu1 %v12397_v35 }
 0x389   :  { %3642 = vmatpush1.bf16.msra.mxu0 %v12401_v36  ;;  %3683 = vmatpush1.bf16.msra.mxu1 %v12403_v37 }
 0x38a   :  { %3643 = vmatprep.subr.bf16.mxu0 %v12407_v38  ;;  %3684 = vmatprep.subr.bf16.mxu1 %v12409_v39 }
 0x38d   :  { %3644 = vmatpush1.bf16.msra.mxu0 %v12413_v40  ;;  %3685 = vmatpush1.bf16.msra.mxu1 %v12415_v41 }
 0x38e   :  { %3936 = vmatprep.subr.bf16.mxu0 %v12565_v13  ;;  %3977 = vmatprep.subr.bf16.mxu1 %v12567_v42 }
 0x443   :  { %v3356_v15 = vpop.f32.mrb[8].mxu0  ;;  %v3397_v16 = vpop.f32.mrb[8].mxu1 }
 0x444   :  { %v11014_v17 = vadd.f32 %v3356_v15, %v731_v12  ;;  %v3358_v19 = vpop.f32.mrb[9].mxu0  ;;  %v3399_v20 = vpop.f32.mrb[9].mxu1  ;;  %v11016_v28 = vadd.f32 %v3397_v16, %v739_v18  ;;  %v12631_v12 = vld [vmem:[#allocation8 + $0xa8] ss:$16 sps:$4 sm:$0xff]   ;;  %v12639_v15 = vld [vmem:[#allocation8 + $0xcc] ss:$16 sps:$4 sm:$0xff]  }
 0x445   :  { %v11015_v21 = vadd.f32 %v3358_v19, %v735_v14  ;;  %v3360_v22 = vpop.f32.mrb[10].mxu0  ;;  %v3401_v23 = vpop.f32.mrb[10].mxu1  ;;  %v11017_v30 = vadd.f32 %v3399_v20, %v743_v29  ;;  %v12637_v14 = vld [vmem:[#allocation8 + $0xc4] ss:$16 sps:$4 sm:$0xff]   ;;  %v12641_v16 = vld [vmem:[#allocation8 + $0xc0] ss:$16 sps:$4 sm:$0xff]  }
 0x446   :  { %v3408_v24 = vmul.f32 0.5, %v11014_v17  ;;  %v3361_v25 = vpop.f32.mrb[11].mxu0  ;;  %v3402_v26 = vpop.f32.mrb[11].mxu1  ;;  %v12643_v17 = vld [vmem:[#allocation8 + $0xc8] ss:$16 sps:$4 sm:$0xff]  }
 0x447   :  { %v3412_v27 = vmul.f32 0.5, %v11015_v21  ;;  %v3417_v31 = vmul.f32 0.5, %v11017_v30  ;;  %v12647_v18 = vld [vmem:[#allocation8 + $0xe4] ss:$16 sps:$4 sm:$0xff]   ;;  %v12649_v19 = vld [vmem:[#allocation8 + $0xec] ss:$16 sps:$4 sm:$0xff]  }
 0x448   :  { %11619 = vtanh.f32 %v3408_v24  ;;  %v12653_v20 = vld [vmem:[#allocation8 + $0xe0] ss:$16 sps:$4 sm:$0xff]   ;;  %v12655_v21 = vld [vmem:[#allocation8 + $0xe8] ss:$16 sps:$4 sm:$0xff]   ;;  %v1029_v22 = vld [vmem:[%s13733_s3] sm:$0xf] }
 0x449   :  { %11621 = vtanh.f32 %v3412_v27  ;;  %v1034_v23 = vrot.slane %v1029_v22, %v12457_v45  ;;  %v1038_v24 = vrot.slane %v1029_v22, %v12462_v47 }
 0x44a   :  { %11623 = vtanh.f32 %v11016_v28  ;;  %v1042_v28 = vrot.slane %v1029_v22, %v12465_v49 }
 0x44b   :  { %11625 = vtanh.f32 %v3417_v31 }
 0x452   :  { %v11620_v32 = vpop.eup %11619 }
 0x453   :  { %v11622_v33 = vpop.eup %11621  ;;  %v3410_v34 = vmul.f32 0.5, %v11620_v32 }
 0x454   :  { %v3414_v35 = vmul.f32 0.5, %v11622_v33  ;;  %v11624_v37 = vpop.eup %11623 }
 0x455   :  { %v3411_v36 = vadd.f32 0.5, %v3410_v34  ;;  %v11626_v51 = vpop.eup %11625 }
 0x456   :  { %v3415_v38 = vadd.f32 0.5, %v3414_v35  ;;  %v3419_v5 = vmul.f32 0.5, %v11626_v51 }
 0x457   :  { %v3423_v39 = vmul.f32 %v11624_v37, %v3411_v36 }
 0x458   :  { %v3422_v40 = vmul.f32 %v3415_v38, %v12517_v61  ;;  %v3420_v6 = vadd.f32 0.5, %v3419_v5  ;;  %v12605_v61 = vld [vmem:[#allocation8 + $0x60] ss:$16 sps:$4 sm:$0xff]  }
 0x45a   :  { %v12560_v41 = vadd.f32 %v3423_v39, %v3422_v40  ;;  %v1046_v39 = vrot.slane %v1029_v22, %v12469_v56 }
 0x45c   :  { %11627 = vtanh.f32 %v12560_v41 }
 0x466   :  { %v11628_v9 = vpop.eup %11627 }
 0x467   :  { %v3426_v7 = vmul.f32 %v11628_v9, %v3420_v6 }
 0x469   :  { %v3427_v10 = vpack.c.bf16 %v3426_v7, %v3426_v7 }
 0x46b   :  { %3429 = vst [vmem:[#allocation3] sm:$0xf] %v3427_v10  ;;  %3431 = vst [vmem:[#allocation5 + $0x8] sm:$0xf] %v3427_v10 }
 0x472   :  { %v3436_v8 = vld [vmem:[#allocation3] sm:$0xf] }
 0x473   :  { %3662 = vmatmul.mubr.bf16.vlgmr.msra.gmra.mrb[12].mxu0 %v3436_v8  ;;  %3703 = vmatmul.mubr.bf16.vlgmr.msra.gmra.mrb[12].mxu1 %v3436_v8 }
 0x474   :  { %3968 = vmatprep.mubr.bf16.mxu0 %v11859_v0  ;;  %4009 = vmatprep.mubr.bf16.mxu1 %v11859_v0 }
 0x475   :  { %3937 = vmatpush1.bf16.msra.mxu0 %v12569_v43  ;;  %3978 = vmatpush1.bf16.msra.mxu1 %v12571_v44 }
 0x476   :  { %3938 = vmatprep.subr.bf16.mxu0 %v12577_v48  ;;  %3979 = vmatprep.subr.bf16.mxu1 %v12579_v50 }
 0x479   :  { %3939 = vmatpush1.bf16.msra.mxu0 %v12581_v52  ;;  %3980 = vmatpush1.bf16.msra.mxu1 %v12583_v46 }
 0x47a   :  { %3940 = vmatprep.subr.bf16.mxu0 %v12589_v53  ;;  %3981 = vmatprep.subr.bf16.mxu1 %v12591_v54 }
 0x47d   :  { %3941 = vmatpush1.bf16.msra.mxu0 %v12593_v55  ;;  %3982 = vmatpush1.bf16.msra.mxu1 %v12595_v57 }
 0x47e   :  { %3942 = vmatprep.subr.bf16.mxu0 %v12601_v58  ;;  %3983 = vmatprep.subr.bf16.mxu1 %v12603_v60 }
 0x481   :  { %3943 = vmatpush1.bf16.msra.mxu0 %v12605_v61  ;;  %3984 = vmatpush1.bf16.msra.mxu1 %v12607_v59 }
 0x482   :  { %3944 = vmatprep.subr.bf16.mxu0 %v12613_v62  ;;  %3985 = vmatprep.subr.bf16.mxu1 %v12615_v63 }
 0x485   :  { %3945 = vmatpush1.bf16.msra.mxu0 %v12617_v1  ;;  %3986 = vmatpush1.bf16.msra.mxu1 %v12619_v2 }
 0x486   :  { %3946 = vmatprep.subr.bf16.mxu0 %v12625_v3  ;;  %3987 = vmatprep.subr.bf16.mxu1 %v12627_v4 }
 0x489   :  { %3947 = vmatpush1.bf16.msra.mxu0 %v12629_v11  ;;  %3988 = vmatpush1.bf16.msra.mxu1 %v12631_v12 }
 0x48a   :  { %3948 = vmatprep.subr.bf16.mxu0 %v12637_v14  ;;  %3989 = vmatprep.subr.bf16.mxu1 %v12639_v15 }
 0x48d   :  { %3949 = vmatpush1.bf16.msra.mxu0 %v12641_v16  ;;  %3990 = vmatpush1.bf16.msra.mxu1 %v12643_v17 }
 0x48e   :  { %3950 = vmatprep.subr.bf16.mxu0 %v12647_v18  ;;  %3991 = vmatprep.subr.bf16.mxu1 %v12649_v19 }
 0x491   :  { %3951 = vmatpush1.bf16.msra.mxu0 %v12653_v20  ;;  %3992 = vmatpush1.bf16.msra.mxu1 %v12655_v21 }
 0x492   :  { %4243 = vmatprep.subr.bf16.mxu0 %v12565_v13  ;;  %4284 = vmatprep.subr.bf16.mxu1 %v12567_v42 }
 0x546   :  { %v3663_v25 = vpop.f32.mrb[12].mxu0  ;;  %v3704_v26 = vpop.f32.mrb[12].mxu1 }
 0x547   :  { %v11018_v27 = vadd.f32 %v3663_v25, %v1034_v23  ;;  %v3665_v29 = vpop.f32.mrb[13].mxu0  ;;  %v3706_v30 = vpop.f32.mrb[13].mxu1  ;;  %v11020_v38 = vadd.f32 %v3704_v26, %v1042_v28 }
 0x548   :  { %v11019_v31 = vadd.f32 %v3665_v29, %v1038_v24  ;;  %v3667_v32 = vpop.f32.mrb[14].mxu0  ;;  %v3708_v33 = vpop.f32.mrb[14].mxu1  ;;  %v11021_v40 = vadd.f32 %v3706_v30, %v1046_v39 }
 0x549   :  { %v3715_v34 = vmul.f32 0.5, %v11018_v27  ;;  %v3668_v35 = vpop.f32.mrb[15].mxu0  ;;  %v3709_v36 = vpop.f32.mrb[15].mxu1 }
 0x54a   :  { %v3719_v37 = vmul.f32 0.5, %v11019_v31  ;;  %v3724_v51 = vmul.f32 0.5, %v11021_v40 }
 0x54b   :  { %11629 = vtanh.f32 %v3715_v34 }
 0x54c   :  { %11631 = vtanh.f32 %v3719_v37 }
 0x54d   :  { %11633 = vtanh.f32 %v11020_v38 }
 0x54e   :  { %11635 = vtanh.f32 %v3724_v51 }
 0x555   :  { %v11630_v5 = vpop.eup %11629 }
 0x556   :  { %v11632_v6 = vpop.eup %11631  ;;  %v3717_v9 = vmul.f32 0.5, %v11630_v5 }
 0x557   :  { %v3721_v7 = vmul.f32 0.5, %v11632_v6  ;;  %v11634_v8 = vpop.eup %11633 }
 0x558   :  { %v3718_v10 = vadd.f32 0.5, %v3717_v9  ;;  %v11636_v22 = vpop.eup %11635 }
 0x559   :  { %v3722_v23 = vadd.f32 0.5, %v3721_v7  ;;  %v3726_v26 = vmul.f32 0.5, %v11636_v22 }
 0x55a   :  { %v3730_v24 = vmul.f32 %v11634_v8, %v3718_v10 }
 0x55b   :  { %v3729_v25 = vmul.f32 %v3722_v23, %v12560_v41  ;;  %v3727_v28 = vadd.f32 0.5, %v3726_v26  ;;  %v1332_v41 = vld [vmem:[%s13733_s3] sm:$0xf] }
 0x55c   :  { %v1337_v33 = vrot.slane %v1332_v41, %v12457_v45  ;;  %v1341_v34 = vrot.slane %v1332_v41, %v12462_v47  ;;  %v1345_v38 = vrot.slane %v1332_v41, %v12465_v49 }
 0x55d   :  { %v12671_v27 = vadd.f32 %v3730_v24, %v3729_v25  ;;  %v1349_v24 = vrot.slane %v1332_v41, %v12469_v56 }
 0x55f   :  { %11637 = vtanh.f32 %v12671_v27 }
 0x569   :  { %v11638_v29 = vpop.eup %11637 }
 0x56a   :  { %v3733_v30 = vmul.f32 %v11638_v29, %v3727_v28 }
 0x56c   :  { %v3734_v31 = vpack.c.bf16 %v3733_v30, %v3733_v30 }
 0x56e   :  { %3736 = vst [vmem:[#allocation3] sm:$0xf] %v3734_v31  ;;  %3738 = vst [vmem:[#allocation5 + $0xc] sm:$0xf] %v3734_v31 }
 0x575   :  { %v3743_v32 = vld [vmem:[#allocation3] sm:$0xf] }
 0x576   :  { %3969 = vmatmul.mubr.bf16.vlgmr.msra.gmra.mrb[16].mxu0 %v3743_v32  ;;  %4010 = vmatmul.mubr.bf16.vlgmr.msra.gmra.mrb[16].mxu1 %v3743_v32 }
 0x577   :  { %4244 = vmatpush1.bf16.msra.mxu0 %v12569_v43  ;;  %4285 = vmatpush1.bf16.msra.mxu1 %v12571_v44 }
 0x578   :  { %4245 = vmatprep.subr.bf16.mxu0 %v12577_v48  ;;  %4286 = vmatprep.subr.bf16.mxu1 %v12579_v50 }
 0x579   :  { %4275 = vmatprep.mubr.bf16.mxu0 %v11859_v0  ;;  %4316 = vmatprep.mubr.bf16.mxu1 %v11859_v0 }
 0x57b   :  { %4246 = vmatpush1.bf16.msra.mxu0 %v12581_v52  ;;  %4287 = vmatpush1.bf16.msra.mxu1 %v12583_v46 }
 0x57c   :  { %4247 = vmatprep.subr.bf16.mxu0 %v12589_v53  ;;  %4288 = vmatprep.subr.bf16.mxu1 %v12591_v54 }
 0x57f   :  { %4248 = vmatpush1.bf16.msra.mxu0 %v12593_v55  ;;  %4289 = vmatpush1.bf16.msra.mxu1 %v12595_v57 }
 0x580   :  { %4249 = vmatprep.subr.bf16.mxu0 %v12601_v58  ;;  %4290 = vmatprep.subr.bf16.mxu1 %v12603_v60 }
 0x583   :  { %4250 = vmatpush1.bf16.msra.mxu0 %v12605_v61  ;;  %4291 = vmatpush1.bf16.msra.mxu1 %v12607_v59 }
 0x584   :  { %4251 = vmatprep.subr.bf16.mxu0 %v12613_v62  ;;  %4292 = vmatprep.subr.bf16.mxu1 %v12615_v63 }
 0x587   :  { %4252 = vmatpush1.bf16.msra.mxu0 %v12617_v1  ;;  %4293 = vmatpush1.bf16.msra.mxu1 %v12619_v2 }
 0x588   :  { %4253 = vmatprep.subr.bf16.mxu0 %v12625_v3  ;;  %4294 = vmatprep.subr.bf16.mxu1 %v12627_v4 }
 0x58b   :  { %4254 = vmatpush1.bf16.msra.mxu0 %v12629_v11  ;;  %4295 = vmatpush1.bf16.msra.mxu1 %v12631_v12 }
 0x58c   :  { %4255 = vmatprep.subr.bf16.mxu0 %v12637_v14  ;;  %4296 = vmatprep.subr.bf16.mxu1 %v12639_v15 }
 0x58f   :  { %4256 = vmatpush1.bf16.msra.mxu0 %v12641_v16  ;;  %4297 = vmatpush1.bf16.msra.mxu1 %v12643_v17 }
 0x590   :  { %4257 = vmatprep.subr.bf16.mxu0 %v12647_v18  ;;  %4298 = vmatprep.subr.bf16.mxu1 %v12649_v19 }
 0x593   :  { %4258 = vmatpush1.bf16.msra.mxu0 %v12653_v20  ;;  %4299 = vmatpush1.bf16.msra.mxu1 %v12655_v21 }
 0x594   :  { %4550 = vmatprep.subr.bf16.mxu0 %v12565_v13  ;;  %4591 = vmatprep.subr.bf16.mxu1 %v12567_v42 }
 0x649   :  { %v3970_v35 = vpop.f32.mrb[16].mxu0  ;;  %v4011_v36 = vpop.f32.mrb[16].mxu1 }
 0x64a   :  { %v11022_v37 = vadd.f32 %v3970_v35, %v1337_v33  ;;  %v3972_v39 = vpop.f32.mrb[17].mxu0  ;;  %v4013_v40 = vpop.f32.mrb[17].mxu1  ;;  %v11024_v23 = vadd.f32 %v4011_v36, %v1345_v38 }
 0x64b   :  { %v11023_v51 = vadd.f32 %v3972_v39, %v1341_v34  ;;  %v3974_v5 = vpop.f32.mrb[18].mxu0  ;;  %v4015_v6 = vpop.f32.mrb[18].mxu1  ;;  %v11025_v25 = vadd.f32 %v4013_v40, %v1349_v24 }
 0x64c   :  { %v4022_v9 = vmul.f32 0.5, %v11022_v37  ;;  %v3975_v7 = vpop.f32.mrb[19].mxu0  ;;  %v4016_v10 = vpop.f32.mrb[19].mxu1 }
 0x64d   :  { %v4026_v8 = vmul.f32 0.5, %v11023_v51  ;;  %v4031_v22 = vmul.f32 0.5, %v11025_v25 }
 0x64e   :  { %11639 = vtanh.f32 %v4022_v9 }
 0x64f   :  { %11641 = vtanh.f32 %v4026_v8 }
 0x650   :  { %11643 = vtanh.f32 %v11024_v23 }
 0x651   :  { %11645 = vtanh.f32 %v4031_v22 }
 0x658   :  { %v11640_v26 = vpop.eup %11639 }
 0x659   :  { %v11642_v28 = vpop.eup %11641  ;;  %v4024_v29 = vmul.f32 0.5, %v11640_v26 }
 0x65a   :  { %v4028_v30 = vmul.f32 0.5, %v11642_v28  ;;  %v11644_v32 = vpop.eup %11643 }
 0x65b   :  { %v4025_v31 = vadd.f32 0.5, %v4024_v29  ;;  %v11646_v41 = vpop.eup %11645 }
 0x65c   :  { %v4029_v33 = vadd.f32 0.5, %v4028_v30  ;;  %v4033_v36 = vmul.f32 0.5, %v11646_v41 }
 0x65d   :  { %v4037_v34 = vmul.f32 %v11644_v32, %v4025_v31 }
 0x65e   :  { %v4036_v35 = vmul.f32 %v4029_v33, %v12671_v27  ;;  %v4034_v38 = vadd.f32 0.5, %v4033_v36  ;;  %v1635_v27 = vld [vmem:[%s13733_s3] sm:$0xf] }
 0x65f   :  { %v1640_v6 = vrot.slane %v1635_v27, %v12457_v45  ;;  %v1644_v9 = vrot.slane %v1635_v27, %v12462_v47  ;;  %v1648_v23 = vrot.slane %v1635_v27, %v12465_v49  ;;  %v1652_v32 = vrot.slane %v1635_v27, %v12469_v56 }
 0x660   :  { %v12716_v37 = vadd.f32 %v4037_v34, %v4036_v35 }
 0x662   :  { %11647 = vtanh.f32 %v12716_v37 }
 0x66c   :  { %v11648_v39 = vpop.eup %11647 }
 0x66d   :  { %v4040_v40 = vmul.f32 %v11648_v39, %v4034_v38 }
 0x66f   :  { %v4041_v51 = vpack.c.bf16 %v4040_v40, %v4040_v40 }
 0x671   :  { %4043 = vst [vmem:[#allocation3] sm:$0xf] %v4041_v51  ;;  %4045 = vst [vmem:[#allocation5 + $0x10] sm:$0xf] %v4041_v51 }
 0x678   :  { %v4050_v5 = vld [vmem:[#allocation3] sm:$0xf] }
 0x679   :  { %4276 = vmatmul.mubr.bf16.vlgmr.msra.gmra.mrb[20].mxu0 %v4050_v5  ;;  %4317 = vmatmul.mubr.bf16.vlgmr.msra.gmra.mrb[20].mxu1 %v4050_v5 }
 0x67a   :  { %4551 = vmatpush1.bf16.msra.mxu0 %v12569_v43  ;;  %4592 = vmatpush1.bf16.msra.mxu1 %v12571_v44 }
 0x67b   :  { %4552 = vmatprep.subr.bf16.mxu0 %v12577_v48  ;;  %4593 = vmatprep.subr.bf16.mxu1 %v12579_v50 }
 0x67c   :  { %4582 = vmatprep.mubr.bf16.mxu0 %v11859_v0  ;;  %4623 = vmatprep.mubr.bf16.mxu1 %v11859_v0 }
 0x67e   :  { %4553 = vmatpush1.bf16.msra.mxu0 %v12581_v52  ;;  %4594 = vmatpush1.bf16.msra.mxu1 %v12583_v46 }
 0x67f   :  { %4554 = vmatprep.subr.bf16.mxu0 %v12589_v53  ;;  %4595 = vmatprep.subr.bf16.mxu1 %v12591_v54 }
 0x682   :  { %4555 = vmatpush1.bf16.msra.mxu0 %v12593_v55  ;;  %4596 = vmatpush1.bf16.msra.mxu1 %v12595_v57 }
 0x683   :  { %4556 = vmatprep.subr.bf16.mxu0 %v12601_v58  ;;  %4597 = vmatprep.subr.bf16.mxu1 %v12603_v60 }
 0x686   :  { %4557 = vmatpush1.bf16.msra.mxu0 %v12605_v61  ;;  %4598 = vmatpush1.bf16.msra.mxu1 %v12607_v59 }
 0x687   :  { %4558 = vmatprep.subr.bf16.mxu0 %v12613_v62  ;;  %4599 = vmatprep.subr.bf16.mxu1 %v12615_v63 }
 0x68a   :  { %4559 = vmatpush1.bf16.msra.mxu0 %v12617_v1  ;;  %4600 = vmatpush1.bf16.msra.mxu1 %v12619_v2 }
 0x68b   :  { %4560 = vmatprep.subr.bf16.mxu0 %v12625_v3  ;;  %4601 = vmatprep.subr.bf16.mxu1 %v12627_v4 }
 0x68e   :  { %4561 = vmatpush1.bf16.msra.mxu0 %v12629_v11  ;;  %4602 = vmatpush1.bf16.msra.mxu1 %v12631_v12 }
 0x68f   :  { %4562 = vmatprep.subr.bf16.mxu0 %v12637_v14  ;;  %4603 = vmatprep.subr.bf16.mxu1 %v12639_v15 }
 0x692   :  { %4563 = vmatpush1.bf16.msra.mxu0 %v12641_v16  ;;  %4604 = vmatpush1.bf16.msra.mxu1 %v12643_v17 }
 0x693   :  { %4564 = vmatprep.subr.bf16.mxu0 %v12647_v18  ;;  %4605 = vmatprep.subr.bf16.mxu1 %v12649_v19 }
 0x696   :  { %4565 = vmatpush1.bf16.msra.mxu0 %v12653_v20  ;;  %4606 = vmatpush1.bf16.msra.mxu1 %v12655_v21 }
 0x697   :  { %4857 = vmatprep.subr.bf16.mxu0 %v12565_v13  ;;  %4898 = vmatprep.subr.bf16.mxu1 %v12567_v42 }
 0x74c   :  { %v4277_v7 = vpop.f32.mrb[20].mxu0  ;;  %v4318_v10 = vpop.f32.mrb[20].mxu1 }
 0x74d   :  { %v11026_v8 = vadd.f32 %v4277_v7, %v1640_v6  ;;  %v4279_v24 = vpop.f32.mrb[21].mxu0  ;;  %v4320_v25 = vpop.f32.mrb[21].mxu1  ;;  %v11028_v31 = vadd.f32 %v4318_v10, %v1648_v23 }
 0x74e   :  { %v11027_v22 = vadd.f32 %v4279_v24, %v1644_v9  ;;  %v4281_v26 = vpop.f32.mrb[22].mxu0  ;;  %v4322_v13 = vpop.f32.mrb[22].mxu1  ;;  %v11029_v33 = vadd.f32 %v4320_v25, %v1652_v32  ;;  %v12815_v32 = vld [vmem:[#allocation10 + $0x8] ss:$16 sps:$4 sm:$0xff]  }
 0x74f   :  { %v4329_v28 = vmul.f32 0.5, %v11026_v8  ;;  %v4282_v42 = vpop.f32.mrb[23].mxu0  ;;  %v4323_v29 = vpop.f32.mrb[23].mxu1 }
 0x750   :  { %v4333_v30 = vmul.f32 0.5, %v11027_v22  ;;  %v4338_v34 = vmul.f32 0.5, %v11029_v33  ;;  %v12817_v33 = vld [vmem:[#allocation10 + $0x24] ss:$16 sps:$4 sm:$0xff]  }
 0x751   :  { %11649 = vtanh.f32 %v4329_v28 }
 0x752   :  { %11651 = vtanh.f32 %v4333_v30 }
 0x753   :  { %11653 = vtanh.f32 %v11028_v31  ;;  %v12813_v31 = vld [vmem:[#allocation10] ss:$16 sps:$4 sm:$0xff]  }
 0x754   :  { %11655 = vtanh.f32 %v4338_v34  ;;  %v12819_v34 = vld [vmem:[#allocation10 + $0x2c] ss:$16 sps:$4 sm:$0xff]  }
 0x75b   :  { %v11650_v35 = vpop.eup %11649 }
 0x75c   :  { %v11652_v41 = vpop.eup %11651  ;;  %v4331_v36 = vmul.f32 0.5, %v11650_v35 }
 0x75d   :  { %v4335_v38 = vmul.f32 0.5, %v11652_v41  ;;  %v11654_v40 = vpop.eup %11653  ;;  %v12823_v41 = vld [vmem:[#allocation10 + $0x20] ss:$16 sps:$4 sm:$0xff]  }
 0x75e   :  { %v4332_v39 = vadd.f32 0.5, %v4331_v36  ;;  %v11656_v27 = vpop.eup %11655  ;;  %v12825_v36 = vld [vmem:[#allocation10 + $0x28] ss:$16 sps:$4 sm:$0xff]  }
 0x75f   :  { %v4336_v51 = vadd.f32 0.5, %v4335_v38  ;;  %v4340_v7 = vmul.f32 0.5, %v11656_v27  ;;  %v12829_v38 = vld [vmem:[#allocation10 + $0x44] ss:$16 sps:$4 sm:$0xff]   ;;  %v12851_v27 = vld [vmem:[#allocation10 + $0x68] ss:$16 sps:$4 sm:$0xff]  }
 0x760   :  { %v4344_v5 = vmul.f32 %v11654_v40, %v4332_v39  ;;  %v12831_v39 = vld [vmem:[#allocation10 + $0x4c] ss:$16 sps:$4 sm:$0xff]   ;;  %v12837_v40 = vld [vmem:[#allocation10 + $0x40] ss:$16 sps:$4 sm:$0xff]  }
 0x761   :  { %v4343_v6 = vmul.f32 %v4336_v51, %v12716_v37  ;;  %v4341_v10 = vadd.f32 0.5, %v4340_v7  ;;  %v12839_v51 = vld [vmem:[#allocation10 + $0x48] ss:$16 sps:$4 sm:$0xff]   ;;  %v12855_v7 = vld [vmem:[#allocation10 + $0x84] ss:$16 sps:$4 sm:$0xff]  }
 0x763   :  { %v12761_v9 = vadd.f32 %v4344_v5, %v4343_v6  ;;  %v12843_v5 = vld [vmem:[#allocation10 + $0x64] ss:$16 sps:$4 sm:$0xff]   ;;  %v12845_v6 = vld [vmem:[#allocation10 + $0x6c] ss:$16 sps:$4 sm:$0xff]  }
 0x765   :  { %11657 = vtanh.f32 %v12761_v9 }
 0x76f   :  { %v11658_v8 = vpop.eup %11657 }
 0x770   :  { %v4347_v23 = vmul.f32 %v11658_v8, %v4341_v10  ;;  %v12857_v10 = vld [vmem:[#allocation10 + $0x8c] ss:$16 sps:$4 sm:$0xff]   ;;  %v12861_v8 = vld [vmem:[#allocation10 + $0x80] ss:$16 sps:$4 sm:$0xff]  }
 0x772   :  { %v4348_v24 = vpack.c.bf16 %v4347_v23, %v4347_v23  ;;  %v12863_v23 = vld [vmem:[#allocation10 + $0x88] ss:$16 sps:$4 sm:$0xff]  }
 0x774   :  { %4350 = vst [vmem:[#allocation3] sm:$0xf] %v4348_v24  ;;  %4352 = vst [vmem:[#allocation5 + $0x14] sm:$0xf] %v4348_v24  ;;  %v12867_v24 = vld [vmem:[#allocation10 + $0xa4] ss:$16 sps:$4 sm:$0xff]  }
 0x77b   :  { %v4357_v25 = vld [vmem:[#allocation3] sm:$0xf] }
 0x77c   :  { %4583 = vmatmul.mubr.bf16.vlgmr.msra.gmra.mrb[24].mxu0 %v4357_v25  ;;  %4624 = vmatmul.mubr.bf16.vlgmr.msra.gmra.mrb[24].mxu1 %v4357_v25  ;;  %v12869_v25 = vld [vmem:[#allocation10 + $0xac] ss:$16 sps:$4 sm:$0xff]  }
 0x77d   :  { %4858 = vmatpush1.bf16.msra.mxu0 %v12569_v43  ;;  %4899 = vmatpush1.bf16.msra.mxu1 %v12571_v44  ;;  %v12796_v43 = vld [vmem:[#allocation10 + $0x4] ss:$16 sps:$4 sm:$0xff]   ;;  %v12798_v44 = vld [vmem:[#allocation10 + $0xc] ss:$16 sps:$4 sm:$0xff]  }
 0x77e   :  { %4859 = vmatprep.subr.bf16.mxu0 %v12577_v48  ;;  %4900 = vmatprep.subr.bf16.mxu1 %v12579_v50  ;;  %v1938_v48 = vld [vmem:[%s13733_s3] sm:$0xf] }
 0x77f   :  { %4889 = vmatprep.mubr.bf16.mxu0 %v11859_v0  ;;  %4930 = vmatprep.mubr.bf16.mxu1 %v11859_v0  ;;  %v1943_v50 = vrot.slane %v1938_v48, %v12457_v45 }
 0x781   :  { %4860 = vmatpush1.bf16.msra.mxu0 %v12581_v52  ;;  %4901 = vmatpush1.bf16.msra.mxu1 %v12583_v46  ;;  %v1947_v52 = vrot.slane %v1938_v48, %v12462_v47 }
 0x782   :  { %4861 = vmatprep.subr.bf16.mxu0 %v12589_v53  ;;  %4902 = vmatprep.subr.bf16.mxu1 %v12591_v54 }
 0x785   :  { %4862 = vmatpush1.bf16.msra.mxu0 %v12593_v55  ;;  %4903 = vmatpush1.bf16.msra.mxu1 %v12595_v57  ;;  %v1951_v55 = vrot.slane %v1938_v48, %v12465_v49 }
 0x786   :  { %4863 = vmatprep.subr.bf16.mxu0 %v12601_v58  ;;  %4904 = vmatprep.subr.bf16.mxu1 %v12603_v60 }
 0x789   :  { %4864 = vmatpush1.bf16.msra.mxu0 %v12605_v61  ;;  %4905 = vmatpush1.bf16.msra.mxu1 %v12607_v59 }
 0x78a   :  { %4865 = vmatprep.subr.bf16.mxu0 %v12613_v62  ;;  %4906 = vmatprep.subr.bf16.mxu1 %v12615_v63 }
 0x78d   :  { %4866 = vmatpush1.bf16.msra.mxu0 %v12617_v1  ;;  %4907 = vmatpush1.bf16.msra.mxu1 %v12619_v2 }
 0x78e   :  { %4867 = vmatprep.subr.bf16.mxu0 %v12625_v3  ;;  %4908 = vmatprep.subr.bf16.mxu1 %v12627_v4  ;;  %v1955_v4 = vrot.slane %v1938_v48, %v12469_v56  ;;  %v12873_v48 = vld [vmem:[#allocation10 + $0xa0] ss:$16 sps:$4 sm:$0xff]  }
 0x791   :  { %4868 = vmatpush1.bf16.msra.mxu0 %v12629_v11  ;;  %4909 = vmatpush1.bf16.msra.mxu1 %v12631_v12 }
 0x792   :  { %4869 = vmatprep.subr.bf16.mxu0 %v12637_v14  ;;  %4910 = vmatprep.subr.bf16.mxu1 %v12639_v15 }
 0x795   :  { %4870 = vmatpush1.bf16.msra.mxu0 %v12641_v16  ;;  %4911 = vmatpush1.bf16.msra.mxu1 %v12643_v17 }
 0x796   :  { %4871 = vmatprep.subr.bf16.mxu0 %v12647_v18  ;;  %4912 = vmatprep.subr.bf16.mxu1 %v12649_v19 }
 0x799   :  { %4872 = vmatpush1.bf16.msra.mxu0 %v12653_v20  ;;  %4913 = vmatpush1.bf16.msra.mxu1 %v12655_v21 }
 0x79a   :  { %5182 = vmatprep.subr.bf16.mxu0 %v12796_v43  ;;  %5223 = vmatprep.subr.bf16.mxu1 %v12798_v44 }
 0x84f   :  { %v4584_v46 = vpop.f32.mrb[24].mxu0  ;;  %v4625_v53 = vpop.f32.mrb[24].mxu1 }
 0x850   :  { %v11030_v54 = vadd.f32 %v4584_v46, %v1943_v50  ;;  %v4586_v57 = vpop.f32.mrb[25].mxu0  ;;  %v4627_v58 = vpop.f32.mrb[25].mxu1  ;;  %v11032_v3 = vadd.f32 %v4625_v53, %v1951_v55  ;;  %v12875_v50 = vld [vmem:[#allocation10 + $0xa8] ss:$16 sps:$4 sm:$0xff]   ;;  %v12881_v46 = vld [vmem:[#allocation10 + $0xcc] ss:$16 sps:$4 sm:$0xff]  }
 0x851   :  { %v11031_v60 = vadd.f32 %v4586_v57, %v1947_v52  ;;  %v4588_v61 = vpop.f32.mrb[26].mxu0  ;;  %v4629_v59 = vpop.f32.mrb[26].mxu1  ;;  %v11033_v11 = vadd.f32 %v4627_v58, %v1955_v4  ;;  %v12879_v52 = vld [vmem:[#allocation10 + $0xc4] ss:$16 sps:$4 sm:$0xff]   ;;  %v12885_v53 = vld [vmem:[#allocation10 + $0xc0] ss:$16 sps:$4 sm:$0xff]  }
 0x852   :  { %v4636_v62 = vmul.f32 0.5, %v11030_v54  ;;  %v4589_v63 = vpop.f32.mrb[27].mxu0  ;;  %v4630_v1 = vpop.f32.mrb[27].mxu1  ;;  %v12887_v54 = vld [vmem:[#allocation10 + $0xc8] ss:$16 sps:$4 sm:$0xff]  }
 0x853   :  { %v4640_v2 = vmul.f32 0.5, %v11031_v60  ;;  %v4645_v12 = vmul.f32 0.5, %v11033_v11  ;;  %v12891_v55 = vld [vmem:[#allocation10 + $0xe4] ss:$16 sps:$4 sm:$0xff]   ;;  %v12893_v57 = vld [vmem:[#allocation10 + $0xec] ss:$16 sps:$4 sm:$0xff]  }
 0x854   :  { %11659 = vtanh.f32 %v4636_v62  ;;  %v12897_v58 = vld [vmem:[#allocation10 + $0xe0] ss:$16 sps:$4 sm:$0xff]   ;;  %v12899_v60 = vld [vmem:[#allocation10 + $0xe8] ss:$16 sps:$4 sm:$0xff]   ;;  %v5268_v59 = vld [vmem:[#allocation5 + $0x4] sm:$0xf] }
 0x855   :  { %11661 = vtanh.f32 %v4640_v2  ;;  %v4967_v61 = vld [vmem:[#allocation5] sm:$0xf]  ;;  %v5569_v62 = vld [vmem:[#allocation5 + $0x8] sm:$0xf]  ;;  %v5870_v63 = vld [vmem:[#allocation5 + $0xc] sm:$0xf] }
 0x856   :  { %11663 = vtanh.f32 %v11032_v3  ;;  %v6171_v1 = vld [vmem:[#allocation5 + $0x10] sm:$0xf]  ;;  %v13081_v3 = vld [vmem:[#allocation10 + $0x8] ss:$16 sps:$4 sm:$0xff]   ;;  %v13085_v4 = vld [vmem:[#allocation10 + $0x24] ss:$16 sps:$4 sm:$0xff]  }
 0x857   :  { %11665 = vtanh.f32 %v4645_v12  ;;  %v13079_v2 = vld [vmem:[#allocation10] ss:$16 sps:$4 sm:$0xff]   ;;  %v13087_v11 = vld [vmem:[#allocation10 + $0x2c] ss:$16 sps:$4 sm:$0xff]   ;;  %v6472_v12 = vld [vmem:[#allocation5 + $0x14] sm:$0xf] }
 0x85e   :  { %v11660_v14 = vpop.eup %11659 }
 0x85f   :  { %v11662_v15 = vpop.eup %11661  ;;  %v4638_v16 = vmul.f32 0.5, %v11660_v14  ;;  %v13091_v14 = vld [vmem:[#allocation10 + $0x20] ss:$16 sps:$4 sm:$0xff]  }
 0x860   :  { %v4642_v17 = vmul.f32 0.5, %v11662_v15  ;;  %v11664_v19 = vpop.eup %11663  ;;  %v13093_v15 = vld [vmem:[#allocation10 + $0x28] ss:$16 sps:$4 sm:$0xff]  }
 0x861   :  { %v4639_v18 = vadd.f32 0.5, %v4638_v16  ;;  %v11666_v26 = vpop.eup %11665  ;;  %v13097_v16 = vld [vmem:[#allocation10 + $0x44] ss:$16 sps:$4 sm:$0xff]  }
 0x862   :  { %v4643_v20 = vadd.f32 0.5, %v4642_v17  ;;  %v4647_v13 = vmul.f32 0.5, %v11666_v26  ;;  %v13099_v17 = vld [vmem:[#allocation10 + $0x4c] ss:$16 sps:$4 sm:$0xff]   ;;  %v13119_v26 = vld [vmem:[#allocation10 + $0x68] ss:$16 sps:$4 sm:$0xff]  }
 0x863   :  { %v4651_v21 = vmul.f32 %v11664_v19, %v4639_v18  ;;  %v13105_v18 = vld [vmem:[#allocation10 + $0x40] ss:$16 sps:$4 sm:$0xff]   ;;  %v13107_v19 = vld [vmem:[#allocation10 + $0x48] ss:$16 sps:$4 sm:$0xff]  }
 0x864   :  { %v4650_v37 = vmul.f32 %v4643_v20, %v12761_v9  ;;  %v4648_v28 = vadd.f32 0.5, %v4647_v13  ;;  %v12849_v9 = vld [vmem:[#allocation10 + $0x60] ss:$16 sps:$4 sm:$0xff]   ;;  %v13111_v20 = vld [vmem:[#allocation10 + $0x64] ss:$16 sps:$4 sm:$0xff]  }
 0x865   :  { %v13123_v13 = vld [vmem:[#allocation10 + $0x84] ss:$16 sps:$4 sm:$0xff]  }
 0x866   :  { %v12810_v22 = vadd.f32 %v4651_v21, %v4650_v37  ;;  %v13113_v21 = vld [vmem:[#allocation10 + $0x6c] ss:$16 sps:$4 sm:$0xff]   ;;  %v13117_v37 = vld [vmem:[#allocation10 + $0x60] ss:$16 sps:$4 sm:$0xff]  }
 0x868   :  { %11667 = vtanh.f32 %v12810_v22 }
 0x872   :  { %v11668_v42 = vpop.eup %11667 }
 0x873   :  { %v4654_v29 = vmul.f32 %v11668_v42, %v4648_v28  ;;  %v13125_v28 = vld [vmem:[#allocation10 + $0x8c] ss:$16 sps:$4 sm:$0xff]   ;;  %v13129_v42 = vld [vmem:[#allocation10 + $0x80] ss:$16 sps:$4 sm:$0xff]  }
 0x875   :  { %v4655_v30 = vpack.c.bf16 %v4654_v29, %v4654_v29  ;;  %v13131_v29 = vld [vmem:[#allocation10 + $0x88] ss:$16 sps:$4 sm:$0xff]  }
 0x877   :  { %4657 = vst [vmem:[#allocation3] sm:$0xf] %v4655_v30  ;;  %4659 = vst [vmem:[#allocation5 + $0x18] sm:$0xf] %v4655_v30  ;;  %v2241_v30 = vld [vmem:[%s13733_s3] sm:$0xf] }
 0x87e   :  { %v4664_v35 = vld [vmem:[#allocation3] sm:$0xf] }
 0x87f   :  { %4890 = vmatmul.mubr.bf16.vlgmr.msra.gmra.mrb[28].mxu0 %v4664_v35  ;;  %4931 = vmatmul.mubr.bf16.vlgmr.msra.gmra.mrb[28].mxu1 %v4664_v35  ;;  %v13147_v35 = vld [vmem:[#allocation10 + $0xa8] ss:$16 sps:$4 sm:$0xff]  }
 0x880   :  { %5183 = vmatpush1.bf16.msra.mxu0 %v12813_v31  ;;  %5224 = vmatpush1.bf16.msra.mxu1 %v12815_v32 }
 0x881   :  { %5184 = vmatprep.subr.bf16.mxu0 %v12817_v33  ;;  %5225 = vmatprep.subr.bf16.mxu1 %v12819_v34 }
 0x882   :  { %5214 = vmatprep.mubr.bf16.mxu0 %v11859_v0  ;;  %5255 = vmatprep.mubr.bf16.mxu1 %v11859_v0 }
 0x884   :  { %5185 = vmatpush1.bf16.msra.mxu0 %v12823_v41  ;;  %5226 = vmatpush1.bf16.msra.mxu1 %v12825_v36 }
 0x885   :  { %5186 = vmatprep.subr.bf16.mxu0 %v12829_v38  ;;  %5227 = vmatprep.subr.bf16.mxu1 %v12831_v39 }
 0x888   :  { %5187 = vmatpush1.bf16.msra.mxu0 %v12837_v40  ;;  %5228 = vmatpush1.bf16.msra.mxu1 %v12839_v51 }
 0x889   :  { %5188 = vmatprep.subr.bf16.mxu0 %v12843_v5  ;;  %5229 = vmatprep.subr.bf16.mxu1 %v12845_v6 }
 0x88c   :  { %5189 = vmatpush1.bf16.msra.mxu0 %v12849_v9  ;;  %5230 = vmatpush1.bf16.msra.mxu1 %v12851_v27 }
 0x88d   :  { %5190 = vmatprep.subr.bf16.mxu0 %v12855_v7  ;;  %5231 = vmatprep.subr.bf16.mxu1 %v12857_v10 }
 0x890   :  { %5191 = vmatpush1.bf16.msra.mxu0 %v12861_v8  ;;  %5232 = vmatpush1.bf16.msra.mxu1 %v12863_v23 }
 0x891   :  { %5192 = vmatprep.subr.bf16.mxu0 %v12867_v24  ;;  %5233 = vmatprep.subr.bf16.mxu1 %v12869_v25 }
 0x894   :  { %5193 = vmatpush1.bf16.msra.mxu0 %v12873_v48  ;;  %5234 = vmatpush1.bf16.msra.mxu1 %v12875_v50 }
 0x895   :  { %5194 = vmatprep.subr.bf16.mxu0 %v12879_v52  ;;  %5235 = vmatprep.subr.bf16.mxu1 %v12881_v46 }
 0x898   :  { %5195 = vmatpush1.bf16.msra.mxu0 %v12885_v53  ;;  %5236 = vmatpush1.bf16.msra.mxu1 %v12887_v54 }
 0x899   :  { %5196 = vmatprep.subr.bf16.mxu0 %v12891_v55  ;;  %5237 = vmatprep.subr.bf16.mxu1 %v12893_v57 }
 0x89c   :  { %5197 = vmatpush1.bf16.msra.mxu0 %v12897_v58  ;;  %5238 = vmatpush1.bf16.msra.mxu1 %v12899_v60 }
 0x89d   :  { %5483 = vmatprep.subr.bf16.mxu0 %v12796_v43  ;;  %5524 = vmatprep.subr.bf16.mxu1 %v12798_v44 }
 0x89f   :  { %5215 = vmatmul.mubr.bf16.vlgmr.msra.gmra.mrb[32].mxu0 %v4967_v61  ;;  %5256 = vmatmul.mubr.bf16.vlgmr.msra.gmra.mrb[32].mxu1 %v4967_v61 }
 0x8a0   :  { %5484 = vmatpush1.bf16.msra.mxu0 %v12813_v31  ;;  %5525 = vmatpush1.bf16.msra.mxu1 %v12815_v32 }
 0x8a1   :  { %5485 = vmatprep.subr.bf16.mxu0 %v12817_v33  ;;  %5526 = vmatprep.subr.bf16.mxu1 %v12819_v34 }
 0x8a2   :  { %5515 = vmatprep.mubr.bf16.mxu0 %v11859_v0  ;;  %5556 = vmatprep.mubr.bf16.mxu1 %v11859_v0 }
 0x8a4   :  { %5486 = vmatpush1.bf16.msra.mxu0 %v12823_v41  ;;  %5527 = vmatpush1.bf16.msra.mxu1 %v12825_v36 }
 0x8a5   :  { %5487 = vmatprep.subr.bf16.mxu0 %v12829_v38  ;;  %5528 = vmatprep.subr.bf16.mxu1 %v12831_v39 }
 0x8a8   :  { %5488 = vmatpush1.bf16.msra.mxu0 %v12837_v40  ;;  %5529 = vmatpush1.bf16.msra.mxu1 %v12839_v51 }
 0x8a9   :  { %5489 = vmatprep.subr.bf16.mxu0 %v12843_v5  ;;  %5530 = vmatprep.subr.bf16.mxu1 %v12845_v6 }
 0x8ac   :  { %5490 = vmatpush1.bf16.msra.mxu0 %v12849_v9  ;;  %5531 = vmatpush1.bf16.msra.mxu1 %v12851_v27 }
 0x8ad   :  { %5491 = vmatprep.subr.bf16.mxu0 %v12855_v7  ;;  %5532 = vmatprep.subr.bf16.mxu1 %v12857_v10 }
 0x8b0   :  { %5492 = vmatpush1.bf16.msra.mxu0 %v12861_v8  ;;  %5533 = vmatpush1.bf16.msra.mxu1 %v12863_v23 }
 0x8b1   :  { %5493 = vmatprep.subr.bf16.mxu0 %v12867_v24  ;;  %5534 = vmatprep.subr.bf16.mxu1 %v12869_v25 }
 0x8b4   :  { %5494 = vmatpush1.bf16.msra.mxu0 %v12873_v48  ;;  %5535 = vmatpush1.bf16.msra.mxu1 %v12875_v50 }
 0x8b5   :  { %5495 = vmatprep.subr.bf16.mxu0 %v12879_v52  ;;  %5536 = vmatprep.subr.bf16.mxu1 %v12881_v46 }
 0x8b8   :  { %5496 = vmatpush1.bf16.msra.mxu0 %v12885_v53  ;;  %5537 = vmatpush1.bf16.msra.mxu1 %v12887_v54 }
 0x8b9   :  { %5497 = vmatprep.subr.bf16.mxu0 %v12891_v55  ;;  %5538 = vmatprep.subr.bf16.mxu1 %v12893_v57 }
 0x8bc   :  { %5498 = vmatpush1.bf16.msra.mxu0 %v12897_v58  ;;  %5539 = vmatpush1.bf16.msra.mxu1 %v12899_v60 }
 0x8bd   :  { %5784 = vmatprep.subr.bf16.mxu0 %v12796_v43  ;;  %5825 = vmatprep.subr.bf16.mxu1 %v12798_v44 }
 0x8bf   :  { %5516 = vmatmul.mubr.bf16.vlgmr.msra.gmra.mrb[36].mxu0 %v5268_v59  ;;  %5557 = vmatmul.mubr.bf16.vlgmr.msra.gmra.mrb[36].mxu1 %v5268_v59 }
 0x8c0   :  { %5785 = vmatpush1.bf16.msra.mxu0 %v12813_v31  ;;  %5826 = vmatpush1.bf16.msra.mxu1 %v12815_v32 }
 0x8c1   :  { %5786 = vmatprep.subr.bf16.mxu0 %v12817_v33  ;;  %5827 = vmatprep.subr.bf16.mxu1 %v12819_v34 }
 0x8c2   :  { %5816 = vmatprep.mubr.bf16.mxu0 %v11859_v0  ;;  %5857 = vmatprep.mubr.bf16.mxu1 %v11859_v0 }
 0x8c4   :  { %5787 = vmatpush1.bf16.msra.mxu0 %v12823_v41  ;;  %5828 = vmatpush1.bf16.msra.mxu1 %v12825_v36 }
 0x8c5   :  { %5788 = vmatprep.subr.bf16.mxu0 %v12829_v38  ;;  %5829 = vmatprep.subr.bf16.mxu1 %v12831_v39 }
 0x8c8   :  { %5789 = vmatpush1.bf16.msra.mxu0 %v12837_v40  ;;  %5830 = vmatpush1.bf16.msra.mxu1 %v12839_v51 }
 0x8c9   :  { %5790 = vmatprep.subr.bf16.mxu0 %v12843_v5  ;;  %5831 = vmatprep.subr.bf16.mxu1 %v12845_v6 }
 0x8cc   :  { %5791 = vmatpush1.bf16.msra.mxu0 %v12849_v9  ;;  %5832 = vmatpush1.bf16.msra.mxu1 %v12851_v27 }
 0x8cd   :  { %5792 = vmatprep.subr.bf16.mxu0 %v12855_v7  ;;  %5833 = vmatprep.subr.bf16.mxu1 %v12857_v10 }
 0x8d0   :  { %5793 = vmatpush1.bf16.msra.mxu0 %v12861_v8  ;;  %5834 = vmatpush1.bf16.msra.mxu1 %v12863_v23 }
 0x8d1   :  { %5794 = vmatprep.subr.bf16.mxu0 %v12867_v24  ;;  %5835 = vmatprep.subr.bf16.mxu1 %v12869_v25 }
 0x8d4   :  { %5795 = vmatpush1.bf16.msra.mxu0 %v12873_v48  ;;  %5836 = vmatpush1.bf16.msra.mxu1 %v12875_v50 }
 0x8d5   :  { %5796 = vmatprep.subr.bf16.mxu0 %v12879_v52  ;;  %5837 = vmatprep.subr.bf16.mxu1 %v12881_v46 }
 0x8d8   :  { %5797 = vmatpush1.bf16.msra.mxu0 %v12885_v53  ;;  %5838 = vmatpush1.bf16.msra.mxu1 %v12887_v54 }
 0x8d9   :  { %5798 = vmatprep.subr.bf16.mxu0 %v12891_v55  ;;  %5839 = vmatprep.subr.bf16.mxu1 %v12893_v57 }
 0x8dc   :  { %5799 = vmatpush1.bf16.msra.mxu0 %v12897_v58  ;;  %5840 = vmatpush1.bf16.msra.mxu1 %v12899_v60 }
 0x8dd   :  { %6085 = vmatprep.subr.bf16.mxu0 %v12796_v43  ;;  %6126 = vmatprep.subr.bf16.mxu1 %v12798_v44 }
 0x8df   :  { %5817 = vmatmul.mubr.bf16.vlgmr.msra.gmra.mrb[40].mxu0 %v5569_v62  ;;  %5858 = vmatmul.mubr.bf16.vlgmr.msra.gmra.mrb[40].mxu1 %v5569_v62 }
 0x8e0   :  { %6086 = vmatpush1.bf16.msra.mxu0 %v12813_v31  ;;  %6127 = vmatpush1.bf16.msra.mxu1 %v12815_v32 }
 0x8e1   :  { %6087 = vmatprep.subr.bf16.mxu0 %v12817_v33  ;;  %6128 = vmatprep.subr.bf16.mxu1 %v12819_v34 }
 0x8e2   :  { %6117 = vmatprep.mubr.bf16.mxu0 %v11859_v0  ;;  %6158 = vmatprep.mubr.bf16.mxu1 %v11859_v0 }
 0x8e4   :  { %6088 = vmatpush1.bf16.msra.mxu0 %v12823_v41  ;;  %6129 = vmatpush1.bf16.msra.mxu1 %v12825_v36 }
 0x8e5   :  { %6089 = vmatprep.subr.bf16.mxu0 %v12829_v38  ;;  %6130 = vmatprep.subr.bf16.mxu1 %v12831_v39 }
 0x8e8   :  { %6090 = vmatpush1.bf16.msra.mxu0 %v12837_v40  ;;  %6131 = vmatpush1.bf16.msra.mxu1 %v12839_v51 }
 0x8e9   :  { %6091 = vmatprep.subr.bf16.mxu0 %v12843_v5  ;;  %6132 = vmatprep.subr.bf16.mxu1 %v12845_v6 }
 0x8ec   :  { %6092 = vmatpush1.bf16.msra.mxu0 %v12849_v9  ;;  %6133 = vmatpush1.bf16.msra.mxu1 %v12851_v27 }
 0x8ed   :  { %6093 = vmatprep.subr.bf16.mxu0 %v12855_v7  ;;  %6134 = vmatprep.subr.bf16.mxu1 %v12857_v10 }
 0x8f0   :  { %6094 = vmatpush1.bf16.msra.mxu0 %v12861_v8  ;;  %6135 = vmatpush1.bf16.msra.mxu1 %v12863_v23 }
 0x8f1   :  { %6095 = vmatprep.subr.bf16.mxu0 %v12867_v24  ;;  %6136 = vmatprep.subr.bf16.mxu1 %v12869_v25 }
 0x8f4   :  { %6096 = vmatpush1.bf16.msra.mxu0 %v12873_v48  ;;  %6137 = vmatpush1.bf16.msra.mxu1 %v12875_v50 }
 0x8f5   :  { %6097 = vmatprep.subr.bf16.mxu0 %v12879_v52  ;;  %6138 = vmatprep.subr.bf16.mxu1 %v12881_v46 }
 0x8f8   :  { %6098 = vmatpush1.bf16.msra.mxu0 %v12885_v53  ;;  %6139 = vmatpush1.bf16.msra.mxu1 %v12887_v54 }
 0x8f9   :  { %6099 = vmatprep.subr.bf16.mxu0 %v12891_v55  ;;  %6140 = vmatprep.subr.bf16.mxu1 %v12893_v57 }
 0x8fc   :  { %6100 = vmatpush1.bf16.msra.mxu0 %v12897_v58  ;;  %6141 = vmatpush1.bf16.msra.mxu1 %v12899_v60 }
 0x8fd   :  { %6386 = vmatprep.subr.bf16.mxu0 %v12796_v43  ;;  %6427 = vmatprep.subr.bf16.mxu1 %v12798_v44 }
 0x8ff   :  { %6118 = vmatmul.mubr.bf16.vlgmr.msra.gmra.mrb[44].mxu0 %v5870_v63  ;;  %6159 = vmatmul.mubr.bf16.vlgmr.msra.gmra.mrb[44].mxu1 %v5870_v63 }
 0x900   :  { %6387 = vmatpush1.bf16.msra.mxu0 %v12813_v31  ;;  %6428 = vmatpush1.bf16.msra.mxu1 %v12815_v32 }
 0x901   :  { %6388 = vmatprep.subr.bf16.mxu0 %v12817_v33  ;;  %6429 = vmatprep.subr.bf16.mxu1 %v12819_v34 }
 0x902   :  { %6418 = vmatprep.mubr.bf16.mxu0 %v11859_v0  ;;  %6459 = vmatprep.mubr.bf16.mxu1 %v11859_v0 }
 0x904   :  { %6389 = vmatpush1.bf16.msra.mxu0 %v12823_v41  ;;  %6430 = vmatpush1.bf16.msra.mxu1 %v12825_v36 }
 0x905   :  { %6390 = vmatprep.subr.bf16.mxu0 %v12829_v38  ;;  %6431 = vmatprep.subr.bf16.mxu1 %v12831_v39 }
 0x908   :  { %6391 = vmatpush1.bf16.msra.mxu0 %v12837_v40  ;;  %6432 = vmatpush1.bf16.msra.mxu1 %v12839_v51 }
 0x909   :  { %6392 = vmatprep.subr.bf16.mxu0 %v12843_v5  ;;  %6433 = vmatprep.subr.bf16.mxu1 %v12845_v6 }
 0x90c   :  { %6393 = vmatpush1.bf16.msra.mxu0 %v12849_v9  ;;  %6434 = vmatpush1.bf16.msra.mxu1 %v12851_v27 }
 0x90d   :  { %6394 = vmatprep.subr.bf16.mxu0 %v12855_v7  ;;  %6435 = vmatprep.subr.bf16.mxu1 %v12857_v10 }
 0x910   :  { %6395 = vmatpush1.bf16.msra.mxu0 %v12861_v8  ;;  %6436 = vmatpush1.bf16.msra.mxu1 %v12863_v23 }
 0x911   :  { %6396 = vmatprep.subr.bf16.mxu0 %v12867_v24  ;;  %6437 = vmatprep.subr.bf16.mxu1 %v12869_v25 }
 0x914   :  { %6397 = vmatpush1.bf16.msra.mxu0 %v12873_v48  ;;  %6438 = vmatpush1.bf16.msra.mxu1 %v12875_v50 }
 0x915   :  { %6398 = vmatprep.subr.bf16.mxu0 %v12879_v52  ;;  %6439 = vmatprep.subr.bf16.mxu1 %v12881_v46 }
 0x918   :  { %6399 = vmatpush1.bf16.msra.mxu0 %v12885_v53  ;;  %6440 = vmatpush1.bf16.msra.mxu1 %v12887_v54 }
 0x919   :  { %6400 = vmatprep.subr.bf16.mxu0 %v12891_v55  ;;  %6441 = vmatprep.subr.bf16.mxu1 %v12893_v57 }
 0x91c   :  { %6401 = vmatpush1.bf16.msra.mxu0 %v12897_v58  ;;  %6442 = vmatpush1.bf16.msra.mxu1 %v12899_v60 }
 0x91d   :  { %6687 = vmatprep.subr.bf16.mxu0 %v12796_v43  ;;  %6728 = vmatprep.subr.bf16.mxu1 %v12798_v44  ;;  %v13073_v43 = vld [vmem:[#allocation10 + $0x4] ss:$16 sps:$4 sm:$0xff]   ;;  %v13075_v44 = vld [vmem:[#allocation10 + $0xc] ss:$16 sps:$4 sm:$0xff]  }
 0x91f   :  { %6419 = vmatmul.mubr.bf16.vlgmr.msra.gmra.mrb[48].mxu0 %v6171_v1  ;;  %6460 = vmatmul.mubr.bf16.vlgmr.msra.gmra.mrb[48].mxu1 %v6171_v1 }
 0x920   :  { %6688 = vmatpush1.bf16.msra.mxu0 %v12813_v31  ;;  %6729 = vmatpush1.bf16.msra.mxu1 %v12815_v32  ;;  %v13138_v31 = vld [vmem:[#allocation10 + $0xa4] ss:$16 sps:$4 sm:$0xff]   ;;  %v13140_v32 = vld [vmem:[#allocation10 + $0xac] ss:$16 sps:$4 sm:$0xff]  }
 0x921   :  { %6689 = vmatprep.subr.bf16.mxu0 %v12817_v33  ;;  %6730 = vmatprep.subr.bf16.mxu1 %v12819_v34  ;;  %v2246_v33 = vrot.slane %v2241_v30, %v12457_v45  ;;  %v13145_v34 = vld [vmem:[#allocation10 + $0xa0] ss:$16 sps:$4 sm:$0xff]  }
 0x922   :  { %6719 = vmatprep.mubr.bf16.mxu0 %v11859_v0  ;;  %6760 = vmatprep.mubr.bf16.mxu1 %v11859_v0 }
 0x924   :  { %6690 = vmatpush1.bf16.msra.mxu0 %v12823_v41  ;;  %6731 = vmatpush1.bf16.msra.mxu1 %v12825_v36  ;;  %v2250_v41 = vrot.slane %v2241_v30, %v12462_v47  ;;  %v13152_v36 = vld [vmem:[#allocation10 + $0xc4] ss:$16 sps:$4 sm:$0xff]  }
 0x925   :  { %6691 = vmatprep.subr.bf16.mxu0 %v12829_v38  ;;  %6732 = vmatprep.subr.bf16.mxu1 %v12831_v39  ;;  %v13154_v38 = vld [vmem:[#allocation10 + $0xcc] ss:$16 sps:$4 sm:$0xff]  }
 0x928   :  { %6692 = vmatpush1.bf16.msra.mxu0 %v12837_v40  ;;  %6733 = vmatpush1.bf16.msra.mxu1 %v12839_v51 }
 0x929   :  { %6693 = vmatprep.subr.bf16.mxu0 %v12843_v5  ;;  %6734 = vmatprep.subr.bf16.mxu1 %v12845_v6  ;;  %v2254_v5 = vrot.slane %v2241_v30, %v12465_v49 }
 0x92c   :  { %6694 = vmatpush1.bf16.msra.mxu0 %v12849_v9  ;;  %6735 = vmatpush1.bf16.msra.mxu1 %v12851_v27  ;;  %v13157_v27 = vld [vmem:[#allocation10 + $0xc0] ss:$16 sps:$4 sm:$0xff]  }
 0x92d   :  { %6695 = vmatprep.subr.bf16.mxu0 %v12855_v7  ;;  %6736 = vmatprep.subr.bf16.mxu1 %v12857_v10 }
 0x930   :  { %6696 = vmatpush1.bf16.msra.mxu0 %v12861_v8  ;;  %6737 = vmatpush1.bf16.msra.mxu1 %v12863_v23  ;;  %v13161_v23 = vld [vmem:[#allocation10 + $0xc8] ss:$16 sps:$4 sm:$0xff]  }
 0x931   :  { %6697 = vmatprep.subr.bf16.mxu0 %v12867_v24  ;;  %6738 = vmatprep.subr.bf16.mxu1 %v12869_v25  ;;  %v13163_v24 = vld [vmem:[#allocation10 + $0xe4] ss:$16 sps:$4 sm:$0xff]  }
 0x934   :  { %6698 = vmatpush1.bf16.msra.mxu0 %v12873_v48  ;;  %6739 = vmatpush1.bf16.msra.mxu1 %v12875_v50 }
 0x935   :  { %6699 = vmatprep.subr.bf16.mxu0 %v12879_v52  ;;  %6740 = vmatprep.subr.bf16.mxu1 %v12881_v46  ;;  %v13167_v52 = vld [vmem:[#allocation10 + $0xec] ss:$16 sps:$4 sm:$0xff]  }
 0x938   :  { %6700 = vmatpush1.bf16.msra.mxu0 %v12885_v53  ;;  %6741 = vmatpush1.bf16.msra.mxu1 %v12887_v54  ;;  %v2258_v54 = vrot.slane %v2241_v30, %v12469_v56  ;;  %v13240_v30 = vld [vmem:[#allocation11 + $0x4c] ss:$16 sps:$4 sm:$0xff]  }
 0x939   :  { %6701 = vmatprep.subr.bf16.mxu0 %v12891_v55  ;;  %6742 = vmatprep.subr.bf16.mxu1 %v12893_v57  ;;  %v13172_v55 = vld [vmem:[#allocation10 + $0xe0] ss:$16 sps:$4 sm:$0xff]   ;;  %v13174_v57 = vld [vmem:[#allocation10 + $0xe8] ss:$16 sps:$4 sm:$0xff]  }
 0x93c   :  { %6702 = vmatpush1.bf16.msra.mxu0 %v12897_v58  ;;  %6743 = vmatpush1.bf16.msra.mxu1 %v12899_v60  ;;  %v6773_v60 = vld [vmem:[#allocation5 + $0x18] sm:$0xf] }
 0x93d   :  { %6988 = vmatprep.subr.bf16.mxu0 %v13073_v43  ;;  %7029 = vmatprep.subr.bf16.mxu1 %v13075_v44 }
 0x93f   :  { %6720 = vmatmul.mubr.bf16.vlgmr.msra.gmra.mrb[52].mxu0 %v6472_v12  ;;  %6761 = vmatmul.mubr.bf16.vlgmr.msra.gmra.mrb[52].mxu1 %v6472_v12 }
 0x940   :  { %6989 = vmatpush1.bf16.msra.mxu0 %v13079_v2  ;;  %7030 = vmatpush1.bf16.msra.mxu1 %v13081_v3 }
 0x941   :  { %6990 = vmatprep.subr.bf16.mxu0 %v13085_v4  ;;  %7031 = vmatprep.subr.bf16.mxu1 %v13087_v11 }
 0x942   :  { %7020 = vmatprep.mubr.bf16.mxu0 %v11859_v0  ;;  %7061 = vmatprep.mubr.bf16.mxu1 %v11859_v0 }
 0x944   :  { %6991 = vmatpush1.bf16.msra.mxu0 %v13091_v14  ;;  %7032 = vmatpush1.bf16.msra.mxu1 %v13093_v15 }
 0x945   :  { %6992 = vmatprep.subr.bf16.mxu0 %v13097_v16  ;;  %7033 = vmatprep.subr.bf16.mxu1 %v13099_v17 }
 0x948   :  { %6993 = vmatpush1.bf16.msra.mxu0 %v13105_v18  ;;  %7034 = vmatpush1.bf16.msra.mxu1 %v13107_v19 }
 0x949   :  { %6994 = vmatprep.subr.bf16.mxu0 %v13111_v20  ;;  %7035 = vmatprep.subr.bf16.mxu1 %v13113_v21 }
 0x94c   :  { %6995 = vmatpush1.bf16.msra.mxu0 %v13117_v37  ;;  %7036 = vmatpush1.bf16.msra.mxu1 %v13119_v26 }
 0x94d   :  { %6996 = vmatprep.subr.bf16.mxu0 %v13123_v13  ;;  %7037 = vmatprep.subr.bf16.mxu1 %v13125_v28 }
 0x950   :  { %6997 = vmatpush1.bf16.msra.mxu0 %v13129_v42  ;;  %7038 = vmatpush1.bf16.msra.mxu1 %v13131_v29 }
 0x951   :  { %6998 = vmatprep.subr.bf16.mxu0 %v13138_v31  ;;  %7039 = vmatprep.subr.bf16.mxu1 %v13140_v32 }
 0x952   :  { %v4891_v39 = vpop.f32.mrb[28].mxu0  ;;  %v4932_v40 = vpop.f32.mrb[28].mxu1 }
 0x953   :  { %v11034_v51 = vadd.f32 %v4891_v39, %v2246_v33  ;;  %v4893_v6 = vpop.f32.mrb[29].mxu0  ;;  %v4934_v9 = vpop.f32.mrb[29].mxu1  ;;  %v11036_v53 = vadd.f32 %v4932_v40, %v2254_v5  ;;  %v13252_v33 = vld [vmem:[#allocation11 + $0x64] ss:$16 sps:$4 sm:$0xff]   ;;  %v13270_v39 = vld [vmem:[#allocation11 + $0x80] ss:$16 sps:$4 sm:$0xff]  }
 0x954   :  { %v11035_v7 = vadd.f32 %v4893_v6, %v2250_v41  ;;  %6999 = vmatpush1.bf16.msra.mxu0 %v13145_v34  ;;  %7040 = vmatpush1.bf16.msra.mxu1 %v13147_v35  ;;  %v4895_v10 = vpop.f32.mrb[30].mxu0  ;;  %v4936_v8 = vpop.f32.mrb[30].mxu1  ;;  %v11037_v58 = vadd.f32 %v4934_v9, %v2258_v54  ;;  %v13260_v41 = vld [vmem:[#allocation11 + $0x68] ss:$16 sps:$4 sm:$0xff]   ;;  %v13278_v5 = vld [vmem:[#allocation11 + $0xac] ss:$16 sps:$4 sm:$0xff]  }
 0x955   :  { %v4943_v25 = vmul.f32 0.5, %v11034_v51  ;;  %v4896_v48 = vpop.f32.mrb[31].mxu0  ;;  %v4937_v50 = vpop.f32.mrb[31].mxu1  ;;  %7000 = vmatprep.subr.bf16.mxu0 %v13152_v36  ;;  %7041 = vmatprep.subr.bf16.mxu1 %v13154_v38  ;;  %v13272_v40 = vld [vmem:[#allocation11 + $0x88] ss:$16 sps:$4 sm:$0xff]  }
 0x956   :  { %v4947_v46 = vmul.f32 0.5, %v11035_v7  ;;  %v4952_v61 = vmul.f32 0.5, %v11037_v58  ;;  %v13276_v51 = vld [vmem:[#allocation11 + $0xa4] ss:$16 sps:$4 sm:$0xff]   ;;  %v13282_v6 = vld [vmem:[#allocation11 + $0xa0] ss:$16 sps:$4 sm:$0xff]  }
 0x957   :  { %11669 = vtanh.f32 %v4943_v25  ;;  %v13284_v9 = vld [vmem:[#allocation11 + $0xa8] ss:$16 sps:$4 sm:$0xff]   ;;  %v13290_v7 = vld [vmem:[#allocation11 + $0xcc] ss:$16 sps:$4 sm:$0xff]   ;;  %v13294_v10 = vld [vmem:[#allocation11 + $0xc0] ss:$16 sps:$4 sm:$0xff]  }
 0x958   :  { %11671 = vtanh.f32 %v4947_v46  ;;  %7001 = vmatpush1.bf16.msra.mxu0 %v13157_v27  ;;  %7042 = vmatpush1.bf16.msra.mxu1 %v13161_v23  ;;  %v13296_v8 = vld [vmem:[#allocation11 + $0xc8] ss:$16 sps:$4 sm:$0xff]   ;;  %v13306_v25 = vld [vmem:[#allocation11 + $0xe0] ss:$16 sps:$4 sm:$0xff]  }
 0x959   :  { %7002 = vmatprep.subr.bf16.mxu0 %v13163_v24  ;;  %7043 = vmatprep.subr.bf16.mxu1 %v13167_v52  ;;  %11673 = vtanh.f32 %v11036_v53  ;;  %v13308_v48 = vld [vmem:[#allocation11 + $0xe8] ss:$16 sps:$4 sm:$0xff]  }
 0x95a   :  { %11675 = vtanh.f32 %v4952_v61 }
 0x95c   :  { %7003 = vmatpush1.bf16.msra.mxu0 %v13172_v55  ;;  %7044 = vmatpush1.bf16.msra.mxu1 %v13174_v57 }
 0x95d   :  { %7289 = vmatprep.subr.bf16.mxu0 %v13073_v43  ;;  %7330 = vmatprep.subr.bf16.mxu1 %v13075_v44 }
 0x95f   :  { %7021 = vmatmul.mubr.bf16.vlgmr.msra.gmra.mrb[56].mxu0 %v6773_v60  ;;  %7062 = vmatmul.mubr.bf16.vlgmr.msra.gmra.mrb[56].mxu1 %v6773_v60 }
 0x960   :  { %7290 = vmatpush1.bf16.msra.mxu0 %v13079_v2  ;;  %7331 = vmatpush1.bf16.msra.mxu1 %v13081_v3 }
 0x961   :  { %v11670_v59 = vpop.eup %11669  ;;  %7291 = vmatprep.subr.bf16.mxu0 %v13085_v4  ;;  %7332 = vmatprep.subr.bf16.mxu1 %v13087_v11 }
 0x962   :  { %v11672_v62 = vpop.eup %11671  ;;  %v4945_v63 = vmul.f32 0.5, %v11670_v59  ;;  %7321 = vmatprep.mubr.bf16.mxu0 %v11859_v0  ;;  %7362 = vmatprep.mubr.bf16.mxu1 %v11859_v0 }
 0x963   :  { %v4949_v1 = vmul.f32 0.5, %v11672_v62  ;;  %v11674_v44 = vpop.eup %11673 }
 0x964   :  { %v4946_v43 = vadd.f32 0.5, %v4945_v63  ;;  %7292 = vmatpush1.bf16.msra.mxu0 %v13091_v14  ;;  %7333 = vmatpush1.bf16.msra.mxu1 %v13093_v15  ;;  %v11676_v12 = vpop.eup %11675 }
 0x965   :  { %v4950_v2 = vadd.f32 0.5, %v4949_v1  ;;  %7293 = vmatprep.subr.bf16.mxu0 %v13097_v16  ;;  %7334 = vmatprep.subr.bf16.mxu1 %v13099_v17 }
 0x966   :  { %v4958_v3 = vmul.f32 %v11674_v44, %v4946_v43 }
 0x967   :  { %v4957_v4 = vmul.f32 %v4950_v2, %v12810_v22  ;;  %v4954_v22 = vmul.f32 0.5, %v11676_v12 }
 0x968   :  { %7294 = vmatpush1.bf16.msra.mxu0 %v13105_v18  ;;  %7335 = vmatpush1.bf16.msra.mxu1 %v13107_v19  ;;  %v13213_v18 = vld [vmem:[#allocation11 + $0x4] ss:$16 sps:$4 sm:$0xff]   ;;  %v13215_v19 = vld [vmem:[#allocation11 + $0xc] ss:$16 sps:$4 sm:$0xff]  }
 0x969   :  { %v4959_v11 = vadd.f32 %v4958_v3, %v4957_v4  ;;  %7295 = vmatprep.subr.bf16.mxu0 %v13111_v20  ;;  %7336 = vmatprep.subr.bf16.mxu1 %v13113_v21  ;;  %v4955_v14 = vadd.f32 0.5, %v4954_v22  ;;  %v13222_v20 = vld [vmem:[#allocation11] ss:$16 sps:$4 sm:$0xff]   ;;  %v13224_v21 = vld [vmem:[#allocation11 + $0x8] ss:$16 sps:$4 sm:$0xff]  }
 0x96b   :  { %11677 = vtanh.f32 %v4959_v11 }
 0x96c   :  { %7296 = vmatpush1.bf16.msra.mxu0 %v13117_v37  ;;  %7337 = vmatpush1.bf16.msra.mxu1 %v13119_v26  ;;  %v13226_v37 = vld [vmem:[#allocation11 + $0x24] ss:$16 sps:$4 sm:$0xff]   ;;  %v13228_v26 = vld [vmem:[#allocation11 + $0x2c] ss:$16 sps:$4 sm:$0xff]  }
 0x96d   :  { %7297 = vmatprep.subr.bf16.mxu0 %v13123_v13  ;;  %7338 = vmatprep.subr.bf16.mxu1 %v13125_v28  ;;  %v13232_v28 = vld [vmem:[#allocation11 + $0x20] ss:$16 sps:$4 sm:$0xff]  }
 0x970   :  { %7298 = vmatpush1.bf16.msra.mxu0 %v13129_v42  ;;  %7339 = vmatpush1.bf16.msra.mxu1 %v13131_v29  ;;  %v13234_v42 = vld [vmem:[#allocation11 + $0x28] ss:$16 sps:$4 sm:$0xff]   ;;  %v13238_v29 = vld [vmem:[#allocation11 + $0x44] ss:$16 sps:$4 sm:$0xff]  }
 0x971   :  { %7299 = vmatprep.subr.bf16.mxu0 %v13138_v31  ;;  %7340 = vmatprep.subr.bf16.mxu1 %v13140_v32  ;;  %v13246_v31 = vld [vmem:[#allocation11 + $0x40] ss:$16 sps:$4 sm:$0xff]   ;;  %v13248_v32 = vld [vmem:[#allocation11 + $0x48] ss:$16 sps:$4 sm:$0xff]  }
 0x974   :  { %7300 = vmatpush1.bf16.msra.mxu0 %v13145_v34  ;;  %7341 = vmatpush1.bf16.msra.mxu1 %v13147_v35  ;;  %v13254_v34 = vld [vmem:[#allocation11 + $0x6c] ss:$16 sps:$4 sm:$0xff]   ;;  %v13258_v35 = vld [vmem:[#allocation11 + $0x60] ss:$16 sps:$4 sm:$0xff]  }
 0x975   :  { %v11678_v15 = vpop.eup %11677  ;;  %7301 = vmatprep.subr.bf16.mxu0 %v13152_v36  ;;  %7342 = vmatprep.subr.bf16.mxu1 %v13154_v38  ;;  %v13264_v36 = vld [vmem:[#allocation11 + $0x84] ss:$16 sps:$4 sm:$0xff]   ;;  %v13266_v38 = vld [vmem:[#allocation11 + $0x8c] ss:$16 sps:$4 sm:$0xff]  }
 0x976   :  { %v4961_v16 = vmul.f32 %v11678_v15, %v4955_v14 }
 0x978   :  { %v4962_v17 = vpack.c.bf16 %v4961_v16, %v4961_v16  ;;  %7302 = vmatpush1.bf16.msra.mxu0 %v13157_v27  ;;  %7343 = vmatpush1.bf16.msra.mxu1 %v13161_v23  ;;  %v13288_v27 = vld [vmem:[#allocation11 + $0xc4] ss:$16 sps:$4 sm:$0xff]  }
 0x979   :  { %7303 = vmatprep.subr.bf16.mxu0 %v13163_v24  ;;  %7344 = vmatprep.subr.bf16.mxu1 %v13167_v52  ;;  %v13300_v23 = vld [vmem:[#allocation11 + $0xe4] ss:$16 sps:$4 sm:$0xff]   ;;  %v13302_v24 = vld [vmem:[#allocation11 + $0xec] ss:$16 sps:$4 sm:$0xff]  }
 0x97a   :  { %4964 = vst [vmem:[#allocation3] sm:$0xf] %v4962_v17  ;;  %4966 = vst [vmem:[#allocation5 + $0x1c] sm:$0xf] %v4962_v17  ;;  %v5000_v52 = vld [vmem:[%s13736_s6] sm:$0xf] }
 0x97b   :  { %7375 = vst [vmem:[#allocation3] sm:$0xf] %v11859_v0  ;;  %v5005_v46 = vrot.slane %v5000_v52, %v12457_v45  ;;  %v5009_v53 = vrot.slane %v5000_v52, %v12462_v47  ;;  %v5013_v58 = vrot.slane %v5000_v52, %v12465_v49  ;;  %v5017_v4 = vrot.slane %v5000_v52, %v12469_v56 }
 0x97c   :  { %7304 = vmatpush1.bf16.msra.mxu0 %v13172_v55  ;;  %7345 = vmatpush1.bf16.msra.mxu1 %v13174_v57 }
 0x97d   :  { %7574 = vmatprep.subr.bf16.mxu0 %v13213_v18  ;;  %7615 = vmatprep.subr.bf16.mxu1 %v13215_v19 }
 0x981   :  { %v7074_v13 = vld [vmem:[#allocation5 + $0x1c] sm:$0xf] }
 0x982   :  { %7322 = vmatmul.mubr.bf16.vlgmr.msra.gmra.mrb[60].mxu0 %v7074_v13  ;;  %7363 = vmatmul.mubr.bf16.vlgmr.msra.gmra.mrb[60].mxu1 %v7074_v13  ;;  %v7381_v50 = vld [vmem:[#allocation3] sm:$0xf] }
 0x983   :  { %7575 = vmatpush1.bf16.msra.mxu0 %v13222_v20  ;;  %7616 = vmatpush1.bf16.msra.mxu1 %v13224_v21 }
 0x984   :  { %7576 = vmatprep.subr.bf16.mxu0 %v13226_v37  ;;  %7617 = vmatprep.subr.bf16.mxu1 %v13228_v26 }
 0x985   :  { %7606 = vmatprep.mubr.bf16.mxu0 %v11859_v0  ;;  %7647 = vmatprep.mubr.bf16.mxu1 %v11859_v0 }
 0x987   :  { %7577 = vmatpush1.bf16.msra.mxu0 %v13232_v28  ;;  %7618 = vmatpush1.bf16.msra.mxu1 %v13234_v42 }
 0x988   :  { %7578 = vmatprep.subr.bf16.mxu0 %v13238_v29  ;;  %7619 = vmatprep.subr.bf16.mxu1 %v13240_v30 }
 0x98b   :  { %7579 = vmatpush1.bf16.msra.mxu0 %v13246_v31  ;;  %7620 = vmatpush1.bf16.msra.mxu1 %v13248_v32 }
 0x98c   :  { %7580 = vmatprep.subr.bf16.mxu0 %v13252_v33  ;;  %7621 = vmatprep.subr.bf16.mxu1 %v13254_v34 }
 0x98f   :  { %7581 = vmatpush1.bf16.msra.mxu0 %v13258_v35  ;;  %7622 = vmatpush1.bf16.msra.mxu1 %v13260_v41 }
 0x990   :  { %7582 = vmatprep.subr.bf16.mxu0 %v13264_v36  ;;  %7623 = vmatprep.subr.bf16.mxu1 %v13266_v38 }
 0x993   :  { %7583 = vmatpush1.bf16.msra.mxu0 %v13270_v39  ;;  %7624 = vmatpush1.bf16.msra.mxu1 %v13272_v40 }
 0x994   :  { %7584 = vmatprep.subr.bf16.mxu0 %v13276_v51  ;;  %7625 = vmatprep.subr.bf16.mxu1 %v13278_v5 }
 0x997   :  { %7585 = vmatpush1.bf16.msra.mxu0 %v13282_v6  ;;  %7626 = vmatpush1.bf16.msra.mxu1 %v13284_v9 }
 0x998   :  { %7586 = vmatprep.subr.bf16.mxu0 %v13288_v27  ;;  %7627 = vmatprep.subr.bf16.mxu1 %v13290_v7 }
 0x99b   :  { %7587 = vmatpush1.bf16.msra.mxu0 %v13294_v10  ;;  %7628 = vmatpush1.bf16.msra.mxu1 %v13296_v8 }
 0x99c   :  { %7588 = vmatprep.subr.bf16.mxu0 %v13300_v23  ;;  %7629 = vmatprep.subr.bf16.mxu1 %v13302_v24 }
 0x99f   :  { %7589 = vmatpush1.bf16.msra.mxu0 %v13306_v25  ;;  %7630 = vmatpush1.bf16.msra.mxu1 %v13308_v48 }
 0x9a0   :  { %7879 = vmatprep.subr.bf16.mxu0 %v13213_v18  ;;  %7920 = vmatprep.subr.bf16.mxu1 %v13215_v19 }
 0x9a2   :  { %7607 = vmatmul.mubr.bf16.vlgmr.msra.gmra.mrb[32].mxu0 %v7381_v50  ;;  %7648 = vmatmul.mubr.bf16.vlgmr.msra.gmra.mrb[32].mxu1 %v7381_v50 }
 0x9a3   :  { %7880 = vmatpush1.bf16.msra.mxu0 %v13222_v20  ;;  %7921 = vmatpush1.bf16.msra.mxu1 %v13224_v21 }
 0x9a4   :  { %7881 = vmatprep.subr.bf16.mxu0 %v13226_v37  ;;  %7922 = vmatprep.subr.bf16.mxu1 %v13228_v26 }
 0x9a5   :  { %7911 = vmatprep.mubr.bf16.mxu0 %v11859_v0  ;;  %7952 = vmatprep.mubr.bf16.mxu1 %v11859_v0 }
 0x9a7   :  { %7882 = vmatpush1.bf16.msra.mxu0 %v13232_v28  ;;  %7923 = vmatpush1.bf16.msra.mxu1 %v13234_v42 }
 0x9a8   :  { %7883 = vmatprep.subr.bf16.mxu0 %v13238_v29  ;;  %7924 = vmatprep.subr.bf16.mxu1 %v13240_v30 }
 0x9ab   :  { %7884 = vmatpush1.bf16.msra.mxu0 %v13246_v31  ;;  %7925 = vmatpush1.bf16.msra.mxu1 %v13248_v32 }
 0x9ac   :  { %7885 = vmatprep.subr.bf16.mxu0 %v13252_v33  ;;  %7926 = vmatprep.subr.bf16.mxu1 %v13254_v34 }
 0x9af   :  { %7886 = vmatpush1.bf16.msra.mxu0 %v13258_v35  ;;  %7927 = vmatpush1.bf16.msra.mxu1 %v13260_v41 }
 0x9b0   :  { %7887 = vmatprep.subr.bf16.mxu0 %v13264_v36  ;;  %7928 = vmatprep.subr.bf16.mxu1 %v13266_v38 }
 0x9b3   :  { %7888 = vmatpush1.bf16.msra.mxu0 %v13270_v39  ;;  %7929 = vmatpush1.bf16.msra.mxu1 %v13272_v40 }
 0x9b4   :  { %7889 = vmatprep.subr.bf16.mxu0 %v13276_v51  ;;  %7930 = vmatprep.subr.bf16.mxu1 %v13278_v5 }
 0x9b7   :  { %7890 = vmatpush1.bf16.msra.mxu0 %v13282_v6  ;;  %7931 = vmatpush1.bf16.msra.mxu1 %v13284_v9 }
 0x9b8   :  { %7891 = vmatprep.subr.bf16.mxu0 %v13288_v27  ;;  %7932 = vmatprep.subr.bf16.mxu1 %v13290_v7 }
 0x9bb   :  { %7892 = vmatpush1.bf16.msra.mxu0 %v13294_v10  ;;  %7933 = vmatpush1.bf16.msra.mxu1 %v13296_v8 }
 0x9bc   :  { %7893 = vmatprep.subr.bf16.mxu0 %v13300_v23  ;;  %7934 = vmatprep.subr.bf16.mxu1 %v13302_v24 }
 0x9bf   :  { %7894 = vmatpush1.bf16.msra.mxu0 %v13306_v25  ;;  %7935 = vmatpush1.bf16.msra.mxu1 %v13308_v48 }
 0x9c0   :  { %8184 = vmatprep.subr.bf16.mxu0 %v13213_v18  ;;  %8225 = vmatprep.subr.bf16.mxu1 %v13215_v19 }
 0xa75   :  { %v7608_v54 = vpop.f32.mrb[32].mxu0  ;;  %v7649_v55 = vpop.f32.mrb[32].mxu1 }
 0xa76   :  { %v11038_v57 = vadd.f32 %v7608_v54, %v5005_v46  ;;  %v7610_v60 = vpop.f32.mrb[33].mxu0  ;;  %v7651_v61 = vpop.f32.mrb[33].mxu1  ;;  %v11040_v3 = vadd.f32 %v7649_v55, %v5013_v58 }
 0xa77   :  { %v11039_v59 = vadd.f32 %v7610_v60, %v5009_v53  ;;  %v7612_v62 = vpop.f32.mrb[34].mxu0  ;;  %v7653_v63 = vpop.f32.mrb[34].mxu1  ;;  %v11041_v11 = vadd.f32 %v7651_v61, %v5017_v4 }
 0xa78   :  { %v7660_v1 = vmul.f32 0.5, %v11038_v57  ;;  %v7613_v43 = vpop.f32.mrb[35].mxu0  ;;  %v7654_v44 = vpop.f32.mrb[35].mxu1  ;;  %v5301_v62 = vld [vmem:[%s13736_s6] sm:$0xf] }
 0xa79   :  { %v7664_v2 = vmul.f32 0.5, %v11039_v59  ;;  %v7669_v12 = vmul.f32 0.5, %v11041_v11  ;;  %v5306_v63 = vrot.slane %v5301_v62, %v12457_v45 }
 0xa7a   :  { %11679 = vtanh.f32 %v7660_v1  ;;  %v5310_v1 = vrot.slane %v5301_v62, %v12462_v47 }
 0xa7b   :  { %11681 = vtanh.f32 %v7664_v2 }
 0xa7c   :  { %11683 = vtanh.f32 %v11040_v3  ;;  %v5314_v3 = vrot.slane %v5301_v62, %v12465_v49 }
 0xa7d   :  { %11685 = vtanh.f32 %v7669_v12 }
 0xa84   :  { %v11680_v22 = vpop.eup %11679 }
 0xa85   :  { %v11682_v14 = vpop.eup %11681  ;;  %v7662_v15 = vmul.f32 0.5, %v11680_v22 }
 0xa86   :  { %v7666_v16 = vmul.f32 0.5, %v11682_v14  ;;  %v11684_v13 = vpop.eup %11683 }
 0xa87   :  { %v7663_v17 = vadd.f32 0.5, %v7662_v15  ;;  %v11686_v55 = vpop.eup %11685 }
 0xa88   :  { %v7667_v50 = vadd.f32 0.5, %v7666_v16  ;;  %v7671_v52 = vmul.f32 0.5, %v11686_v55 }
 0xa89   :  { %v7675_v46 = vmul.f32 %v11684_v13, %v7663_v17  ;;  %v5318_v13 = vrot.slane %v5301_v62, %v12469_v56 }
 0xa8a   :  { %v7674_v53 = vmul.f32 0.0, %v7667_v50  ;;  %v7672_v57 = vadd.f32 0.5, %v7671_v52 }
 0xa8c   :  { %v13357_v54 = vadd.f32 %v7675_v46, %v7674_v53 }
 0xa8e   :  { %11687 = vtanh.f32 %v13357_v54 }
 0xa98   :  { %v11688_v58 = vpop.eup %11687 }
 0xa99   :  { %v7678_v60 = vmul.f32 %v11688_v58, %v7672_v57 }
 0xa9b   :  { %v7679_v61 = vpack.c.bf16 %v7678_v60, %v7678_v60 }
 0xa9d   :  { %7681 = vst [vmem:[#allocation3] sm:$0xf] %v7679_v61 }
 0xaa4   :  { %v7686_v59 = vld [vmem:[#allocation3] sm:$0xf] }
 0xaa5   :  { %7912 = vmatmul.mubr.bf16.vlgmr.msra.gmra.mrb[36].mxu0 %v7686_v59  ;;  %7953 = vmatmul.mubr.bf16.vlgmr.msra.gmra.mrb[36].mxu1 %v7686_v59 }
 0xaa6   :  { %8185 = vmatpush1.bf16.msra.mxu0 %v13222_v20  ;;  %8226 = vmatpush1.bf16.msra.mxu1 %v13224_v21 }
 0xaa7   :  { %8186 = vmatprep.subr.bf16.mxu0 %v13226_v37  ;;  %8227 = vmatprep.subr.bf16.mxu1 %v13228_v26 }
 0xaa8   :  { %8216 = vmatprep.mubr.bf16.mxu0 %v11859_v0  ;;  %8257 = vmatprep.mubr.bf16.mxu1 %v11859_v0 }
 0xaaa   :  { %8187 = vmatpush1.bf16.msra.mxu0 %v13232_v28  ;;  %8228 = vmatpush1.bf16.msra.mxu1 %v13234_v42 }
 0xaab   :  { %8188 = vmatprep.subr.bf16.mxu0 %v13238_v29  ;;  %8229 = vmatprep.subr.bf16.mxu1 %v13240_v30 }
 0xaae   :  { %8189 = vmatpush1.bf16.msra.mxu0 %v13246_v31  ;;  %8230 = vmatpush1.bf16.msra.mxu1 %v13248_v32 }
 0xaaf   :  { %8190 = vmatprep.subr.bf16.mxu0 %v13252_v33  ;;  %8231 = vmatprep.subr.bf16.mxu1 %v13254_v34 }
 0xab2   :  { %8191 = vmatpush1.bf16.msra.mxu0 %v13258_v35  ;;  %8232 = vmatpush1.bf16.msra.mxu1 %v13260_v41 }
 0xab3   :  { %8192 = vmatprep.subr.bf16.mxu0 %v13264_v36  ;;  %8233 = vmatprep.subr.bf16.mxu1 %v13266_v38 }
 0xab6   :  { %8193 = vmatpush1.bf16.msra.mxu0 %v13270_v39  ;;  %8234 = vmatpush1.bf16.msra.mxu1 %v13272_v40 }
 0xab7   :  { %8194 = vmatprep.subr.bf16.mxu0 %v13276_v51  ;;  %8235 = vmatprep.subr.bf16.mxu1 %v13278_v5 }
 0xaba   :  { %8195 = vmatpush1.bf16.msra.mxu0 %v13282_v6  ;;  %8236 = vmatpush1.bf16.msra.mxu1 %v13284_v9 }
 0xabb   :  { %8196 = vmatprep.subr.bf16.mxu0 %v13288_v27  ;;  %8237 = vmatprep.subr.bf16.mxu1 %v13290_v7 }
 0xabe   :  { %8197 = vmatpush1.bf16.msra.mxu0 %v13294_v10  ;;  %8238 = vmatpush1.bf16.msra.mxu1 %v13296_v8 }
 0xabf   :  { %8198 = vmatprep.subr.bf16.mxu0 %v13300_v23  ;;  %8239 = vmatprep.subr.bf16.mxu1 %v13302_v24 }
 0xac2   :  { %8199 = vmatpush1.bf16.msra.mxu0 %v13306_v25  ;;  %8240 = vmatpush1.bf16.msra.mxu1 %v13308_v48 }
 0xac3   :  { %8489 = vmatprep.subr.bf16.mxu0 %v13213_v18  ;;  %8530 = vmatprep.subr.bf16.mxu1 %v13215_v19 }
 0xb78   :  { %v7913_v43 = vpop.f32.mrb[36].mxu0  ;;  %v7954_v44 = vpop.f32.mrb[36].mxu1 }
 0xb79   :  { %v11042_v2 = vadd.f32 %v7913_v43, %v5306_v63  ;;  %v7915_v4 = vpop.f32.mrb[37].mxu0  ;;  %v7956_v11 = vpop.f32.mrb[37].mxu1  ;;  %v11044_v17 = vadd.f32 %v7954_v44, %v5314_v3 }
 0xb7a   :  { %v11043_v12 = vadd.f32 %v7915_v4, %v5310_v1  ;;  %v7917_v22 = vpop.f32.mrb[38].mxu0  ;;  %v7958_v18 = vpop.f32.mrb[38].mxu1  ;;  %v11045_v50 = vadd.f32 %v7956_v11, %v5318_v13  ;;  %v13454_v13 = vld [vmem:[#allocation11] ss:$16 sps:$4 sm:$0xff]  }
 0xb7b   :  { %v7965_v14 = vmul.f32 0.5, %v11042_v2  ;;  %v7918_v19 = vpop.f32.mrb[39].mxu0  ;;  %v7959_v15 = vpop.f32.mrb[39].mxu1 }
 0xb7c   :  { %v7969_v16 = vmul.f32 0.5, %v11043_v12  ;;  %v7974_v46 = vmul.f32 0.5, %v11045_v50  ;;  %v13456_v50 = vld [vmem:[#allocation11 + $0x8] ss:$16 sps:$4 sm:$0xff]  }
 0xb7d   :  { %11689 = vtanh.f32 %v7965_v14 }
 0xb7e   :  { %11691 = vtanh.f32 %v7969_v16  ;;  %v13450_v16 = vld [vmem:[#allocation11 + $0x4] ss:$16 sps:$4 sm:$0xff]  }
 0xb7f   :  { %11693 = vtanh.f32 %v11044_v17  ;;  %v13452_v17 = vld [vmem:[#allocation11 + $0xc] ss:$16 sps:$4 sm:$0xff]  }
 0xb80   :  { %11695 = vtanh.f32 %v7974_v46  ;;  %v13462_v46 = vld [vmem:[#allocation11 + $0x24] ss:$16 sps:$4 sm:$0xff]  }
 0xb87   :  { %v11690_v53 = vpop.eup %11689 }
 0xb88   :  { %v11692_v55 = vpop.eup %11691  ;;  %v7967_v52 = vmul.f32 0.5, %v11690_v53  ;;  %v13464_v53 = vld [vmem:[#allocation11 + $0x2c] ss:$16 sps:$4 sm:$0xff]  }
 0xb89   :  { %v7971_v57 = vmul.f32 0.5, %v11692_v55  ;;  %v11694_v60 = vpop.eup %11693  ;;  %v13466_v55 = vld [vmem:[#allocation11 + $0x20] ss:$16 sps:$4 sm:$0xff]  }
 0xb8a   :  { %v7968_v58 = vadd.f32 0.5, %v7967_v52  ;;  %v11696_v62 = vpop.eup %11695  ;;  %v13468_v52 = vld [vmem:[#allocation11 + $0x28] ss:$16 sps:$4 sm:$0xff]  }
 0xb8b   :  { %v7972_v61 = vadd.f32 0.5, %v7971_v57  ;;  %v7976_v43 = vmul.f32 0.5, %v11696_v62  ;;  %v13474_v57 = vld [vmem:[#allocation11 + $0x44] ss:$16 sps:$4 sm:$0xff]   ;;  %v13492_v62 = vld [vmem:[#allocation11 + $0x68] ss:$16 sps:$4 sm:$0xff]  }
 0xb8c   :  { %v7980_v59 = vmul.f32 %v11694_v60, %v7968_v58  ;;  %v13476_v58 = vld [vmem:[#allocation11 + $0x4c] ss:$16 sps:$4 sm:$0xff]   ;;  %v13478_v60 = vld [vmem:[#allocation11 + $0x40] ss:$16 sps:$4 sm:$0xff]  }
 0xb8d   :  { %v7979_v63 = vmul.f32 %v7972_v61, %v13357_v54  ;;  %v7977_v44 = vadd.f32 0.5, %v7976_v43  ;;  %v13480_v61 = vld [vmem:[#allocation11 + $0x48] ss:$16 sps:$4 sm:$0xff]   ;;  %v13498_v43 = vld [vmem:[#allocation11 + $0x84] ss:$16 sps:$4 sm:$0xff]  }
 0xb8f   :  { %v13402_v1 = vadd.f32 %v7980_v59, %v7979_v63  ;;  %v13486_v59 = vld [vmem:[#allocation11 + $0x64] ss:$16 sps:$4 sm:$0xff]   ;;  %v13488_v63 = vld [vmem:[#allocation11 + $0x6c] ss:$16 sps:$4 sm:$0xff]  }
 0xb91   :  { %11697 = vtanh.f32 %v13402_v1 }
 0xb9b   :  { %v11698_v2 = vpop.eup %11697 }
 0xb9c   :  { %v7983_v3 = vmul.f32 %v11698_v2, %v7977_v44  ;;  %v13500_v44 = vld [vmem:[#allocation11 + $0x8c] ss:$16 sps:$4 sm:$0xff]   ;;  %v13502_v2 = vld [vmem:[#allocation11 + $0x80] ss:$16 sps:$4 sm:$0xff]  }
 0xb9e   :  { %v7984_v4 = vpack.c.bf16 %v7983_v3, %v7983_v3  ;;  %v13504_v3 = vld [vmem:[#allocation11 + $0x88] ss:$16 sps:$4 sm:$0xff]  }
 0xba0   :  { %7986 = vst [vmem:[#allocation3] sm:$0xf] %v7984_v4  ;;  %v13510_v4 = vld [vmem:[#allocation11 + $0xa4] ss:$16 sps:$4 sm:$0xff]  }
 0xba7   :  { %v7991_v11 = vld [vmem:[#allocation3] sm:$0xf] }
 0xba8   :  { %8217 = vmatmul.mubr.bf16.vlgmr.msra.gmra.mrb[40].mxu0 %v7991_v11  ;;  %8258 = vmatmul.mubr.bf16.vlgmr.msra.gmra.mrb[40].mxu1 %v7991_v11  ;;  %v13512_v11 = vld [vmem:[#allocation11 + $0xac] ss:$16 sps:$4 sm:$0xff]  }
 0xba9   :  { %8490 = vmatpush1.bf16.msra.mxu0 %v13222_v20  ;;  %8531 = vmatpush1.bf16.msra.mxu1 %v13224_v21  ;;  %v5602_v20 = vld [vmem:[%s13736_s6] sm:$0xf] }
 0xbaa   :  { %8491 = vmatprep.subr.bf16.mxu0 %v13226_v37  ;;  %8532 = vmatprep.subr.bf16.mxu1 %v13228_v26  ;;  %v5607_v21 = vrot.slane %v5602_v20, %v12457_v45  ;;  %v5611_v37 = vrot.slane %v5602_v20, %v12462_v47 }
 0xbab   :  { %8521 = vmatprep.mubr.bf16.mxu0 %v11859_v0  ;;  %8562 = vmatprep.mubr.bf16.mxu1 %v11859_v0 }
 0xbad   :  { %8492 = vmatpush1.bf16.msra.mxu0 %v13232_v28  ;;  %8533 = vmatpush1.bf16.msra.mxu1 %v13234_v42 }
 0xbae   :  { %8493 = vmatprep.subr.bf16.mxu0 %v13238_v29  ;;  %8534 = vmatprep.subr.bf16.mxu1 %v13240_v30  ;;  %v5615_v29 = vrot.slane %v5602_v20, %v12465_v49 }
 0xbb1   :  { %8494 = vmatpush1.bf16.msra.mxu0 %v13246_v31  ;;  %8535 = vmatpush1.bf16.msra.mxu1 %v13248_v32 }
 0xbb2   :  { %8495 = vmatprep.subr.bf16.mxu0 %v13252_v33  ;;  %8536 = vmatprep.subr.bf16.mxu1 %v13254_v34 }
 0xbb5   :  { %8496 = vmatpush1.bf16.msra.mxu0 %v13258_v35  ;;  %8537 = vmatpush1.bf16.msra.mxu1 %v13260_v41 }
 0xbb6   :  { %8497 = vmatprep.subr.bf16.mxu0 %v13264_v36  ;;  %8538 = vmatprep.subr.bf16.mxu1 %v13266_v38 }
 0xbb9   :  { %8498 = vmatpush1.bf16.msra.mxu0 %v13270_v39  ;;  %8539 = vmatpush1.bf16.msra.mxu1 %v13272_v40  ;;  %v5619_v40 = vrot.slane %v5602_v20, %v12469_v56  ;;  %v13514_v20 = vld [vmem:[#allocation11 + $0xa0] ss:$16 sps:$4 sm:$0xff]  }
 0xbba   :  { %8499 = vmatprep.subr.bf16.mxu0 %v13276_v51  ;;  %8540 = vmatprep.subr.bf16.mxu1 %v13278_v5 }
 0xbbd   :  { %8500 = vmatpush1.bf16.msra.mxu0 %v13282_v6  ;;  %8541 = vmatpush1.bf16.msra.mxu1 %v13284_v9 }
 0xbbe   :  { %8501 = vmatprep.subr.bf16.mxu0 %v13288_v27  ;;  %8542 = vmatprep.subr.bf16.mxu1 %v13290_v7 }
 0xbc1   :  { %8502 = vmatpush1.bf16.msra.mxu0 %v13294_v10  ;;  %8543 = vmatpush1.bf16.msra.mxu1 %v13296_v8 }
 0xbc2   :  { %8503 = vmatprep.subr.bf16.mxu0 %v13300_v23  ;;  %8544 = vmatprep.subr.bf16.mxu1 %v13302_v24 }
 0xbc5   :  { %8504 = vmatpush1.bf16.msra.mxu0 %v13306_v25  ;;  %8545 = vmatpush1.bf16.msra.mxu1 %v13308_v48 }
 0xbc6   :  { %8794 = vmatprep.subr.bf16.mxu0 %v13450_v16  ;;  %8835 = vmatprep.subr.bf16.mxu1 %v13452_v17 }
 0xc7b   :  { %v8218_v26 = vpop.f32.mrb[40].mxu0  ;;  %v8259_v28 = vpop.f32.mrb[40].mxu1 }
 0xc7c   :  { %v11046_v42 = vadd.f32 %v8218_v26, %v5607_v21  ;;  %v8220_v30 = vpop.f32.mrb[41].mxu0  ;;  %v8261_v31 = vpop.f32.mrb[41].mxu1  ;;  %v11048_v39 = vadd.f32 %v8259_v28, %v5615_v29  ;;  %v13516_v21 = vld [vmem:[#allocation11 + $0xa8] ss:$16 sps:$4 sm:$0xff]   ;;  %v13524_v26 = vld [vmem:[#allocation11 + $0xcc] ss:$16 sps:$4 sm:$0xff]  }
 0xc7d   :  { %v11047_v32 = vadd.f32 %v8220_v30, %v5611_v37  ;;  %v8222_v33 = vpop.f32.mrb[42].mxu0  ;;  %v8263_v34 = vpop.f32.mrb[42].mxu1  ;;  %v11049_v51 = vadd.f32 %v8261_v31, %v5619_v40  ;;  %v13522_v37 = vld [vmem:[#allocation11 + $0xc4] ss:$16 sps:$4 sm:$0xff]   ;;  %v13526_v28 = vld [vmem:[#allocation11 + $0xc0] ss:$16 sps:$4 sm:$0xff]  }
 0xc7e   :  { %v8270_v35 = vmul.f32 0.5, %v11046_v42  ;;  %v8223_v41 = vpop.f32.mrb[43].mxu0  ;;  %v8264_v36 = vpop.f32.mrb[43].mxu1  ;;  %v13528_v42 = vld [vmem:[#allocation11 + $0xc8] ss:$16 sps:$4 sm:$0xff]  }
 0xc7f   :  { %v8274_v38 = vmul.f32 0.5, %v11047_v32  ;;  %v8279_v5 = vmul.f32 0.5, %v11049_v51  ;;  %v13532_v29 = vld [vmem:[#allocation11 + $0xe4] ss:$16 sps:$4 sm:$0xff]   ;;  %v13534_v30 = vld [vmem:[#allocation11 + $0xec] ss:$16 sps:$4 sm:$0xff]  }
 0xc80   :  { %11699 = vtanh.f32 %v8270_v35  ;;  %v13538_v31 = vld [vmem:[#allocation11 + $0xe0] ss:$16 sps:$4 sm:$0xff]   ;;  %v13540_v32 = vld [vmem:[#allocation11 + $0xe8] ss:$16 sps:$4 sm:$0xff]   ;;  %v5903_v33 = vld [vmem:[%s13736_s6] sm:$0xf] }
 0xc81   :  { %11701 = vtanh.f32 %v8274_v38  ;;  %v5908_v34 = vrot.slane %v5903_v33, %v12457_v45  ;;  %v5912_v35 = vrot.slane %v5903_v33, %v12462_v47 }
 0xc82   :  { %11703 = vtanh.f32 %v11048_v39  ;;  %v5916_v39 = vrot.slane %v5903_v33, %v12465_v49 }
 0xc83   :  { %11705 = vtanh.f32 %v8279_v5 }
 0xc8a   :  { %v11700_v6 = vpop.eup %11699 }
 0xc8b   :  { %v11702_v9 = vpop.eup %11701  ;;  %v8272_v27 = vmul.f32 0.5, %v11700_v6 }
 0xc8c   :  { %v8276_v7 = vmul.f32 0.5, %v11702_v9  ;;  %v11704_v8 = vpop.eup %11703 }
 0xc8d   :  { %v8273_v10 = vadd.f32 0.5, %v8272_v27  ;;  %v11706_v54 = vpop.eup %11705 }
 0xc8e   :  { %v8277_v23 = vadd.f32 0.5, %v8276_v7  ;;  %v8281_v12 = vmul.f32 0.5, %v11706_v54 }
 0xc8f   :  { %v8285_v24 = vmul.f32 %v11704_v8, %v8273_v10 }
 0xc90   :  { %v8284_v25 = vmul.f32 %v8277_v23, %v13402_v1  ;;  %v8282_v22 = vadd.f32 0.5, %v8281_v12  ;;  %v13490_v1 = vld [vmem:[#allocation11 + $0x60] ss:$16 sps:$4 sm:$0xff]  }
 0xc92   :  { %v13445_v48 = vadd.f32 %v8285_v24, %v8284_v25  ;;  %v5920_v24 = vrot.slane %v5903_v33, %v12469_v56 }
 0xc94   :  { %11707 = vtanh.f32 %v13445_v48 }
 0xc9e   :  { %v11708_v18 = vpop.eup %11707 }
 0xc9f   :  { %v8288_v14 = vmul.f32 %v11708_v18, %v8282_v22 }
 0xca1   :  { %v8289_v19 = vpack.c.bf16 %v8288_v14, %v8288_v14 }
 0xca3   :  { %8291 = vst [vmem:[#allocation3] sm:$0xf] %v8289_v19 }
 0xcaa   :  { %v8296_v15 = vld [vmem:[#allocation3] sm:$0xf] }
 0xcab   :  { %8522 = vmatmul.mubr.bf16.vlgmr.msra.gmra.mrb[44].mxu0 %v8296_v15  ;;  %8563 = vmatmul.mubr.bf16.vlgmr.msra.gmra.mrb[44].mxu1 %v8296_v15 }
 0xcac   :  { %8826 = vmatprep.mubr.bf16.mxu0 %v11859_v0  ;;  %8867 = vmatprep.mubr.bf16.mxu1 %v11859_v0 }
 0xcad   :  { %8795 = vmatpush1.bf16.msra.mxu0 %v13454_v13  ;;  %8836 = vmatpush1.bf16.msra.mxu1 %v13456_v50 }
 0xcae   :  { %8796 = vmatprep.subr.bf16.mxu0 %v13462_v46  ;;  %8837 = vmatprep.subr.bf16.mxu1 %v13464_v53 }
 0xcb1   :  { %8797 = vmatpush1.bf16.msra.mxu0 %v13466_v55  ;;  %8838 = vmatpush1.bf16.msra.mxu1 %v13468_v52 }
 0xcb2   :  { %8798 = vmatprep.subr.bf16.mxu0 %v13474_v57  ;;  %8839 = vmatprep.subr.bf16.mxu1 %v13476_v58 }
 0xcb5   :  { %8799 = vmatpush1.bf16.msra.mxu0 %v13478_v60  ;;  %8840 = vmatpush1.bf16.msra.mxu1 %v13480_v61 }
 0xcb6   :  { %8800 = vmatprep.subr.bf16.mxu0 %v13486_v59  ;;  %8841 = vmatprep.subr.bf16.mxu1 %v13488_v63 }
 0xcb9   :  { %8801 = vmatpush1.bf16.msra.mxu0 %v13490_v1  ;;  %8842 = vmatpush1.bf16.msra.mxu1 %v13492_v62 }
 0xcba   :  { %8802 = vmatprep.subr.bf16.mxu0 %v13498_v43  ;;  %8843 = vmatprep.subr.bf16.mxu1 %v13500_v44 }
 0xcbd   :  { %8803 = vmatpush1.bf16.msra.mxu0 %v13502_v2  ;;  %8844 = vmatpush1.bf16.msra.mxu1 %v13504_v3 }
 0xcbe   :  { %8804 = vmatprep.subr.bf16.mxu0 %v13510_v4  ;;  %8845 = vmatprep.subr.bf16.mxu1 %v13512_v11 }
 0xcc1   :  { %8805 = vmatpush1.bf16.msra.mxu0 %v13514_v20  ;;  %8846 = vmatpush1.bf16.msra.mxu1 %v13516_v21 }
 0xcc2   :  { %8806 = vmatprep.subr.bf16.mxu0 %v13522_v37  ;;  %8847 = vmatprep.subr.bf16.mxu1 %v13524_v26 }
 0xcc5   :  { %8807 = vmatpush1.bf16.msra.mxu0 %v13526_v28  ;;  %8848 = vmatpush1.bf16.msra.mxu1 %v13528_v42 }
 0xcc6   :  { %8808 = vmatprep.subr.bf16.mxu0 %v13532_v29  ;;  %8849 = vmatprep.subr.bf16.mxu1 %v13534_v30 }
 0xcc9   :  { %8809 = vmatpush1.bf16.msra.mxu0 %v13538_v31  ;;  %8850 = vmatpush1.bf16.msra.mxu1 %v13540_v32 }
 0xcca   :  { %9099 = vmatprep.subr.bf16.mxu0 %v13450_v16  ;;  %9140 = vmatprep.subr.bf16.mxu1 %v13452_v17 }
 0xd7e   :  { %v8523_v41 = vpop.f32.mrb[44].mxu0  ;;  %v8564_v36 = vpop.f32.mrb[44].mxu1 }
 0xd7f   :  { %v11050_v38 = vadd.f32 %v8523_v41, %v5908_v34  ;;  %v8525_v40 = vpop.f32.mrb[45].mxu0  ;;  %v8566_v51 = vpop.f32.mrb[45].mxu1  ;;  %v11052_v23 = vadd.f32 %v8564_v36, %v5916_v39 }
 0xd80   :  { %v11051_v5 = vadd.f32 %v8525_v40, %v5912_v35  ;;  %v8527_v6 = vpop.f32.mrb[46].mxu0  ;;  %v8568_v9 = vpop.f32.mrb[46].mxu1  ;;  %v11053_v25 = vadd.f32 %v8566_v51, %v5920_v24 }
 0xd81   :  { %v8575_v27 = vmul.f32 0.5, %v11050_v38  ;;  %v8528_v7 = vpop.f32.mrb[47].mxu0  ;;  %v8569_v10 = vpop.f32.mrb[47].mxu1 }
 0xd82   :  { %v8579_v8 = vmul.f32 0.5, %v11051_v5  ;;  %v8584_v54 = vmul.f32 0.5, %v11053_v25 }
 0xd83   :  { %11709 = vtanh.f32 %v8575_v27 }
 0xd84   :  { %11711 = vtanh.f32 %v8579_v8 }
 0xd85   :  { %11713 = vtanh.f32 %v11052_v23 }
 0xd86   :  { %11715 = vtanh.f32 %v8584_v54 }
 0xd8d   :  { %v11710_v12 = vpop.eup %11709 }
 0xd8e   :  { %v11712_v22 = vpop.eup %11711  ;;  %v8577_v18 = vmul.f32 0.5, %v11710_v12 }
 0xd8f   :  { %v8581_v14 = vmul.f32 0.5, %v11712_v22  ;;  %v11714_v15 = vpop.eup %11713 }
 0xd90   :  { %v8578_v19 = vadd.f32 0.5, %v8577_v18  ;;  %v11716_v33 = vpop.eup %11715 }
 0xd91   :  { %v8582_v34 = vadd.f32 0.5, %v8581_v14  ;;  %v8586_v36 = vmul.f32 0.5, %v11716_v33 }
 0xd92   :  { %v8590_v35 = vmul.f32 %v11714_v15, %v8578_v19 }
 0xd93   :  { %v8589_v41 = vmul.f32 %v8582_v34, %v13445_v48  ;;  %v8587_v39 = vadd.f32 0.5, %v8586_v36  ;;  %v6204_v48 = vld [vmem:[%s13736_s6] sm:$0xf] }
 0xd94   :  { %v6209_v9 = vrot.slane %v6204_v48, %v12457_v45  ;;  %v6213_v27 = vrot.slane %v6204_v48, %v12462_v47  ;;  %v6217_v23 = vrot.slane %v6204_v48, %v12465_v49 }
 0xd95   :  { %v13556_v38 = vadd.f32 %v8590_v35, %v8589_v41  ;;  %v6221_v35 = vrot.slane %v6204_v48, %v12469_v56 }
 0xd97   :  { %11717 = vtanh.f32 %v13556_v38 }
 0xda1   :  { %v11718_v40 = vpop.eup %11717 }
 0xda2   :  { %v8593_v51 = vmul.f32 %v11718_v40, %v8587_v39 }
 0xda4   :  { %v8594_v5 = vpack.c.bf16 %v8593_v51, %v8593_v51 }
 0xda6   :  { %8596 = vst [vmem:[#allocation3] sm:$0xf] %v8594_v5 }
 0xdad   :  { %v8601_v6 = vld [vmem:[#allocation3] sm:$0xf] }
 0xdae   :  { %8827 = vmatmul.mubr.bf16.vlgmr.msra.gmra.mrb[48].mxu0 %v8601_v6  ;;  %8868 = vmatmul.mubr.bf16.vlgmr.msra.gmra.mrb[48].mxu1 %v8601_v6 }
 0xdaf   :  { %9100 = vmatpush1.bf16.msra.mxu0 %v13454_v13  ;;  %9141 = vmatpush1.bf16.msra.mxu1 %v13456_v50 }
 0xdb0   :  { %9101 = vmatprep.subr.bf16.mxu0 %v13462_v46  ;;  %9142 = vmatprep.subr.bf16.mxu1 %v13464_v53 }
 0xdb1   :  { %9131 = vmatprep.mubr.bf16.mxu0 %v11859_v0  ;;  %9172 = vmatprep.mubr.bf16.mxu1 %v11859_v0 }
 0xdb3   :  { %9102 = vmatpush1.bf16.msra.mxu0 %v13466_v55  ;;  %9143 = vmatpush1.bf16.msra.mxu1 %v13468_v52 }
 0xdb4   :  { %9103 = vmatprep.subr.bf16.mxu0 %v13474_v57  ;;  %9144 = vmatprep.subr.bf16.mxu1 %v13476_v58 }
 0xdb7   :  { %9104 = vmatpush1.bf16.msra.mxu0 %v13478_v60  ;;  %9145 = vmatpush1.bf16.msra.mxu1 %v13480_v61 }
 0xdb8   :  { %9105 = vmatprep.subr.bf16.mxu0 %v13486_v59  ;;  %9146 = vmatprep.subr.bf16.mxu1 %v13488_v63 }
 0xdbb   :  { %9106 = vmatpush1.bf16.msra.mxu0 %v13490_v1  ;;  %9147 = vmatpush1.bf16.msra.mxu1 %v13492_v62 }
 0xdbc   :  { %9107 = vmatprep.subr.bf16.mxu0 %v13498_v43  ;;  %9148 = vmatprep.subr.bf16.mxu1 %v13500_v44 }
 0xdbf   :  { %9108 = vmatpush1.bf16.msra.mxu0 %v13502_v2  ;;  %9149 = vmatpush1.bf16.msra.mxu1 %v13504_v3 }
 0xdc0   :  { %9109 = vmatprep.subr.bf16.mxu0 %v13510_v4  ;;  %9150 = vmatprep.subr.bf16.mxu1 %v13512_v11 }
 0xdc3   :  { %9110 = vmatpush1.bf16.msra.mxu0 %v13514_v20  ;;  %9151 = vmatpush1.bf16.msra.mxu1 %v13516_v21 }
 0xdc4   :  { %9111 = vmatprep.subr.bf16.mxu0 %v13522_v37  ;;  %9152 = vmatprep.subr.bf16.mxu1 %v13524_v26 }
 0xdc7   :  { %9112 = vmatpush1.bf16.msra.mxu0 %v13526_v28  ;;  %9153 = vmatpush1.bf16.msra.mxu1 %v13528_v42 }
 0xdc8   :  { %9113 = vmatprep.subr.bf16.mxu0 %v13532_v29  ;;  %9154 = vmatprep.subr.bf16.mxu1 %v13534_v30 }
 0xdcb   :  { %9114 = vmatpush1.bf16.msra.mxu0 %v13538_v31  ;;  %9155 = vmatpush1.bf16.msra.mxu1 %v13540_v32 }
 0xdcc   :  { %9404 = vmatprep.subr.bf16.mxu0 %v13450_v16  ;;  %9445 = vmatprep.subr.bf16.mxu1 %v13452_v17 }
 0xe81   :  { %v8828_v7 = vpop.f32.mrb[48].mxu0  ;;  %v8869_v10 = vpop.f32.mrb[48].mxu1 }
 0xe82   :  { %v11054_v8 = vadd.f32 %v8828_v7, %v6209_v9  ;;  %v8830_v24 = vpop.f32.mrb[49].mxu0  ;;  %v8871_v25 = vpop.f32.mrb[49].mxu1  ;;  %v11056_v34 = vadd.f32 %v8869_v10, %v6217_v23 }
 0xe83   :  { %v11055_v54 = vadd.f32 %v8830_v24, %v6213_v27  ;;  %v8832_v12 = vpop.f32.mrb[50].mxu0  ;;  %v8873_v22 = vpop.f32.mrb[50].mxu1  ;;  %v11057_v41 = vadd.f32 %v8871_v25, %v6221_v35 }
 0xe84   :  { %v8880_v18 = vmul.f32 0.5, %v11054_v8  ;;  %v8833_v14 = vpop.f32.mrb[51].mxu0  ;;  %v8874_v19 = vpop.f32.mrb[51].mxu1 }
 0xe85   :  { %v8884_v15 = vmul.f32 0.5, %v11055_v54  ;;  %v8889_v33 = vmul.f32 0.5, %v11057_v41 }
 0xe86   :  { %11719 = vtanh.f32 %v8880_v18 }
 0xe87   :  { %11721 = vtanh.f32 %v8884_v15 }
 0xe88   :  { %11723 = vtanh.f32 %v11056_v34 }
 0xe89   :  { %11725 = vtanh.f32 %v8889_v33 }
 0xe90   :  { %v11720_v36 = vpop.eup %11719 }
 0xe91   :  { %v11722_v39 = vpop.eup %11721  ;;  %v8882_v40 = vmul.f32 0.5, %v11720_v36 }
 0xe92   :  { %v8886_v51 = vmul.f32 0.5, %v11722_v39  ;;  %v11724_v6 = vpop.eup %11723 }
 0xe93   :  { %v8883_v5 = vadd.f32 0.5, %v8882_v40  ;;  %v11726_v48 = vpop.eup %11725 }
 0xe94   :  { %v8887_v9 = vadd.f32 0.5, %v8886_v51  ;;  %v8891_v10 = vmul.f32 0.5, %v11726_v48 }
 0xe95   :  { %v8895_v27 = vmul.f32 %v11724_v6, %v8883_v5 }
 0xe96   :  { %v8894_v7 = vmul.f32 %v8887_v9, %v13556_v38  ;;  %v8892_v23 = vadd.f32 0.5, %v8891_v10  ;;  %v6505_v38 = vld [vmem:[%s13736_s6] sm:$0xf] }
 0xe97   :  { %v6510_v22 = vrot.slane %v6505_v38, %v12457_v45  ;;  %v6514_v18 = vrot.slane %v6505_v38, %v12462_v47  ;;  %v6518_v34 = vrot.slane %v6505_v38, %v12465_v49  ;;  %v6522_v6 = vrot.slane %v6505_v38, %v12469_v56 }
 0xe98   :  { %v13601_v8 = vadd.f32 %v8895_v27, %v8894_v7 }
 0xe9a   :  { %11727 = vtanh.f32 %v13601_v8 }
 0xea4   :  { %v11728_v24 = vpop.eup %11727 }
 0xea5   :  { %v8898_v25 = vmul.f32 %v11728_v24, %v8892_v23 }
 0xea7   :  { %v8899_v54 = vpack.c.bf16 %v8898_v25, %v8898_v25 }
 0xea9   :  { %8901 = vst [vmem:[#allocation3] sm:$0xf] %v8899_v54 }
 0xeb0   :  { %v8906_v12 = vld [vmem:[#allocation3] sm:$0xf] }
 0xeb1   :  { %9132 = vmatmul.mubr.bf16.vlgmr.msra.gmra.mrb[52].mxu0 %v8906_v12  ;;  %9173 = vmatmul.mubr.bf16.vlgmr.msra.gmra.mrb[52].mxu1 %v8906_v12 }
 0xeb2   :  { %9405 = vmatpush1.bf16.msra.mxu0 %v13454_v13  ;;  %9446 = vmatpush1.bf16.msra.mxu1 %v13456_v50 }
 0xeb3   :  { %9406 = vmatprep.subr.bf16.mxu0 %v13462_v46  ;;  %9447 = vmatprep.subr.bf16.mxu1 %v13464_v53 }
 0xeb4   :  { %9436 = vmatprep.mubr.bf16.mxu0 %v11859_v0  ;;  %9477 = vmatprep.mubr.bf16.mxu1 %v11859_v0 }
 0xeb6   :  { %9407 = vmatpush1.bf16.msra.mxu0 %v13466_v55  ;;  %9448 = vmatpush1.bf16.msra.mxu1 %v13468_v52 }
 0xeb7   :  { %9408 = vmatprep.subr.bf16.mxu0 %v13474_v57  ;;  %9449 = vmatprep.subr.bf16.mxu1 %v13476_v58 }
 0xeba   :  { %9409 = vmatpush1.bf16.msra.mxu0 %v13478_v60  ;;  %9450 = vmatpush1.bf16.msra.mxu1 %v13480_v61 }
 0xebb   :  { %9410 = vmatprep.subr.bf16.mxu0 %v13486_v59  ;;  %9451 = vmatprep.subr.bf16.mxu1 %v13488_v63 }
 0xebe   :  { %9411 = vmatpush1.bf16.msra.mxu0 %v13490_v1  ;;  %9452 = vmatpush1.bf16.msra.mxu1 %v13492_v62 }
 0xebf   :  { %9412 = vmatprep.subr.bf16.mxu0 %v13498_v43  ;;  %9453 = vmatprep.subr.bf16.mxu1 %v13500_v44 }
 0xec2   :  { %9413 = vmatpush1.bf16.msra.mxu0 %v13502_v2  ;;  %9454 = vmatpush1.bf16.msra.mxu1 %v13504_v3 }
 0xec3   :  { %9414 = vmatprep.subr.bf16.mxu0 %v13510_v4  ;;  %9455 = vmatprep.subr.bf16.mxu1 %v13512_v11 }
 0xec6   :  { %9415 = vmatpush1.bf16.msra.mxu0 %v13514_v20  ;;  %9456 = vmatpush1.bf16.msra.mxu1 %v13516_v21 }
 0xec7   :  { %9416 = vmatprep.subr.bf16.mxu0 %v13522_v37  ;;  %9457 = vmatprep.subr.bf16.mxu1 %v13524_v26 }
 0xeca   :  { %9417 = vmatpush1.bf16.msra.mxu0 %v13526_v28  ;;  %9458 = vmatpush1.bf16.msra.mxu1 %v13528_v42 }
 0xecb   :  { %9418 = vmatprep.subr.bf16.mxu0 %v13532_v29  ;;  %9459 = vmatprep.subr.bf16.mxu1 %v13534_v30 }
 0xece   :  { %9419 = vmatpush1.bf16.msra.mxu0 %v13538_v31  ;;  %9460 = vmatpush1.bf16.msra.mxu1 %v13540_v32 }
 0xecf   :  { %9709 = vmatprep.subr.bf16.mxu0 %v13450_v16  ;;  %9750 = vmatprep.subr.bf16.mxu1 %v13452_v17 }
 0xf84   :  { %v9133_v14 = vpop.f32.mrb[52].mxu0  ;;  %v9174_v19 = vpop.f32.mrb[52].mxu1 }
 0xf85   :  { %v11058_v15 = vadd.f32 %v9133_v14, %v6510_v22  ;;  %v9135_v35 = vpop.f32.mrb[53].mxu0  ;;  %v9176_v41 = vpop.f32.mrb[53].mxu1  ;;  %v11060_v5 = vadd.f32 %v9174_v19, %v6518_v34 }
 0xf86   :  { %v11059_v33 = vadd.f32 %v9135_v35, %v6514_v18  ;;  %v9137_v36 = vpop.f32.mrb[54].mxu0  ;;  %v9178_v16 = vpop.f32.mrb[54].mxu1  ;;  %v11061_v9 = vadd.f32 %v9176_v41, %v6522_v6  ;;  %v11593_v6 = vld [vmem:[%s13737_s7 + $0x10] sm:$0xff]  }
 0xf87   :  { %v9185_v39 = vmul.f32 0.5, %v11058_v15  ;;  %v9138_v17 = vpop.f32.mrb[55].mxu0  ;;  %v9179_v40 = vpop.f32.mrb[55].mxu1 }
 0xf88   :  { %v9189_v51 = vmul.f32 0.5, %v11059_v33  ;;  %v9194_v27 = vmul.f32 0.5, %v11061_v9  ;;  %v11591_v40 = vld [vmem:[%s13737_s7] sm:$0xff]   ;;  %v11594_v9 = vld [vmem:[%s13737_s7 + $0x18] sm:$0xff]  }
 0xf89   :  { %11729 = vtanh.f32 %v9185_v39 }
 0xf8a   :  { %11731 = vtanh.f32 %v9189_v51  ;;  %v11860_v51 = vmov 0.0  }
 0xf8b   :  { %11733 = vtanh.f32 %v11060_v5  ;;  %v11592_v5 = vld [vmem:[%s13737_s7 + $0x8] sm:$0xff]  }
 0xf8c   :  { %11735 = vtanh.f32 %v9194_v27  ;;  %v11595_v27 = vld [vmem:[%s13737_s7 + $0x20] sm:$0xff]  }
 0xf93   :  { %v11730_v7 = vpop.eup %11729 }
 0xf94   :  { %v11732_v48 = vpop.eup %11731  ;;  %v9187_v10 = vmul.f32 0.5, %v11730_v7  ;;  %v11596_v7 = vld [vmem:[%s13737_s7 + $0x28] sm:$0xff]  }
 0xf95   :  { %v9191_v23 = vmul.f32 0.5, %v11732_v48  ;;  %v11734_v25 = vpop.eup %11733  ;;  %v11597_v48 = vld [vmem:[%s13737_s7 + $0x30] sm:$0xff]  }
 0xf96   :  { %v9188_v24 = vadd.f32 0.5, %v9187_v10  ;;  %v11736_v38 = vpop.eup %11735  ;;  %v11598_v10 = vld [vmem:[%s13737_s7 + $0x38] sm:$0xff]  }
 0xf97   :  { %v9192_v54 = vadd.f32 0.5, %v9191_v23  ;;  %v9196_v14 = vmul.f32 0.5, %v11736_v38  ;;  %v7107_v23 = vld [vmem:[%s13736_s6] sm:$0xf] }
 0xf98   :  { %v9200_v12 = vmul.f32 %v11734_v25, %v9188_v24  ;;  %v7112_v24 = vrot.slane %v7107_v23, %v12457_v45  ;;  %v7116_v25 = vrot.slane %v7107_v23, %v12462_v47 }
 0xf99   :  { %v9199_v22 = vmul.f32 %v9192_v54, %v13601_v8  ;;  %v9197_v19 = vadd.f32 0.5, %v9196_v14 }
 0xf9b   :  { %v13646_v18 = vadd.f32 %v9200_v12, %v9199_v22 }
 0xf9d   :  { %11737 = vtanh.f32 %v13646_v18 }
 0xfa7   :  { %v11738_v15 = vpop.eup %11737 }
 0xfa8   :  { %v9203_v34 = vmul.f32 %v11738_v15, %v9197_v19 }
 0xfaa   :  { %v9204_v35 = vpack.c.bf16 %v9203_v34, %v9203_v34 }
 0xfac   :  { %9206 = vst [vmem:[#allocation3] sm:$0xf] %v9204_v35 }
 0xfb3   :  { %v9211_v41 = vld [vmem:[#allocation3] sm:$0xf] }
 0xfb4   :  { %9437 = vmatmul.mubr.bf16.vlgmr.msra.gmra.mrb[56].mxu0 %v9211_v41  ;;  %9478 = vmatmul.mubr.bf16.vlgmr.msra.gmra.mrb[56].mxu1 %v9211_v41 }
 0xfb5   :  { %9710 = vmatpush1.bf16.msra.mxu0 %v13454_v13  ;;  %9751 = vmatpush1.bf16.msra.mxu1 %v13456_v50 }
 0xfb6   :  { %9711 = vmatprep.subr.bf16.mxu0 %v13462_v46  ;;  %9752 = vmatprep.subr.bf16.mxu1 %v13464_v53 }
 0xfb7   :  { %9741 = vmatprep.mubr.bf16.mxu0 %v11859_v0  ;;  %9782 = vmatprep.mubr.bf16.mxu1 %v11859_v0  ;;  %v6806_v0 = vld [vmem:[%s13736_s6] sm:$0xf] }
 0xfb8   :  { %v6811_v13 = vrot.slane %v6806_v0, %v12457_v45  ;;  %v6815_v50 = vrot.slane %v6806_v0, %v12462_v47  ;;  %v7124_v45 = vrot.slane %v7107_v23, %v12469_v56 }
 0xfb9   :  { %9712 = vmatpush1.bf16.msra.mxu0 %v13466_v55  ;;  %9753 = vmatpush1.bf16.msra.mxu1 %v13468_v52  ;;  %v6819_v52 = vrot.slane %v6806_v0, %v12465_v49 }
 0xfba   :  { %9713 = vmatprep.subr.bf16.mxu0 %v13474_v57  ;;  %9754 = vmatprep.subr.bf16.mxu1 %v13476_v58 }
 0xfbd   :  { %9714 = vmatpush1.bf16.msra.mxu0 %v13478_v60  ;;  %9755 = vmatpush1.bf16.msra.mxu1 %v13480_v61 }
 0xfbe   :  { %9715 = vmatprep.subr.bf16.mxu0 %v13486_v59  ;;  %9756 = vmatprep.subr.bf16.mxu1 %v13488_v63 }
 0xfc1   :  { %9716 = vmatpush1.bf16.msra.mxu0 %v13490_v1  ;;  %9757 = vmatpush1.bf16.msra.mxu1 %v13492_v62 }
 0xfc2   :  { %9717 = vmatprep.subr.bf16.mxu0 %v13498_v43  ;;  %9758 = vmatprep.subr.bf16.mxu1 %v13500_v44 }
 0xfc5   :  { %9718 = vmatpush1.bf16.msra.mxu0 %v13502_v2  ;;  %9759 = vmatpush1.bf16.msra.mxu1 %v13504_v3  ;;  %v6823_v2 = vrot.slane %v6806_v0, %v12469_v56 }
 0xfc6   :  { %9719 = vmatprep.subr.bf16.mxu0 %v13510_v4  ;;  %9760 = vmatprep.subr.bf16.mxu1 %v13512_v11 }
 0xfc9   :  { %9720 = vmatpush1.bf16.msra.mxu0 %v13514_v20  ;;  %9761 = vmatpush1.bf16.msra.mxu1 %v13516_v21 }
 0xfca   :  { %9721 = vmatprep.subr.bf16.mxu0 %v13522_v37  ;;  %9762 = vmatprep.subr.bf16.mxu1 %v13524_v26 }
 0xfcd   :  { %9722 = vmatpush1.bf16.msra.mxu0 %v13526_v28  ;;  %9763 = vmatpush1.bf16.msra.mxu1 %v13528_v42 }
 0xfce   :  { %9723 = vmatprep.subr.bf16.mxu0 %v13532_v29  ;;  %9764 = vmatprep.subr.bf16.mxu1 %v13534_v30 }
 0xfd1   :  { %9724 = vmatpush1.bf16.msra.mxu0 %v13538_v31  ;;  %9765 = vmatpush1.bf16.msra.mxu1 %v13540_v32 }
 0xfd2   :  { %10986 = vmatprep.subr.bf16.mxu0 %v11860_v51 }
0x1087   :  { %v9438_v46 = vpop.f32.mrb[56].mxu0  ;;  %v9479_v53 = vpop.f32.mrb[56].mxu1 }
0x1088   :  { %v11062_v55 = vadd.f32 %v9438_v46, %v6811_v13  ;;  %v9440_v57 = vpop.f32.mrb[57].mxu0  ;;  %v9481_v58 = vpop.f32.mrb[57].mxu1  ;;  %v11064_v44 = vadd.f32 %v9479_v53, %v6819_v52 }
0x1089   :  { %v11063_v60 = vadd.f32 %v9440_v57, %v6815_v50  ;;  %v9442_v61 = vpop.f32.mrb[58].mxu0  ;;  %v9483_v59 = vpop.f32.mrb[58].mxu1  ;;  %v11065_v3 = vadd.f32 %v9481_v58, %v6823_v2 }
0x108a   :  { %v9490_v63 = vmul.f32 0.5, %v11062_v55  ;;  %v9443_v1 = vpop.f32.mrb[59].mxu0  ;;  %v9484_v62 = vpop.f32.mrb[59].mxu1 }
0x108b   :  { %v9494_v43 = vmul.f32 0.5, %v11063_v60  ;;  %v9499_v4 = vmul.f32 0.5, %v11065_v3 }
0x108c   :  { %11739 = vtanh.f32 %v9490_v63 }
0x108d   :  { %11741 = vtanh.f32 %v9494_v43 }
0x108e   :  { %11743 = vtanh.f32 %v11064_v44 }
0x108f   :  { %11745 = vtanh.f32 %v9499_v4  ;;  %v10968_v4 = vld [vmem:[%s13738_s8] ss:$0 sm:$0xff] }
0x1096   :  { %v11740_v11 = vpop.eup %11739 }
0x1097   :  { %v11742_v20 = vpop.eup %11741  ;;  %v9492_v21 = vmul.f32 0.5, %v11740_v11 }
0x1098   :  { %v9496_v37 = vmul.f32 0.5, %v11742_v20  ;;  %v11744_v28 = vpop.eup %11743 }
0x1099   :  { %v9493_v26 = vadd.f32 0.5, %v9492_v21  ;;  %v11746_v32 = vpop.eup %11745 }
0x109a   :  { %v9497_v42 = vadd.f32 0.5, %v9496_v37  ;;  %v9501_v8 = vmul.f32 0.5, %v11746_v32 }
0x109b   :  { %v9505_v29 = vmul.f32 %v11744_v28, %v9493_v26 }
0x109c   :  { %v9504_v30 = vmul.f32 %v9497_v42, %v13646_v18  ;;  %v9502_v33 = vadd.f32 0.5, %v9501_v8  ;;  %v7120_v18 = vrot.slane %v7107_v23, %v12465_v49 }
0x109e   :  { %v13689_v31 = vadd.f32 %v9505_v29, %v9504_v30 }
0x10a0   :  { %11747 = vtanh.f32 %v13689_v31 }
0x10aa   :  { %v11748_v36 = vpop.eup %11747 }
0x10ab   :  { %v9508_v16 = vmul.f32 %v11748_v36, %v9502_v33 }
0x10ad   :  { %v9509_v39 = vpack.c.bf16 %v9508_v16, %v9508_v16 }
0x10af   :  { %9511 = vst [vmem:[#allocation3] sm:$0xf] %v9509_v39 }
0x10b6   :  { %v9516_v17 = vld [vmem:[#allocation3] sm:$0xf] }
0x10b7   :  { %9742 = vmatmul.mubr.bf16.vlgmr.msra.gmra.mrb[60].mxu0 %v9516_v17  ;;  %9783 = vmatmul.mubr.bf16.vlgmr.msra.gmra.mrb[60].mxu1 %v9516_v17 }
0x10b8   :  { %10987 = vmatpush3.bf16.msra.mxu0 %v11591_v40  ;;  %11002 = vmatprep.mubr.msk.bf16.mxu0 %vm11861_vm0, %v11860_v51 }
0x10b9   :  { %10988 = vmatprep.subr.bf16.mxu0 %v11860_v51 }
0x10bc   :  { %10989 = vmatpush3.bf16.msra.mxu0 %v11592_v5 }
0x10bd   :  { %10990 = vmatprep.subr.bf16.mxu0 %v11860_v51 }
0x10c0   :  { %10991 = vmatpush3.bf16.msra.mxu0 %v11593_v6 }
0x10c1   :  { %10992 = vmatprep.subr.bf16.mxu0 %v11860_v51 }
0x10c4   :  { %10993 = vmatpush3.bf16.msra.mxu0 %v11594_v9 }
0x10c5   :  { %10994 = vmatprep.subr.bf16.mxu0 %v11860_v51 }
0x10c8   :  { %10995 = vmatpush3.bf16.msra.mxu0 %v11595_v27 }
0x10c9   :  { %10996 = vmatprep.subr.bf16.mxu0 %v11860_v51 }
0x10cc   :  { %10997 = vmatpush3.bf16.msra.mxu0 %v11596_v7 }
0x10cd   :  { %10998 = vmatprep.subr.bf16.mxu0 %v11860_v51 }
0x10d0   :  { %10999 = vmatpush3.bf16.msra.mxu0 %v11597_v48 }
0x10d1   :  { %11000 = vmatprep.subr.bf16.mxu0 %v11860_v51 }
0x10d4   :  { %11001 = vmatpush3.bf16.msra.mxu0 %v11598_v10 }
0x118a   :  { %v9743_v54 = vpop.f32.mrb[60].mxu0  ;;  %v9784_v12 = vpop.f32.mrb[60].mxu1 }
0x118b   :  { %v11066_v22 = vadd.f32 %v9743_v54, %v7112_v24  ;;  %v9745_v38 = vpop.f32.mrb[61].mxu0  ;;  %v9786_v14 = vpop.f32.mrb[61].mxu1  ;;  %v11068_v50 = vadd.f32 %v9784_v12, %v7120_v18 }
0x118c   :  { %v11067_v19 = vadd.f32 %v9745_v38, %v7116_v25  ;;  %v9747_v15 = vpop.f32.mrb[62].mxu0  ;;  %v9788_v34 = vpop.f32.mrb[62].mxu1  ;;  %v11069_v47 = vadd.f32 %v9786_v14, %v7124_v45 }
0x118d   :  { %v9795_v35 = vmul.f32 0.5, %v11066_v22  ;;  %v9748_v41 = vpop.f32.mrb[63].mxu0  ;;  %v9789_v0 = vpop.f32.mrb[63].mxu1 }
0x118e   :  { %v9799_v13 = vmul.f32 0.5, %v11067_v19  ;;  %v9804_v46 = vmul.f32 0.5, %v11069_v47 }
0x118f   :  { %11749 = vtanh.f32 %v9795_v35 }
0x1190   :  { %11751 = vtanh.f32 %v9799_v13 }
0x1191   :  { %11753 = vtanh.f32 %v11068_v50 }
0x1192   :  { %11755 = vtanh.f32 %v9804_v46 }
0x1199   :  { %v11750_v53 = vpop.eup %11749 }
0x119a   :  { %v11752_v55 = vpop.eup %11751  ;;  %v9797_v49 = vmul.f32 0.5, %v11750_v53 }
0x119b   :  { %v9801_v52 = vmul.f32 0.5, %v11752_v55  ;;  %v11754_v58 = vpop.eup %11753 }
0x119c   :  { %v9798_v57 = vadd.f32 0.5, %v9797_v49  ;;  %v11756_v1 = vpop.eup %11755 }
0x119d   :  { %v9802_v60 = vadd.f32 0.5, %v9801_v52  ;;  %v9806_v62 = vmul.f32 0.5, %v11756_v1 }
0x119e   :  { %v9810_v61 = vmul.f32 %v11754_v58, %v9798_v57 }
0x119f   :  { %v9809_v59 = vmul.f32 %v9802_v60, %v13689_v31  ;;  %v9807_v56 = vadd.f32 0.5, %v9806_v62 }
0x11a1   :  { %v9811_v63 = vadd.f32 %v9810_v61, %v9809_v59 }
0x11a3   :  { %11757 = vtanh.f32 %v9811_v63 }
0x11ad   :  { %v11758_v43 = vpop.eup %11757 }
0x11ae   :  { %v9813_v44 = vmul.f32 %v11758_v43, %v9807_v56 }
0x11b0   :  { %v9814_v2 = vpack.c.bf16 %v9813_v44, %v9813_v44 }
0x11b2   :  { %9816 = vst [vmem:[#allocation3] sm:$0xf] %v9814_v2 }
0x11b9   :  { %v9817_v3 = vld [vmem:[#allocation3] sm:$0xf] }
0x11ba   :  { %11003 = vmatmul.mubr.bf16.vlgmr.msra.gmra.mrb[64].mxu0 %v9817_v3 }
0x128d   :  { %v9923_v11 = vpop.f32.mrb[64].mxu0 }
0x128e   :  { %v9924_v20 = vadd.f32 %v10968_v4, %v9923_v11  ;;  %v11004_v21 = vpop.f32.mrb[65].mxu0 }
0x128f   :  { %v9926_v37 = vpop.f32.mrb[66].mxu0 }
0x1290   :  { %9929 = vst [vmem:[%s13739_s9] sm:$0xff] %v9924_v20  ;;  %v11005_v26 = vpop.f32.mrb[67].mxu0 }
0x1291   :  { %9934 = vsyncpa [#allocation7], 1 }
0x1292   :  { %9935 = vsyncpa [#allocation9], 1 }
0x1293   :  { %9936 = vsyncpa [#allocation12], 1 }

</bundles_post_ra>
